<compile_context>
chip_gen: v6e
topology: v6e:2x2x1
jax: 0.10.0
libtpu: 0.0.40
codegen_flags: <defaults>
</compile_context>

<pallas_src>
import functools

import jax
import jax.numpy as jnp
from jax import lax
from jax.experimental import pallas as pl
from jax.experimental.pallas import tpu as pltpu


# ----------------------------------------------------------------------------
# Pallas kernel: whole encoder layer for one chunk of CB batch elements,
# flattened to M = CB*L rows.
# ----------------------------------------------------------------------------
def _encoder_layer_kernel(x_ref, ln1w_ref, ln1b_ref, wqkv_ref, wout_ref,
                          bout_ref, ln2w_ref, ln2b_ref, w1_ref, b1_ref,
                          w2_ref, b2_ref, bias_ref, o_ref, *,
                          heads, dh, eps):
    scale = dh ** -0.5
    C = heads * dh

    x = x_ref[...].astype(jnp.float32)                     # (M, C)
    M = x.shape[0]

    # --- LayerNorm 1 (biased variance, like torch.nn.LayerNorm) ---
    mu = jnp.mean(x, axis=-1, keepdims=True)
    var = jnp.mean((x - mu) ** 2, axis=-1, keepdims=True)
    xn = (x - mu) * lax.rsqrt(var + eps) * ln1w_ref[...] + ln1b_ref[...]

    # --- QKV projection (no bias): one MXU contraction -> (3C, M) ---
    # qkv_t[j, m] = sum_c Wqkv[j, c] * xn[m, c]
    qkv_t = lax.dot_general(wqkv_ref[...], xn, (((1,), (1,)), ((), ())),
                            preferred_element_type=jnp.float32)   # (3C, M)

    # head-major views (leading-dim slices + free reshapes, no lane shuffles)
    q_t = qkv_t[:C].reshape(heads, dh, M)                  # (heads, dh, M)
    k_t = qkv_t[C:2 * C].reshape(heads, dh, M)             # (heads, dh, M)
    v_t = qkv_t[2 * C:].reshape(heads, dh, M)              # (heads, dh, M)
    q = jnp.swapaxes(q_t, 1, 2)                            # (heads, M, dh)

    # --- attention scores, all heads & batches in one batched dot_general ---
    # scores[h, i, j] = sum_d q[h, i, d] * k_t[h, d, j]
    scores = lax.dot_general(q, k_t, (((2,), (1,)), ((0,), (0,))),
                             preferred_element_type=jnp.float32) * scale
    # bias_ref is block-diagonal over batches inside the chunk: rel-pos bias on
    # the diagonal blocks, -1e9 elsewhere (masks cross-batch attention).
    scores = scores + bias_ref[...]                        # (heads, M, M)

    # --- stable softmax (reciprocal on the EUP) ---
    mx = jnp.max(scores, axis=-1, keepdims=True)
    p = jnp.exp(scores - mx)
    denom = jnp.sum(p, axis=-1, keepdims=True)
    attn = p * pl.reciprocal(denom, approx=True)
    # TODO(synk): attention dropout omitted (eval mode / identity).

    # --- attn @ v : batched, contracting both minor dims (flash pattern) ---
    # out[h, i, d] = sum_j attn[h, i, j] * v_t[h, d, j]
    out = lax.dot_general(attn, v_t, (((2,), (2,)), ((0,), (0,))),
                          preferred_element_type=jnp.float32)     # (heads, M, dh)

    # --- output projection with the head-concat folded into MXU contractions:
    #     y = sum_h out_h @ Wout_h  (no concatenate, no relayout) ---
    wout = wout_ref[...]                                   # (heads, dh, C)
    y = jnp.dot(out[0], wout[0], preferred_element_type=jnp.float32)
    for h in range(1, heads):
        y = y + jnp.dot(out[h], wout[h], preferred_element_type=jnp.float32)

    x1 = x + y + bout_ref[...]                             # residual 1

    # --- LayerNorm 2 ---
    mu2 = jnp.mean(x1, axis=-1, keepdims=True)
    var2 = jnp.mean((x1 - mu2) ** 2, axis=-1, keepdims=True)
    xn2 = (x1 - mu2) * lax.rsqrt(var2 + eps) * ln2w_ref[...] + ln2b_ref[...]

    # --- MLP: Linear -> GELU(exact erf) -> Linear, + residual ---
    h1 = jnp.dot(xn2, w1_ref[...], preferred_element_type=jnp.float32) + b1_ref[...]
    g = 0.5 * h1 * (1.0 + lax.erf(h1 * 0.7071067811865476))
    mlp = jnp.dot(g, w2_ref[...], preferred_element_type=jnp.float32) + b2_ref[...]

    o_ref[...] = (x1 + mlp).astype(o_ref.dtype)


# ----------------------------------------------------------------------------
# Wrapper
# ----------------------------------------------------------------------------
def encoder_layer(x, params, *, heads, eps=1e-5, max_rows_per_step=128):
    B, L, C = x.shape
    dh = C // heads

    # Batch chunking: each grid step handles CB batch elements (M = CB*L rows).
    # With B=2, L=64 this is a single grid step of 128 rows.  On v7x one can
    # lower max_rows_per_step to get >=2 "parallel" steps (one per TensorCore).
    CB = max(1, min(B, max_rows_per_step // L))
    while B % CB:
        CB -= 1
    num_chunks = B // CB
    M = CB * L

    # --- kernel-layout weights (packed once in the wrapper) ---
    wqkv_k = params["wqkv"].T                      # (3C, C): rows = qkv outputs
    wout_k = params["wout"].reshape(heads, dh, C)  # per-head output projection

    # Rel-pos bias (heads, L, L) -> block-diagonal (heads, M, M); off-diagonal
    # blocks get -1e9 so softmax exactly masks cross-batch attention.
    bias = params["attn_bias"].astype(jnp.float32)
    if CB == 1:
        bias_full = bias
    else:
        tiled = jnp.tile(bias, (1, CB, CB))
        blockmask = jnp.kron(jnp.eye(CB, dtype=jnp.float32),
                             jnp.ones((L, L), jnp.float32)) > 0.5
        bias_full = jnp.where(blockmask[None], tiled, jnp.float32(-1e9))

    x_flat = x.reshape(B * L, C)

    kernel = functools.partial(_encoder_layer_kernel, heads=heads, dh=dh, eps=eps)

    def const_spec(shape):
        if len(shape) == 2:
            return pl.BlockSpec(shape, lambda i: (0, 0))
        return pl.BlockSpec(shape, lambda i: (0, 0, 0))

    in_specs = [
        pl.BlockSpec((M, C), lambda i: (i, 0)),            # x rows (chunked)
        const_spec(params["ln1_w"].shape), const_spec(params["ln1_b"].shape),
        const_spec(wqkv_k.shape),                          # (3C, C)
        const_spec(wout_k.shape),                          # (heads, dh, C)
        const_spec(params["bout"].shape),
        const_spec(params["ln2_w"].shape), const_spec(params["ln2_b"].shape),
        const_spec(params["w1"].shape), const_spec(params["b1"].shape),
        const_spec(params["w2"].shape), const_spec(params["b2"].shape),
        const_spec(bias_full.shape),                       # (heads, M, M)
    ]
    out_specs = pl.BlockSpec((M, C), lambda i: (i, 0))

    out_flat = pl.pallas_call(
        kernel,
        out_shape=jax.ShapeDtypeStruct((B * L, C), x.dtype),
        grid=(num_chunks,),
        in_specs=in_specs,
        out_specs=out_specs,
        compiler_params=pltpu.CompilerParams(
            dimension_semantics=("parallel",)),
    )(x_flat, params["ln1_w"], params["ln1_b"], wqkv_k, wout_k,
      params["bout"], params["ln2_w"], params["ln2_b"], params["w1"],
      params["b1"], params["w2"], params["b2"], bias_full)

    return out_flat.reshape(B, L, C)


# ----------------------------------------------------------------------------
# Parameter construction (deterministic, synthetic)
# ----------------------------------------------------------------------------
def make_params(key, dim, heads, mlp_mult=4.0):
    hidden = int(dim * mlp_mult)
    ks = jax.random.split(key, 8)
    u = lambda k, shape, s: jax.random.uniform(k, shape, jnp.float32, -s, s)

    # weights stored "math-friendly" so y = x @ W (+ b)
    wqkv = u(ks[0], (dim, 3 * dim), dim ** -0.5)
    wout = u(ks[1], (dim, dim), dim ** -0.5)
    bout = u(ks[2], (1, dim), dim ** -0.5)
    w1 = u(ks[3], (dim, hidden), dim ** -0.5)
    b1 = u(ks[4], (1, hidden), dim ** -0.5)
    w2 = u(ks[5], (hidden, dim), hidden ** -0.5)
    b2 = u(ks[6], (1, dim), hidden ** -0.5)

    # rel_bias parameter (15, 15, heads), xavier-uniform-ish deterministic init
    rel_bias = u(ks[7], (15, 15, heads), (6.0 / (15 + 15 * heads)) ** 0.5)

    # Precompute the (heads, 64, 64) bias tensor exactly as the PyTorch forward:
    ri = jnp.repeat(jnp.arange(8), 8)          # rows.unsqueeze(1).expand(8,8).reshape(-1)
    ci = jnp.tile(jnp.arange(8), 8)            # cols.expand(8,8).reshape(-1)
    dr = jnp.clip(ri[:, None] - ri[None, :], -7, 7) + 7
    dc = jnp.clip(ci[:, None] - ci[None, :], -7, 7) + 7
    attn_bias = jnp.transpose(rel_bias[dr, dc], (2, 0, 1))  # (heads, 64, 64)

    ln1_w = jnp.ones((1, dim), jnp.float32)
    ln1_b = jnp.zeros((1, dim), jnp.float32)
    ln2_w = jnp.ones((1, dim), jnp.float32)
    ln2_b = jnp.zeros((1, dim), jnp.float32)

    return dict(ln1_w=ln1_w, ln1_b=ln1_b, wqkv=wqkv, wout=wout, bout=bout,
                ln2_w=ln2_w, ln2_b=ln2_b, w1=w1, b1=b1, w2=w2, b2=b2,
                attn_bias=attn_bias)


# ----------------------------------------------------------------------------
# Pure-JAX reference for a correctness check
# ----------------------------------------------------------------------------
def encoder_layer_ref(x, p, *, heads, eps=1e-5):
    B, L, C = x.shape
    dh = C // heads

    def ln(z, w, b):
        mu = jnp.mean(z, axis=-1, keepdims=True)
        var = jnp.mean((z - mu) ** 2, axis=-1, keepdims=True)
        return (z - mu) * lax.rsqrt(var + eps) * w + b

    xn = ln(x, p["ln1_w"][0], p["ln1_b"][0])
    qkv = xn @ p["wqkv"]
    q = qkv[..., :C].reshape(B, L, heads, dh).transpose(0, 2, 1, 3)
    k = qkv[..., C:2 * C].reshape(B, L, heads, dh).transpose(0, 2, 1, 3)
    v = qkv[..., 2 * C:].reshape(B, L, heads, dh).transpose(0, 2, 1, 3)
    scores = jnp.einsum("bhqd,bhkd->bhqk", q, k) * (dh ** -0.5)
    scores = scores + p["attn_bias"][None]
    attn = jax.nn.softmax(scores, axis=-1)
    out = jnp.einsum("bhqk,bhkd->bhqd", attn, v).transpose(0, 2, 1, 3).reshape(B, L, C)
    x1 = x + out @ p["wout"] + p["bout"][0]

    xn2 = ln(x1, p["ln2_w"][0], p["ln2_b"][0])
    h = xn2 @ p["w1"] + p["b1"][0]
    g = 0.5 * h * (1.0 + lax.erf(h * 0.7071067811865476))
    return x1 + g @ p["w2"] + p["b2"][0]


if __name__ == "__main__":
    B, L, dim, heads = 2, 64, 32, 4   # L = 64 fixed by the 8x8 rel-pos grid

    key = jax.random.PRNGKey(0)
    kx, kp = jax.random.split(key)
    x = jax.random.normal(kx, (B, L, dim), dtype=jnp.float32)
    params = make_params(kp, dim, heads)

    out = encoder_layer(x, params, heads=heads)
    out = jax.block_until_ready(out)

    ref = encoder_layer_ref(x, params, heads=heads)
    assert out.shape == (B, L, dim)
    assert jnp.allclose(out, ref, atol=2e-2, rtol=2e-2), "mismatch vs reference"

    print("KERNEL_OK")
</pallas_src>

<mosaic_0001>
module attributes {stable_mosaic.version = 11 : i64} {
  func.func @_encoder_layer_kernel(%arg0: i32, %arg1: memref<128x32xf32, #tpu.memory_space<vmem>>, %arg2: memref<1x32xf32, #tpu.memory_space<vmem>>, %arg3: memref<1x32xf32, #tpu.memory_space<vmem>>, %arg4: memref<96x32xf32, #tpu.memory_space<vmem>>, %arg5: memref<4x8x32xf32, #tpu.memory_space<vmem>>, %arg6: memref<1x32xf32, #tpu.memory_space<vmem>>, %arg7: memref<1x32xf32, #tpu.memory_space<vmem>>, %arg8: memref<1x32xf32, #tpu.memory_space<vmem>>, %arg9: memref<32x128xf32, #tpu.memory_space<vmem>>, %arg10: memref<1x128xf32, #tpu.memory_space<vmem>>, %arg11: memref<128x32xf32, #tpu.memory_space<vmem>>, %arg12: memref<1x32xf32, #tpu.memory_space<vmem>>, %arg13: memref<4x128x128xf32, #tpu.memory_space<vmem>>, %arg14: memref<128x32xf32, #tpu.memory_space<vmem>>) attributes {dimension_semantics = [#tpu.dimension_semantics<parallel>], iteration_bounds = array<i64: 1>, scalar_prefetch = 0 : i64, scratch_operands = 0 : i64, tpu.core_type = #tpu.core_type<tc>, window_params = [{transform_indices = @transform_0, window_bounds = array<i64: 128, 32>}, {pipeline_mode = #tpu.pipeline_mode<synchronous>, transform_indices = @transform_1, window_bounds = array<i64: 1, 32>}, {pipeline_mode = #tpu.pipeline_mode<synchronous>, transform_indices = @transform_2, window_bounds = array<i64: 1, 32>}, {pipeline_mode = #tpu.pipeline_mode<synchronous>, transform_indices = @transform_3, window_bounds = array<i64: 96, 32>}, {pipeline_mode = #tpu.pipeline_mode<synchronous>, transform_indices = @transform_4, window_bounds = array<i64: 4, 8, 32>}, {pipeline_mode = #tpu.pipeline_mode<synchronous>, transform_indices = @transform_5, window_bounds = array<i64: 1, 32>}, {pipeline_mode = #tpu.pipeline_mode<synchronous>, transform_indices = @transform_6, window_bounds = array<i64: 1, 32>}, {pipeline_mode = #tpu.pipeline_mode<synchronous>, transform_indices = @transform_7, window_bounds = array<i64: 1, 32>}, {pipeline_mode = #tpu.pipeline_mode<synchronous>, transform_indices = @transform_8, window_bounds = array<i64: 32, 128>}, {pipeline_mode = #tpu.pipeline_mode<synchronous>, transform_indices = @transform_9, window_bounds = array<i64: 1, 128>}, {pipeline_mode = #tpu.pipeline_mode<synchronous>, transform_indices = @transform_10, window_bounds = array<i64: 128, 32>}, {pipeline_mode = #tpu.pipeline_mode<synchronous>, transform_indices = @transform_11, window_bounds = array<i64: 1, 32>}, {pipeline_mode = #tpu.pipeline_mode<synchronous>, transform_indices = @transform_12, window_bounds = array<i64: 4, 128, 128>}, {transform_indices = @transform_13, window_bounds = array<i64: 128, 32>}]} {
    %c0 = arith.constant 0 : index
    %c0_0 = arith.constant 0 : index
    %0 = vector.load %arg1[%c0, %c0_0] : memref<128x32xf32, #tpu.memory_space<vmem>>, vector<128x32xf32>
    %cst = arith.constant dense<0.000000e+00> : vector<128xf32>
    %1 = vector.multi_reduction <add>, %0, %cst [1] : vector<128x32xf32> to vector<128xf32>
    %2 = vector.shape_cast %1 : vector<128xf32> to vector<128x1xf32>
    %cst_1 = arith.constant 3.200000e+01 : f32
    %3 = vector.broadcast %cst_1 : f32 to vector<128x1xf32>
    %4 = arith.divf %2, %3 : vector<128x1xf32>
    %5 = vector.broadcast %4 : vector<128x1xf32> to vector<128x32xf32>
    %6 = arith.subf %0, %5 : vector<128x32xf32>
    %7 = arith.mulf %6, %6 : vector<128x32xf32>
    %cst_2 = arith.constant dense<0.000000e+00> : vector<128xf32>
    %8 = vector.multi_reduction <add>, %7, %cst_2 [1] : vector<128x32xf32> to vector<128xf32>
    %9 = vector.shape_cast %8 : vector<128xf32> to vector<128x1xf32>
    %cst_3 = arith.constant 3.200000e+01 : f32
    %10 = vector.broadcast %cst_3 : f32 to vector<128x1xf32>
    %11 = arith.divf %9, %10 : vector<128x1xf32>
    %12 = vector.broadcast %4 : vector<128x1xf32> to vector<128x32xf32>
    %13 = arith.subf %0, %12 : vector<128x32xf32>
    %cst_4 = arith.constant 9.99999974E-6 : f32
    %14 = vector.broadcast %cst_4 : f32 to vector<128x1xf32>
    %15 = arith.addf %11, %14 : vector<128x1xf32>
    %16 = math.rsqrt %15 : vector<128x1xf32>
    %17 = vector.broadcast %16 : vector<128x1xf32> to vector<128x32xf32>
    %18 = arith.mulf %13, %17 : vector<128x32xf32>
    %c0_5 = arith.constant 0 : index
    %c0_6 = arith.constant 0 : index
    %19 = vector.load %arg2[%c0_5, %c0_6] : memref<1x32xf32, #tpu.memory_space<vmem>>, vector<1x32xf32>
    %20 = vector.broadcast %19 : vector<1x32xf32> to vector<128x32xf32>
    %21 = arith.mulf %18, %20 : vector<128x32xf32>
    %c0_7 = arith.constant 0 : index
    %c0_8 = arith.constant 0 : index
    %22 = vector.load %arg3[%c0_7, %c0_8] : memref<1x32xf32, #tpu.memory_space<vmem>>, vector<1x32xf32>
    %23 = vector.broadcast %22 : vector<1x32xf32> to vector<128x32xf32>
    %24 = arith.addf %21, %23 : vector<128x32xf32>
    %c0_9 = arith.constant 0 : index
    %c0_10 = arith.constant 0 : index
    %25 = vector.load %arg4[%c0_9, %c0_10] : memref<96x32xf32, #tpu.memory_space<vmem>>, vector<96x32xf32>
    %cst_11 = arith.constant dense<0.000000e+00> : vector<96x128xf32>
    %26 = tpu.matmul %25, %24, %cst_11 {dimension_numbers = #tpu.dot_dimension_numbers<[1], [1], [0], [0], [0, 0, 1, 0], [], []>} : vector<96x32xf32>, vector<128x32xf32>, vector<96x128xf32> -> vector<96x128xf32>
    %27 = vector.extract_strided_slice %26 {offsets = [0, 0], sizes = [32, 128], strides = [1, 1]} : vector<96x128xf32> to vector<32x128xf32>
    %28 = vector.shape_cast %27 : vector<32x128xf32> to vector<4x8x128xf32>
    %29 = vector.extract_strided_slice %26 {offsets = [32, 0], sizes = [32, 128], strides = [1, 1]} : vector<96x128xf32> to vector<32x128xf32>
    %30 = vector.shape_cast %29 : vector<32x128xf32> to vector<4x8x128xf32>
    %31 = vector.extract_strided_slice %26 {offsets = [64, 0], sizes = [32, 128], strides = [1, 1]} : vector<96x128xf32> to vector<32x128xf32>
    %32 = vector.shape_cast %31 : vector<32x128xf32> to vector<4x8x128xf32>
    %33 = tpu.transpose %28, [0, 2, 1] : vector<4x8x128xf32> -> vector<4x128x8xf32>
    %cst_12 = arith.constant dense<0.000000e+00> : vector<4x128x128xf32>
    %34 = tpu.matmul %33, %30, %cst_12 {dimension_numbers = #tpu.dot_dimension_numbers<[2], [1], [1], [2], [0, 0, 0, 1, 1, 2], [0], [0]>} : vector<4x128x8xf32>, vector<4x8x128xf32>, vector<4x128x128xf32> -> vector<4x128x128xf32>
    %cst_13 = arith.constant 0.353553385 : f32
    %35 = vector.broadcast %cst_13 : f32 to vector<4x128x128xf32>
    %36 = arith.mulf %34, %35 : vector<4x128x128xf32>
    %c0_14 = arith.constant 0 : index
    %c0_15 = arith.constant 0 : index
    %c0_16 = arith.constant 0 : index
    %37 = vector.load %arg13[%c0_14, %c0_15, %c0_16] : memref<4x128x128xf32, #tpu.memory_space<vmem>>, vector<4x128x128xf32>
    %38 = arith.addf %36, %37 : vector<4x128x128xf32>
    %cst_17 = arith.constant dense<0xFF800000> : vector<4x128xf32>
    %39 = vector.multi_reduction <maximumf>, %38, %cst_17 [2] : vector<4x128x128xf32> to vector<4x128xf32>
    %40 = vector.shape_cast %39 : vector<4x128xf32> to vector<4x128x1xf32>
    %41 = vector.broadcast %40 : vector<4x128x1xf32> to vector<4x128x128xf32>
    %42 = arith.subf %38, %41 : vector<4x128x128xf32>
    %43 = math.exp %42 : vector<4x128x128xf32>
    %cst_18 = arith.constant dense<0.000000e+00> : vector<4x128xf32>
    %44 = vector.multi_reduction <add>, %43, %cst_18 [2] : vector<4x128x128xf32> to vector<4x128xf32>
    %45 = vector.shape_cast %44 : vector<4x128xf32> to vector<4x128x1xf32>
    %46 = tpu.reciprocal %45 {approx = true} : vector<4x128x1xf32> -> vector<4x128x1xf32>
    %47 = vector.broadcast %46 : vector<4x128x1xf32> to vector<4x128x128xf32>
    %48 = arith.mulf %43, %47 : vector<4x128x128xf32>
    %cst_19 = arith.constant dense<0.000000e+00> : vector<4x128x8xf32>
    %49 = tpu.matmul %48, %32, %cst_19 {dimension_numbers = #tpu.dot_dimension_numbers<[2], [2], [1], [1], [0, 0, 0, 1, 1, 1], [0], [0]>} : vector<4x128x128xf32>, vector<4x8x128xf32>, vector<4x128x8xf32> -> vector<4x128x8xf32>
    %c0_20 = arith.constant 0 : index
    %c0_21 = arith.constant 0 : index
    %c0_22 = arith.constant 0 : index
    %50 = vector.load %arg5[%c0_20, %c0_21, %c0_22] : memref<4x8x32xf32, #tpu.memory_space<vmem>>, vector<4x8x32xf32>
    %51 = vector.extract_strided_slice %49 {offsets = [0, 0, 0], sizes = [1, 128, 8], strides = [1, 1, 1]} : vector<4x128x8xf32> to vector<1x128x8xf32>
    %52 = vector.shape_cast %51 : vector<1x128x8xf32> to vector<128x8xf32>
    %53 = vector.extract_strided_slice %50 {offsets = [0, 0, 0], sizes = [1, 8, 32], strides = [1, 1, 1]} : vector<4x8x32xf32> to vector<1x8x32xf32>
    %54 = vector.shape_cast %53 : vector<1x8x32xf32> to vector<8x32xf32>
    %cst_23 = arith.constant dense<0.000000e+00> : vector<128x32xf32>
    %55 = tpu.matmul %52, %54, %cst_23 {dimension_numbers = #tpu.dot_dimension_numbers<[1], [0], [0], [1], [0, 0, 1, 1], [], []>} : vector<128x8xf32>, vector<8x32xf32>, vector<128x32xf32> -> vector<128x32xf32>
    %56 = vector.extract_strided_slice %49 {offsets = [1, 0, 0], sizes = [1, 128, 8], strides = [1, 1, 1]} : vector<4x128x8xf32> to vector<1x128x8xf32>
    %57 = vector.shape_cast %56 : vector<1x128x8xf32> to vector<128x8xf32>
    %58 = vector.extract_strided_slice %50 {offsets = [1, 0, 0], sizes = [1, 8, 32], strides = [1, 1, 1]} : vector<4x8x32xf32> to vector<1x8x32xf32>
    %59 = vector.shape_cast %58 : vector<1x8x32xf32> to vector<8x32xf32>
    %cst_24 = arith.constant dense<0.000000e+00> : vector<128x32xf32>
    %60 = tpu.matmul %57, %59, %cst_24 {dimension_numbers = #tpu.dot_dimension_numbers<[1], [0], [0], [1], [0, 0, 1, 1], [], []>} : vector<128x8xf32>, vector<8x32xf32>, vector<128x32xf32> -> vector<128x32xf32>
    %61 = arith.addf %55, %60 : vector<128x32xf32>
    %62 = vector.extract_strided_slice %49 {offsets = [2, 0, 0], sizes = [1, 128, 8], strides = [1, 1, 1]} : vector<4x128x8xf32> to vector<1x128x8xf32>
    %63 = vector.shape_cast %62 : vector<1x128x8xf32> to vector<128x8xf32>
    %64 = vector.extract_strided_slice %50 {offsets = [2, 0, 0], sizes = [1, 8, 32], strides = [1, 1, 1]} : vector<4x8x32xf32> to vector<1x8x32xf32>
    %65 = vector.shape_cast %64 : vector<1x8x32xf32> to vector<8x32xf32>
    %cst_25 = arith.constant dense<0.000000e+00> : vector<128x32xf32>
    %66 = tpu.matmul %63, %65, %cst_25 {dimension_numbers = #tpu.dot_dimension_numbers<[1], [0], [0], [1], [0, 0, 1, 1], [], []>} : vector<128x8xf32>, vector<8x32xf32>, vector<128x32xf32> -> vector<128x32xf32>
    %67 = arith.addf %61, %66 : vector<128x32xf32>
    %68 = vector.extract_strided_slice %49 {offsets = [3, 0, 0], sizes = [1, 128, 8], strides = [1, 1, 1]} : vector<4x128x8xf32> to vector<1x128x8xf32>
    %69 = vector.shape_cast %68 : vector<1x128x8xf32> to vector<128x8xf32>
    %70 = vector.extract_strided_slice %50 {offsets = [3, 0, 0], sizes = [1, 8, 32], strides = [1, 1, 1]} : vector<4x8x32xf32> to vector<1x8x32xf32>
    %71 = vector.shape_cast %70 : vector<1x8x32xf32> to vector<8x32xf32>
    %cst_26 = arith.constant dense<0.000000e+00> : vector<128x32xf32>
    %72 = tpu.matmul %69, %71, %cst_26 {dimension_numbers = #tpu.dot_dimension_numbers<[1], [0], [0], [1], [0, 0, 1, 1], [], []>} : vector<128x8xf32>, vector<8x32xf32>, vector<128x32xf32> -> vector<128x32xf32>
    %73 = arith.addf %67, %72 : vector<128x32xf32>
    %74 = arith.addf %0, %73 : vector<128x32xf32>
    %c0_27 = arith.constant 0 : index
    %c0_28 = arith.constant 0 : index
    %75 = vector.load %arg6[%c0_27, %c0_28] : memref<1x32xf32, #tpu.memory_space<vmem>>, vector<1x32xf32>
    %76 = vector.broadcast %75 : vector<1x32xf32> to vector<128x32xf32>
    %77 = arith.addf %74, %76 : vector<128x32xf32>
    %cst_29 = arith.constant dense<0.000000e+00> : vector<128xf32>
    %78 = vector.multi_reduction <add>, %77, %cst_29 [1] : vector<128x32xf32> to vector<128xf32>
    %79 = vector.shape_cast %78 : vector<128xf32> to vector<128x1xf32>
    %cst_30 = arith.constant 3.200000e+01 : f32
    %80 = vector.broadcast %cst_30 : f32 to vector<128x1xf32>
    %81 = arith.divf %79, %80 : vector<128x1xf32>
    %82 = vector.broadcast %81 : vector<128x1xf32> to vector<128x32xf32>
    %83 = arith.subf %77, %82 : vector<128x32xf32>
    %84 = arith.mulf %83, %83 : vector<128x32xf32>
    %cst_31 = arith.constant dense<0.000000e+00> : vector<128xf32>
    %85 = vector.multi_reduction <add>, %84, %cst_31 [1] : vector<128x32xf32> to vector<128xf32>
    %86 = vector.shape_cast %85 : vector<128xf32> to vector<128x1xf32>
    %cst_32 = arith.constant 3.200000e+01 : f32
    %87 = vector.broadcast %cst_32 : f32 to vector<128x1xf32>
    %88 = arith.divf %86, %87 : vector<128x1xf32>
    %89 = vector.broadcast %81 : vector<128x1xf32> to vector<128x32xf32>
    %90 = arith.subf %77, %89 : vector<128x32xf32>
    %cst_33 = arith.constant 9.99999974E-6 : f32
    %91 = vector.broadcast %cst_33 : f32 to vector<128x1xf32>
    %92 = arith.addf %88, %91 : vector<128x1xf32>
    %93 = math.rsqrt %92 : vector<128x1xf32>
    %94 = vector.broadcast %93 : vector<128x1xf32> to vector<128x32xf32>
    %95 = arith.mulf %90, %94 : vector<128x32xf32>
    %c0_34 = arith.constant 0 : index
    %c0_35 = arith.constant 0 : index
    %96 = vector.load %arg7[%c0_34, %c0_35] : memref<1x32xf32, #tpu.memory_space<vmem>>, vector<1x32xf32>
    %97 = vector.broadcast %96 : vector<1x32xf32> to vector<128x32xf32>
    %98 = arith.mulf %95, %97 : vector<128x32xf32>
    %c0_36 = arith.constant 0 : index
    %c0_37 = arith.constant 0 : index
    %99 = vector.load %arg8[%c0_36, %c0_37] : memref<1x32xf32, #tpu.memory_space<vmem>>, vector<1x32xf32>
    %100 = vector.broadcast %99 : vector<1x32xf32> to vector<128x32xf32>
    %101 = arith.addf %98, %100 : vector<128x32xf32>
    %c0_38 = arith.constant 0 : index
    %c0_39 = arith.constant 0 : index
    %102 = vector.load %arg9[%c0_38, %c0_39] : memref<32x128xf32, #tpu.memory_space<vmem>>, vector<32x128xf32>
    %cst_40 = arith.constant dense<0.000000e+00> : vector<128x128xf32>
    %103 = tpu.matmul %101, %102, %cst_40 {dimension_numbers = #tpu.dot_dimension_numbers<[1], [0], [0], [1], [0, 0, 1, 1], [], []>} : vector<128x32xf32>, vector<32x128xf32>, vector<128x128xf32> -> vector<128x128xf32>
    %c0_41 = arith.constant 0 : index
    %c0_42 = arith.constant 0 : index
    %104 = vector.load %arg10[%c0_41, %c0_42] : memref<1x128xf32, #tpu.memory_space<vmem>>, vector<1x128xf32>
    %105 = vector.broadcast %104 : vector<1x128xf32> to vector<128x128xf32>
    %106 = arith.addf %103, %105 : vector<128x128xf32>
    %cst_43 = arith.constant 5.000000e-01 : f32
    %107 = vector.broadcast %cst_43 : f32 to vector<128x128xf32>
    %108 = arith.mulf %107, %106 : vector<128x128xf32>
    %cst_44 = arith.constant 0.707106769 : f32
    %109 = vector.broadcast %cst_44 : f32 to vector<128x128xf32>
    %110 = arith.mulf %106, %109 : vector<128x128xf32>
    %111 = math.erf %110 : vector<128x128xf32>
    %cst_45 = arith.constant 1.000000e+00 : f32
    %112 = vector.broadcast %cst_45 : f32 to vector<128x128xf32>
    %113 = arith.addf %112, %111 : vector<128x128xf32>
    %114 = arith.mulf %108, %113 : vector<128x128xf32>
    %c0_46 = arith.constant 0 : index
    %c0_47 = arith.constant 0 : index
    %115 = vector.load %arg11[%c0_46, %c0_47] : memref<128x32xf32, #tpu.memory_space<vmem>>, vector<128x32xf32>
    %cst_48 = arith.constant dense<0.000000e+00> : vector<128x32xf32>
    %116 = tpu.matmul %114, %115, %cst_48 {dimension_numbers = #tpu.dot_dimension_numbers<[1], [0], [0], [1], [0, 0, 1, 1], [], []>} : vector<128x128xf32>, vector<128x32xf32>, vector<128x32xf32> -> vector<128x32xf32>
    %c0_49 = arith.constant 0 : index
    %c0_50 = arith.constant 0 : index
    %117 = vector.load %arg12[%c0_49, %c0_50] : memref<1x32xf32, #tpu.memory_space<vmem>>, vector<1x32xf32>
    %118 = vector.broadcast %117 : vector<1x32xf32> to vector<128x32xf32>
    %119 = arith.addf %116, %118 : vector<128x32xf32>
    %120 = arith.addf %77, %119 : vector<128x32xf32>
    %c0_51 = arith.constant 0 : index
    %c0_52 = arith.constant 0 : index
    %121 = vector.load %arg14[%c0_51, %c0_52] : memref<128x32xf32, #tpu.memory_space<vmem>>, vector<128x32xf32>
    tpu.vector_store %arg14[%c0_51, %c0_52], %120 {strides = array<i32>} : memref<128x32xf32, #tpu.memory_space<vmem>>, vector<128x32xf32>,
    return
  }
  func.func @transform_0(%arg0: i32) -> (i32, i32) {
    %c0_i32 = arith.constant 0 : i32
    %c0_i32_0 = arith.constant 0 : i32
    return %arg0, %c0_i32 : i32, i32
  }
  func.func @transform_1(%arg0: i32) -> (i32, i32) {
    %c0_i32 = arith.constant 0 : i32
    %c0_i32_0 = arith.constant 0 : i32
    %c0_i32_1 = arith.constant 0 : i32
    return %c0_i32, %c0_i32_0 : i32, i32
  }
  func.func @transform_2(%arg0: i32) -> (i32, i32) {
    %c0_i32 = arith.constant 0 : i32
    %c0_i32_0 = arith.constant 0 : i32
    %c0_i32_1 = arith.constant 0 : i32
    return %c0_i32, %c0_i32_0 : i32, i32
  }
  func.func @transform_3(%arg0: i32) -> (i32, i32) {
    %c0_i32 = arith.constant 0 : i32
    %c0_i32_0 = arith.constant 0 : i32
    %c0_i32_1 = arith.constant 0 : i32
    return %c0_i32, %c0_i32_0 : i32, i32
  }
  func.func @transform_4(%arg0: i32) -> (i32, i32, i32) {
    %c0_i32 = arith.constant 0 : i32
    %c0_i32_0 = arith.constant 0 : i32
    %c0_i32_1 = arith.constant 0 : i32
    %c0_i32_2 = arith.constant 0 : i32
    return %c0_i32, %c0_i32_0, %c0_i32_1 : i32, i32, i32
  }
  func.func @transform_5(%arg0: i32) -> (i32, i32) {
    %c0_i32 = arith.constant 0 : i32
    %c0_i32_0 = arith.constant 0 : i32
    %c0_i32_1 = arith.constant 0 : i32
    return %c0_i32, %c0_i32_0 : i32, i32
  }
  func.func @transform_6(%arg0: i32) -> (i32, i32) {
    %c0_i32 = arith.constant 0 : i32
    %c0_i32_0 = arith.constant 0 : i32
    %c0_i32_1 = arith.constant 0 : i32
    return %c0_i32, %c0_i32_0 : i32, i32
  }
  func.func @transform_7(%arg0: i32) -> (i32, i32) {
    %c0_i32 = arith.constant 0 : i32
    %c0_i32_0 = arith.constant 0 : i32
    %c0_i32_1 = arith.constant 0 : i32
    return %c0_i32, %c0_i32_0 : i32, i32
  }
  func.func @transform_8(%arg0: i32) -> (i32, i32) {
    %c0_i32 = arith.constant 0 : i32
    %c0_i32_0 = arith.constant 0 : i32
    %c0_i32_1 = arith.constant 0 : i32
    return %c0_i32, %c0_i32_0 : i32, i32
  }
  func.func @transform_9(%arg0: i32) -> (i32, i32) {
    %c0_i32 = arith.constant 0 : i32
    %c0_i32_0 = arith.constant 0 : i32
    %c0_i32_1 = arith.constant 0 : i32
    return %c0_i32, %c0_i32_0 : i32, i32
  }
  func.func @transform_10(%arg0: i32) -> (i32, i32) {
    %c0_i32 = arith.constant 0 : i32
    %c0_i32_0 = arith.constant 0 : i32
    %c0_i32_1 = arith.constant 0 : i32
    return %c0_i32, %c0_i32_0 : i32, i32
  }
  func.func @transform_11(%arg0: i32) -> (i32, i32) {
    %c0_i32 = arith.constant 0 : i32
    %c0_i32_0 = arith.constant 0 : i32
    %c0_i32_1 = arith.constant 0 : i32
    return %c0_i32, %c0_i32_0 : i32, i32
  }
  func.func @transform_12(%arg0: i32) -> (i32, i32, i32) {
    %c0_i32 = arith.constant 0 : i32
    %c0_i32_0 = arith.constant 0 : i32
    %c0_i32_1 = arith.constant 0 : i32
    %c0_i32_2 = arith.constant 0 : i32
    return %c0_i32, %c0_i32_0, %c0_i32_1 : i32, i32, i32
  }
  func.func @transform_13(%arg0: i32) -> (i32, i32) {
    %c0_i32 = arith.constant 0 : i32
    %c0_i32_0 = arith.constant 0 : i32
    return %arg0, %c0_i32 : i32, i32
  }
}

</mosaic_0001>

<bundles_post_ra>
// kernel: tpu_custom_call.1
= control target key start
LH: loop header
LB: loop body
LE: loop exit
PB: predicated region body
PF: predicated region fallthrough
CT: control target
= control target key end

     0   :  { %18 = vsyncpa [#allocation3], 0  ;;  %s5699_s25 = smov [#allocation2]   ;;  %s7452_s0 = inlined_call_operand.vmem [shape: f32[128,32], index: 0, kind: input, shape index: {}]   ;;  %s7453_s1 = inlined_call_operand.vmem [shape: f32[1,32], index: 1, kind: input, shape index: {}]   ;;  %s7454_s2 = inlined_call_operand.vmem [shape: f32[1,32], index: 2, kind: input, shape index: {}]   ;;  %s7455_s3 = inlined_call_operand.vmem [shape: f32[96,32], index: 3, kind: input, shape index: {}]   ;;  %s7456_s4 = inlined_call_operand.vmem [shape: f32[4,8,32], index: 4, kind: input, shape index: {}]   ;;  %s7457_s5 = inlined_call_operand.vmem [shape: f32[1,32], index: 5, kind: input, shape index: {}]   ;;  %s7458_s6 = inlined_call_operand.vmem [shape: f32[1,32], index: 6, kind: input, shape index: {}]   ;;  %s7459_s7 = inlined_call_operand.vmem [shape: f32[1,32], index: 7, kind: input, shape index: {}]   ;;  %s7460_s8 = inlined_call_operand.vmem [shape: f32[32,128], index: 8, kind: input, shape index: {}]   ;;  %s7461_s9 = inlined_call_operand.vmem [shape: f32[1,128], index: 9, kind: input, shape index: {}]   ;;  %s7462_s10 = inlined_call_operand.vmem [shape: f32[128,32], index: 10, kind: input, shape index: {}]   ;;  %s7463_s11 = inlined_call_operand.vmem [shape: f32[1,32], index: 11, kind: input, shape index: {}]   ;;  %s7464_s12 = inlined_call_operand.hbm [shape: f32[4,128,128], index: 12, kind: input, shape index: {}]   ;;  %s7465_s13 = inlined_call_operand.vmem [shape: f32[128,32], index: 13, kind: output, shape index: {}]  }
   0x1   :  { %s48_s26 = sshll.u32 %s5699_s25, 4  ;;  %s49_s26 = int_to_ptr.vmem [resolvable:$true] %s48_s26 }
   0x2   :  { %s5685_s27 = scalar_lea.vmem %s49_s26, 8192  ;;  %p5690_p1 = scmp.lt.s32.totalorder %s49_s26, %s49_s26 }
   0x3   :  { %p5686_p0 = scmp.ne.s32.totalorder %s49_s26, %s5685_s27  ;;  %p5691_p2 = scmp.lt.s32.totalorder %s5685_s27, %s5685_s27 }
   0x5   :  { %p5692_p3 = por %p5691_p2, %p5690_p1 }
   0x7   :  { %p5693_p4 = pnand %p5692_p3, %p5686_p0 }
   0x9   :  { %5696 = shalt.err (!%p5693_p4)
}
   0xa   :  { %s5700_s28 = smov 128   ;;  %s5701_s29 = smov 8  }
   0xb   :  { %54 = dma.hbm_to_vmem [thread:$0]  %s7464_s12, 8192, %s49_s26, [#allocation3], %s5700_s28, %s5700_s28, %s5701_s29  }
   0xc   :  { %5697 = dma.done.wait [#allocation3], 8192  }
   0xd   :  { %5698 = vsyncadd [#allocation3], 4294959104  ;;  %vm74_vm0 = vcmask 261120   ;;  %v73_v0 = vld [vmem:[%s7452_s0 + $0x78] sm:$0xff]  ;;  %v72_v1 = vld [vmem:[%s7452_s0 + $0x70] sm:$0xff]  ;;  %vm679_vm1 = vcmask 64512  }
   0xe   :  { %v71_v2 = vld [vmem:[%s7452_s0 + $0x68] sm:$0xff]  ;;  %v120_v3 = vsel %vm74_vm0, %v73_v0, 0.0  ;;  %v70_v5 = vld [vmem:[%s7452_s0 + $0x60] sm:$0xff]  ;;  %v117_v6 = vsel %vm74_vm0, %v72_v1, 0.0  ;;  %v69_v8 = vld [vmem:[%s7452_s0 + $0x58] sm:$0xff] }
   0xf   :  { %v114_v4 = vsel %vm74_vm0, %v71_v2, 0.0  ;;  %121 = vadd.xlane.f32.xlu0 %v120_v3  ;;  %v111_v7 = vsel %vm74_vm0, %v70_v5, 0.0  ;;  %v68_v9 = vld [vmem:[%s7452_s0 + $0x50] sm:$0xff]  ;;  %v108_v10 = vsel %vm74_vm0, %v69_v8, 0.0  ;;  %v5802_v12 = vld [vmem:[%s7452_s0 + $0x48] sm:$0xff]  ;;  %v5807_v13 = vld [vmem:[%s7452_s0 + $0x40] sm:$0xff] }
  0x10   :  { %115 = vadd.xlane.f32.xlu1 %v114_v4  ;;  %v105_v11 = vsel %vm74_vm0, %v68_v9, 0.0  ;;  %v102_v14 = vsel %vm74_vm0, %v5802_v12, 0.0  ;;  %v99_v15 = vsel %vm74_vm0, %v5807_v13, 0.0  ;;  %v5816_v16 = vld [vmem:[%s7452_s0 + $0x38] sm:$0xff]  ;;  %v5821_v17 = vld [vmem:[%s7452_s0 + $0x30] sm:$0xff]  ;;  %v5830_v20 = vld [vmem:[%s7452_s0 + $0x28] sm:$0xff] }
  0x11   :  { %v96_v18 = vsel %vm74_vm0, %v5816_v16, 0.0  ;;  %v93_v19 = vsel %vm74_vm0, %v5821_v17, 0.0  ;;  %v5835_v21 = vld [vmem:[%s7452_s0 + $0x20] sm:$0xff]  ;;  %v90_v22 = vsel %vm74_vm0, %v5830_v20, 0.0  ;;  %v5844_v24 = vld [vmem:[%s7452_s0 + $0x18] sm:$0xff]  ;;  %v5849_v25 = vld [vmem:[%s7452_s0 + $0x10] sm:$0xff] }
  0x12   :  { %v87_v23 = vsel %vm74_vm0, %v5835_v21, 0.0  ;;  %v84_v26 = vsel %vm74_vm0, %v5844_v24, 0.0  ;;  %v81_v27 = vsel %vm74_vm0, %v5849_v25, 0.0  ;;  %v5858_v28 = vld [vmem:[%s7452_s0 + $0x8] sm:$0xff]  ;;  %v5863_v29 = vld [vmem:[%s7452_s0] sm:$0xff] }
  0x13   :  { %118 = vadd.xlane.f32.xlu0 %v117_v6  ;;  %v78_v30 = vsel %vm74_vm0, %v5858_v28, 0.0  ;;  %v75_v31 = vsel %vm74_vm0, %v5863_v29, 0.0 }
  0x14   :  { %112 = vadd.xlane.f32.xlu1 %v111_v7 }
  0x17   :  { %109 = vadd.xlane.f32.xlu0 %v108_v10 }
  0x18   :  { %106 = vadd.xlane.f32.xlu1 %v105_v11 }
  0x1b   :  { %103 = vadd.xlane.f32.xlu0 %v102_v14 }
  0x1c   :  { %100 = vadd.xlane.f32.xlu1 %v99_v15 }
  0x1f   :  { %97 = vadd.xlane.f32.xlu0 %v96_v18 }
  0x20   :  { %94 = vadd.xlane.f32.xlu1 %v93_v19 }
  0x23   :  { %91 = vadd.xlane.f32.xlu0 %v90_v22 }
  0x24   :  { %88 = vadd.xlane.f32.xlu1 %v87_v23 }
  0x27   :  { %85 = vadd.xlane.f32.xlu0 %v84_v26 }
  0x28   :  { %82 = vadd.xlane.f32.xlu1 %v81_v27 }
  0x2b   :  { %79 = vadd.xlane.f32.xlu0 %v78_v30 }
  0x2c   :  { %76 = vadd.xlane.f32.xlu1 %v75_v31 }
  0x98   :  { %v122_v32 = vpop.xlane.xlu0 %121 }
  0x99   :  { %v116_v33 = vpop.xlane.xlu1 %115  ;;  %v139_v34 = vmul.f32 0.03125, %v122_v32 }
  0x9a   :  { %v137_v35 = vmul.f32 0.03125, %v116_v33 }
  0x9b   :  { %v5869_v36 = vsub.f32 %v73_v0, %v139_v34 }
  0x9c   :  { %v5871_v37 = vsub.f32 %v71_v2, %v137_v35  ;;  %v119_v38 = vpop.xlane.xlu0 %118 }
  0x9d   :  { %v113_v39 = vpop.xlane.xlu1 %112  ;;  %v138_v40 = vmul.f32 0.03125, %v119_v38  ;;  %v171_v42 = vmul.f32 %v5869_v36, %v5869_v36 }
  0x9e   :  { %v136_v41 = vmul.f32 0.03125, %v113_v39  ;;  %v169_v43 = vmul.f32 %v5871_v37, %v5871_v37 }
  0x9f   :  { %v5877_v44 = vsub.f32 %v72_v1, %v138_v40  ;;  %v217_v46 = vsel %vm74_vm0, %v171_v42, 0.0 }
  0xa0   :  { %v5879_v45 = vsub.f32 %v70_v5, %v136_v41  ;;  %v110_v47 = vpop.xlane.xlu0 %109  ;;  %218 = vadd.xlane.f32.xlu0 %v217_v46  ;;  %v211_v49 = vsel %vm74_vm0, %v169_v43, 0.0 }
  0xa1   :  { %v107_v48 = vpop.xlane.xlu1 %106  ;;  %v135_v50 = vmul.f32 0.03125, %v110_v47  ;;  %v170_v52 = vmul.f32 %v5877_v44, %v5877_v44 }
  0xa2   :  { %v134_v51 = vmul.f32 0.03125, %v107_v48  ;;  %v168_v53 = vmul.f32 %v5879_v45, %v5879_v45 }
  0xa3   :  { %v5887_v54 = vsub.f32 %v69_v8, %v135_v50  ;;  %v214_v56 = vsel %vm74_vm0, %v170_v52, 0.0 }
  0xa4   :  { %v5889_v55 = vsub.f32 %v68_v9, %v134_v51  ;;  %v104_v57 = vpop.xlane.xlu0 %103  ;;  %212 = vadd.xlane.f32.xlu0 %v211_v49  ;;  %215 = vadd.xlane.f32.xlu1 %v214_v56  ;;  %v208_v59 = vsel %vm74_vm0, %v168_v53, 0.0 }
  0xa5   :  { %v101_v58 = vpop.xlane.xlu1 %100  ;;  %v133_v60 = vmul.f32 0.03125, %v104_v57  ;;  %v167_v62 = vmul.f32 %v5887_v54, %v5887_v54 }
  0xa6   :  { %v132_v61 = vmul.f32 0.03125, %v101_v58  ;;  %v166_v63 = vmul.f32 %v5889_v55, %v5889_v55 }
  0xa7   :  { %v5898_v0 = vsub.f32 %v5802_v12, %v133_v60  ;;  %v205_v2 = vsel %vm74_vm0, %v167_v62, 0.0 }
  0xa8   :  { %v5901_v1 = vsub.f32 %v5807_v13, %v132_v61  ;;  %v98_v3 = vpop.xlane.xlu0 %97  ;;  %206 = vadd.xlane.f32.xlu0 %v205_v2  ;;  %209 = vadd.xlane.f32.xlu1 %v208_v59  ;;  %v202_v5 = vsel %vm74_vm0, %v166_v63, 0.0 }
  0xa9   :  { %v95_v4 = vpop.xlane.xlu1 %94  ;;  %v131_v6 = vmul.f32 0.03125, %v98_v3  ;;  %v165_v8 = vmul.f32 %v5898_v0, %v5898_v0 }
  0xaa   :  { %v130_v7 = vmul.f32 0.03125, %v95_v4  ;;  %v164_v9 = vmul.f32 %v5901_v1, %v5901_v1 }
  0xab   :  { %v5910_v10 = vsub.f32 %v5816_v16, %v131_v6  ;;  %v199_v12 = vsel %vm74_vm0, %v165_v8, 0.0 }
  0xac   :  { %v5913_v11 = vsub.f32 %v5821_v17, %v130_v7  ;;  %v92_v13 = vpop.xlane.xlu0 %91  ;;  %200 = vadd.xlane.f32.xlu0 %v199_v12  ;;  %203 = vadd.xlane.f32.xlu1 %v202_v5  ;;  %v196_v15 = vsel %vm74_vm0, %v164_v9, 0.0 }
  0xad   :  { %v89_v14 = vpop.xlane.xlu1 %88  ;;  %v129_v18 = vmul.f32 0.03125, %v92_v13  ;;  %v163_v22 = vmul.f32 %v5910_v10, %v5910_v10 }
  0xae   :  { %v128_v19 = vmul.f32 0.03125, %v89_v14  ;;  %v162_v16 = vmul.f32 %v5913_v11, %v5913_v11 }
  0xaf   :  { %v5922_v23 = vsub.f32 %v5830_v20, %v129_v18  ;;  %v193_v26 = vsel %vm74_vm0, %v163_v22, 0.0 }
  0xb0   :  { %v5925_v17 = vsub.f32 %v5835_v21, %v128_v19  ;;  %v86_v27 = vpop.xlane.xlu0 %85  ;;  %194 = vadd.xlane.f32.xlu0 %v193_v26  ;;  %197 = vadd.xlane.f32.xlu1 %v196_v15  ;;  %v190_v31 = vsel %vm74_vm0, %v162_v16, 0.0  ;;  %v5966_v26 = vld [vmem:[%s7453_s1] ss:$0 sm:$0xff] }
  0xb1   :  { %v83_v30 = vpop.xlane.xlu1 %82  ;;  %v127_v32 = vmul.f32 0.03125, %v86_v27  ;;  %v161_v34 = vmul.f32 %v5922_v23, %v5922_v23 }
  0xb2   :  { %v126_v33 = vmul.f32 0.03125, %v83_v30  ;;  %v160_v20 = vmul.f32 %v5925_v17, %v5925_v17  ;;  %v5972_v30 = vld [vmem:[%s7454_s2] ss:$0 sm:$0xff] }
  0xb3   :  { %v5934_v35 = vsub.f32 %v5844_v24, %v127_v32  ;;  %v187_v38 = vsel %vm74_vm0, %v161_v34, 0.0 }
  0xb4   :  { %v5937_v21 = vsub.f32 %v5849_v25, %v126_v33  ;;  %188 = vadd.xlane.f32.xlu0 %v187_v38  ;;  %v80_v39 = vpop.xlane.xlu0 %79  ;;  %191 = vadd.xlane.f32.xlu1 %v190_v31  ;;  %v184_v40 = vsel %vm74_vm0, %v160_v20, 0.0 }
  0xb5   :  { %v77_v41 = vpop.xlane.xlu1 %76  ;;  %v125_v42 = vmul.f32 0.03125, %v80_v39  ;;  %v159_v43 = vmul.f32 %v5934_v35, %v5934_v35 }
  0xb6   :  { %v124_v46 = vmul.f32 0.03125, %v77_v41  ;;  %v158_v24 = vmul.f32 %v5937_v21, %v5937_v21 }
  0xb7   :  { %v5946_v47 = vsub.f32 %v5858_v28, %v125_v42  ;;  %v181_v25 = vsel %vm74_vm0, %v159_v43, 0.0 }
  0xb8   :  { %v5950_v48 = vsub.f32 %v5863_v29, %v124_v46  ;;  %182 = vadd.xlane.f32.xlu0 %v181_v25  ;;  %185 = vadd.xlane.f32.xlu1 %v184_v40  ;;  %v178_v50 = vsel %vm74_vm0, %v158_v24, 0.0  ;;  %v330_v29 = vld [vmem:[%s7455_s3] sm:$0xff] }
  0xb9   :  { %v157_v49 = vmul.f32 %v5946_v47, %v5946_v47  ;;  %4885 = vmatprep.mubr.msk.f32.mxu0 %vm74_vm0, %v330_v29 }
  0xba   :  { %v156_v51 = vmul.f32 %v5950_v48, %v5950_v48 }
  0xbb   :  { %v175_v52 = vsel %vm74_vm0, %v157_v49, 0.0 }
  0xbc   :  { %176 = vadd.xlane.f32.xlu0 %v175_v52  ;;  %179 = vadd.xlane.f32.xlu1 %v178_v50  ;;  %v172_v28 = vsel %vm74_vm0, %v156_v51, 0.0 }
  0xc0   :  { %173 = vadd.xlane.f32.xlu1 %v172_v28 }
 0x129   :  { %v219_v53 = vpop.xlane.xlu0 %218 }
 0x12a   :  { %v235_v56 = vmul.f32 0.03125, %v219_v53 }
 0x12c   :  { %v251_v57 = vadd.f32 1e-05, %v235_v56 }
 0x12d   :  { %v213_v58 = vpop.xlane.xlu0 %212  ;;  %v216_v59 = vpop.xlane.xlu1 %215 }
 0x12e   :  { %5309 = vrsqrt.f32 %v251_v57  ;;  %v233_v60 = vmul.f32 0.03125, %v213_v58  ;;  %v234_v61 = vmul.f32 0.03125, %v216_v59 }
 0x130   :  { %v249_v62 = vadd.f32 1e-05, %v233_v60  ;;  %v250_v63 = vadd.f32 1e-05, %v234_v61 }
 0x131   :  { %v207_v2 = vpop.xlane.xlu0 %206  ;;  %v210_v3 = vpop.xlane.xlu1 %209 }
 0x132   :  { %5311 = vrsqrt.f32 %v249_v62  ;;  %v231_v4 = vmul.f32 0.03125, %v207_v2  ;;  %v232_v5 = vmul.f32 0.03125, %v210_v3 }
 0x133   :  { %5313 = vrsqrt.f32 %v250_v63 }
 0x134   :  { %v247_v6 = vadd.f32 1e-05, %v231_v4  ;;  %v248_v7 = vadd.f32 1e-05, %v232_v5 }
 0x135   :  { %v201_v8 = vpop.xlane.xlu0 %200  ;;  %v204_v9 = vpop.xlane.xlu1 %203 }
 0x136   :  { %5315 = vrsqrt.f32 %v247_v6  ;;  %v230_v12 = vmul.f32 0.03125, %v204_v9  ;;  %v229_v13 = vmul.f32 0.03125, %v201_v8 }
 0x137   :  { %5317 = vrsqrt.f32 %v248_v7 }
 0x138   :  { %v246_v14 = vadd.f32 1e-05, %v230_v12  ;;  %v245_v19 = vadd.f32 1e-05, %v229_v13 }
 0x139   :  { %v198_v15 = vpop.xlane.xlu1 %197  ;;  %v195_v22 = vpop.xlane.xlu0 %194 }
 0x13a   :  { %5319 = vrsqrt.f32 %v246_v14  ;;  %v228_v16 = vmul.f32 0.03125, %v198_v15  ;;  %v227_v31 = vmul.f32 0.03125, %v195_v22 }
 0x13b   :  { %v5310_v18 = vpop.eup %5309  ;;  %5321 = vrsqrt.f32 %v245_v19 }
 0x13c   :  { %v283_v27 = vmul.f32 %v5310_v18, %v5869_v36  ;;  %v244_v34 = vadd.f32 1e-05, %v228_v16  ;;  %v243_v36 = vadd.f32 1e-05, %v227_v31 }
 0x13d   :  { %v192_v38 = vpop.xlane.xlu1 %191  ;;  %v189_v43 = vpop.xlane.xlu0 %188 }
 0x13e   :  { %v306_v32 = vmul.f32 %v5966_v26, %v283_v27  ;;  %5323 = vrsqrt.f32 %v244_v34  ;;  %v226_v46 = vmul.f32 0.03125, %v192_v38 }
 0x13f   :  { %v5312_v33 = vpop.eup %5311  ;;  %5325 = vrsqrt.f32 %v243_v36 }
 0x140   :  { %v5314_v20 = vpop.eup %5313  ;;  %v329_v39 = vadd.f32 %v5972_v30, %v306_v32  ;;  %v281_v40 = vmul.f32 %v5312_v33, %v5871_v37  ;;  %v242_v51 = vadd.f32 1e-05, %v226_v46 }
 0x141   :  { %v282_v41 = vmul.f32 %v5314_v20, %v5877_v44  ;;  %v225_v44 = vmul.f32 0.03125, %v189_v43  ;;  %v186_v52 = vpop.xlane.xlu1 %185 }
 0x142   :  { %4853 = vmatprep.subr.msk.mxu0 %vm74_vm0, %v329_v39  ;;  %v304_v25 = vmul.f32 %v5966_v26, %v281_v40  ;;  %v224_v58 = vmul.f32 0.03125, %v186_v52  ;;  %5327 = vrsqrt.f32 %v242_v51 }
 0x143   :  { %v5316_v42 = vpop.eup %5315  ;;  %4854 = vmatpush3.xpose.msk.msra.mxu0 %vm74_vm0, %v329_v39  ;;  %v305_v24 = vmul.f32 %v5966_v26, %v282_v41  ;;  %v241_v57 = vadd.f32 1e-05, %v225_v44 }
 0x144   :  { %v5318_v49 = vpop.eup %5317  ;;  %v327_v28 = vadd.f32 %v5972_v30, %v304_v25  ;;  %v279_v53 = vmul.f32 %v5316_v42, %v5887_v54  ;;  %v240_v63 = vadd.f32 1e-05, %v224_v58  ;;  %v335_v58 = vld [vmem:[%s7455_s3 + $0x28] sm:$0xff] }
 0x145   :  { %v328_v50 = vadd.f32 %v5972_v30, %v305_v24  ;;  %v280_v37 = vmul.f32 %v5318_v49, %v5879_v45  ;;  %v183_v45 = vpop.xlane.xlu0 %182  ;;  %5329 = vrsqrt.f32 %v241_v57  ;;  %v180_v2 = vpop.xlane.xlu1 %179  ;;  %v334_v57 = vld [vmem:[%s7455_s3 + $0x20] sm:$0xff] }
 0x146   :  { %v302_v60 = vmul.f32 %v5966_v26, %v279_v53  ;;  %v223_v54 = vmul.f32 0.03125, %v183_v45  ;;  %v222_v7 = vmul.f32 0.03125, %v180_v2  ;;  %5331 = vrsqrt.f32 %v240_v63  ;;  %v336_v45 = vld [vmem:[%s7455_s3 + $0x30] sm:$0xff] }
 0x147   :  { %4855 = vmatprep.subr.msk.mxu0 %vm74_vm0, %v328_v50  ;;  %v303_v29 = vmul.f32 %v5966_v26, %v280_v37  ;;  %v5320_v56 = vpop.eup %5319 }
 0x148   :  { %4856 = vmatpush3.xpose.msk.msra.mxu0 %vm74_vm0, %v328_v50  ;;  %v278_v61 = vmul.f32 %v5320_v56, %v5889_v55  ;;  %v5322_v62 = vpop.eup %5321  ;;  %v325_v3 = vadd.f32 %v5972_v30, %v302_v60  ;;  %v239_v55 = vadd.f32 1e-05, %v223_v54  ;;  %v238_v15 = vadd.f32 1e-05, %v222_v7 }
 0x149   :  { %4857 = vmatprep.subr.msk.mxu0 %vm74_vm0, %v327_v28  ;;  %v326_v59 = vadd.f32 %v5972_v30, %v303_v29  ;;  %v277_v5 = vmul.f32 %v5322_v62, %v5898_v0  ;;  %v177_v9 = vpop.xlane.xlu0 %176  ;;  %v174_v18 = vpop.xlane.xlu1 %173 }
 0x14a   :  { %v301_v4 = vmul.f32 %v5966_v26, %v278_v61  ;;  %5333 = vrsqrt.f32 %v239_v55  ;;  %v221_v0 = vmul.f32 0.03125, %v177_v9  ;;  %v220_v31 = vmul.f32 0.03125, %v174_v18  ;;  %v341_v55 = vld [vmem:[%s7455_s3 + $0x58] sm:$0xff] }
 0x14b   :  { %v5324_v6 = vpop.eup %5323  ;;  %v300_v13 = vmul.f32 %v5966_v26, %v277_v5  ;;  %5335 = vrsqrt.f32 %v238_v15 }
 0x14c   :  { %4858 = vmatpush3.xpose.msk.msra.mxu0 %vm74_vm0, %v327_v28  ;;  %v5326_v8 = vpop.eup %5325  ;;  %v324_v12 = vadd.f32 %v5972_v30, %v301_v4  ;;  %v276_v14 = vmul.f32 %v5324_v6, %v5901_v1  ;;  %v237_v1 = vadd.f32 1e-05, %v221_v0  ;;  %v339_v4 = vld [vmem:[%s7455_s3 + $0x48] sm:$0xff]  ;;  %v340_v6 = vld [vmem:[%s7455_s3 + $0x50] sm:$0xff] }
 0x14d   :  { %4859 = vmatprep.subr.msk.mxu0 %vm74_vm0, %v326_v59  ;;  %v323_v19 = vadd.f32 %v5972_v30, %v300_v13  ;;  %v275_v16 = vmul.f32 %v5326_v8, %v5910_v10  ;;  %v236_v10 = vadd.f32 1e-05, %v220_v31 }
 0x14e   :  { %v299_v22 = vmul.f32 %v5966_v26, %v276_v14  ;;  %5337 = vrsqrt.f32 %v237_v1 }
 0x14f   :  { %v5328_v27 = vpop.eup %5327  ;;  %v298_v34 = vmul.f32 %v5966_v26, %v275_v16  ;;  %5339 = vrsqrt.f32 %v236_v10 }
 0x150   :  { %4860 = vmatpush3.xpose.msk.msra.mxu0 %vm74_vm0, %v326_v59  ;;  %v322_v33 = vadd.f32 %v5972_v30, %v299_v22  ;;  %v274_v20 = vmul.f32 %v5328_v27, %v5913_v11  ;;  %v337_v59 = vld [vmem:[%s7455_s3 + $0x38] sm:$0xff] }
 0x151   :  { %4861 = vmatprep.subr.msk.mxu0 %vm74_vm0, %v325_v3  ;;  %v321_v38 = vadd.f32 %v5972_v30, %v298_v34 }
 0x152   :  { %v5330_v32 = vpop.eup %5329  ;;  %v297_v39 = vmul.f32 %v5966_v26, %v274_v20 }
 0x153   :  { %v273_v40 = vmul.f32 %v5330_v32, %v5922_v23  ;;  %v5332_v41 = vpop.eup %5331 }
 0x154   :  { %4862 = vmatpush3.xpose.msk.msra.mxu0 %vm74_vm0, %v325_v3  ;;  %v320_v11 = vadd.f32 %v5972_v30, %v297_v39  ;;  %v272_v43 = vmul.f32 %v5332_v41, %v5925_v17  ;;  %v338_v3 = vld [vmem:[%s7455_s3 + $0x40] sm:$0xff] }
 0x155   :  { %4863 = vmatprep.subr.msk.mxu0 %vm74_vm0, %v324_v12  ;;  %v296_v42 = vmul.f32 %v5966_v26, %v273_v40 }
 0x156   :  { %v295_v23 = vmul.f32 %v5966_v26, %v272_v43 }
 0x157   :  { %v5334_v36 = vpop.eup %5333  ;;  %v319_v46 = vadd.f32 %v5972_v30, %v296_v42 }
 0x158   :  { %4864 = vmatpush3.xpose.msk.msra.mxu0 %vm74_vm0, %v324_v12  ;;  %v271_v24 = vmul.f32 %v5334_v36, %v5934_v35  ;;  %v5336_v25 = vpop.eup %5335  ;;  %v318_v50 = vadd.f32 %v5972_v30, %v295_v23 }
 0x159   :  { %4865 = vmatprep.subr.msk.mxu0 %vm74_vm0, %v323_v19  ;;  %v270_v37 = vmul.f32 %v5336_v25, %v5937_v21 }
 0x15a   :  { %v294_v17 = vmul.f32 %v5966_v26, %v271_v24 }
 0x15b   :  { %v5338_v49 = vpop.eup %5337  ;;  %v293_v35 = vmul.f32 %v5966_v26, %v270_v37 }
 0x15c   :  { %4866 = vmatpush3.xpose.msk.msra.mxu0 %vm74_vm0, %v323_v19  ;;  %v317_v44 = vadd.f32 %v5972_v30, %v294_v17  ;;  %v269_v51 = vmul.f32 %v5338_v49, %v5946_v47  ;;  %v5340_v52 = vpop.eup %5339 }
 0x15d   :  { %4867 = vmatprep.subr.msk.mxu0 %vm74_vm0, %v322_v33  ;;  %v316_v28 = vadd.f32 %v5972_v30, %v293_v35  ;;  %v268_v21 = vmul.f32 %v5340_v52, %v5950_v48  ;;  %v331_v48 = vld [vmem:[%s7455_s3 + $0x8] sm:$0xff] }
 0x15e   :  { %v292_v29 = vmul.f32 %v5966_v26, %v269_v51 }
 0x15f   :  { %v291_v56 = vmul.f32 %v5966_v26, %v268_v21  ;;  %v332_v26 = vld [vmem:[%s7455_s3 + $0x10] sm:$0xff] }
 0x160   :  { %4868 = vmatpush3.xpose.msk.msra.mxu0 %vm74_vm0, %v322_v33  ;;  %v315_v53 = vadd.f32 %v5972_v30, %v292_v29 }
 0x161   :  { %4869 = vmatprep.subr.msk.mxu0 %vm74_vm0, %v321_v38  ;;  %v314_v47 = vadd.f32 %v5972_v30, %v291_v56  ;;  %v333_v30 = vld [vmem:[%s7455_s3 + $0x18] sm:$0xff] }
 0x164   :  { %4870 = vmatpush3.xpose.msk.msra.mxu0 %vm74_vm0, %v321_v38 }
 0x165   :  { %4871 = vmatprep.subr.msk.mxu0 %vm74_vm0, %v320_v11 }
 0x168   :  { %4872 = vmatpush3.xpose.msk.msra.mxu0 %vm74_vm0, %v320_v11 }
 0x169   :  { %4873 = vmatprep.subr.msk.mxu0 %vm74_vm0, %v319_v46 }
 0x16c   :  { %4874 = vmatpush3.xpose.msk.msra.mxu0 %vm74_vm0, %v319_v46 }
 0x16d   :  { %4875 = vmatprep.subr.msk.mxu0 %vm74_vm0, %v318_v50 }
 0x170   :  { %4876 = vmatpush3.xpose.msk.msra.mxu0 %vm74_vm0, %v318_v50 }
 0x171   :  { %4877 = vmatprep.subr.msk.mxu0 %vm74_vm0, %v317_v44 }
 0x174   :  { %4878 = vmatpush3.xpose.msk.msra.mxu0 %vm74_vm0, %v317_v44 }
 0x175   :  { %4879 = vmatprep.subr.msk.mxu0 %vm74_vm0, %v316_v28 }
 0x178   :  { %4880 = vmatpush3.xpose.msk.msra.mxu0 %vm74_vm0, %v316_v28 }
 0x179   :  { %4881 = vmatprep.subr.msk.mxu0 %vm74_vm0, %v315_v53 }
 0x17c   :  { %4882 = vmatpush3.xpose.msk.msra.mxu0 %vm74_vm0, %v315_v53 }
 0x17d   :  { %4883 = vmatprep.subr.msk.mxu0 %vm74_vm0, %v314_v47 }
 0x180   :  { %4884 = vmatpush3.xpose.msk.msra.mxu0 %vm74_vm0, %v314_v47 }
 0x183   :  { %4886 = vmatmul.mubr.msk.f32.vlgmr.msra.gmra.mxu0 %vm74_vm0, %v331_v48 }
 0x184   :  { %4888 = vmatprep.mubr.msk.f32.mxu0 %vm74_vm0, %v332_v26 }
 0x187   :  { %4889 = vmatmul.mubr.msk.f32.gmra.mxu0 %vm74_vm0, %v333_v30 }
 0x188   :  { %4891 = vmatprep.mubr.msk.f32.mxu0 %vm74_vm0, %v334_v57 }
 0x18b   :  { %4892 = vmatmul.mubr.msk.f32.gmra.mxu0 %vm74_vm0, %v335_v58 }
 0x18c   :  { %4894 = vmatprep.mubr.msk.f32.mxu0 %vm74_vm0, %v336_v45 }
 0x18f   :  { %4895 = vmatmul.mubr.msk.f32.gmra.mxu0 %vm74_vm0, %v337_v59 }
 0x190   :  { %4897 = vmatprep.mubr.msk.f32.mxu0 %vm74_vm0, %v338_v3 }
 0x193   :  { %4898 = vmatmul.mubr.msk.f32.gmra.mxu0 %vm74_vm0, %v339_v4 }
 0x194   :  { %4900 = vmatprep.mubr.msk.f32.mxu0 %vm74_vm0, %v340_v6 }
 0x197   :  { %4901 = vmatmul.mubr.msk.f32.gmra.mxu0 %vm74_vm0, %v341_v55 }
 0x243   :  { %v4887_v60 = vpop.f32.mrf.mxu0 }
 0x244   :  { %583 = vxpose.xlu1.b32.start.end [1/1] (short) %v4887_v60, 128 }
 0x245   :  { %v492_v61 = vpop.f32.mrf.mxu0 }
 0x246   :  { %551 = vxpose.xlu0.b32.start.end [1/1] (short) %v492_v61, 128 }
 0x247   :  { %v4890_v62 = vpop.f32.mrf.mxu0 }
 0x249   :  { %v502_v54 = vpop.f32.mrf.mxu0 }
 0x24b   :  { %v4893_v63 = vpop.f32.mrf.mxu0 }
 0x24d   :  { %v512_v2 = vpop.f32.mrf.mxu0 }
 0x24e   :  { %4903 = vmatprep.subr.mxu1 %v512_v2 }
 0x24f   :  { %4904 = vmatpush3.msra.mxu1 %v512_v2  ;;  %v6089_v5 = vpop.f32.mrf.mxu0 }
 0x250   :  { %4929 = vmatprep.subr.mxu1 %v4893_v63  ;;  %4981 = vmatprep.subr.mxu0 %v6089_v5 }
 0x251   :  { %4982 = vmatpush3.msra.mxu0 %v6089_v5  ;;  %v522_v13 = vpop.f32.mrf.mxu0 }
 0x253   :  { %v4899_v6 = vpop.f32.mrf.mxu0 }
 0x254   :  { %5033 = vmatprep.subr.mxu0 %v4899_v6 }
 0x281   :  { %647 = vxpose.xlu1.b32.start.end [1/1] (short) %v4890_v62, 128 }
 0x283   :  { %615 = vxpose.xlu0.b32.start.end [1/1] (short) %v502_v54, 128 }
 0x2c0   :  { %v599_v7 = vpop.trf.xlu1 }
 0x2c2   :  { %v567_v8 = vpop.trf.xlu0 }
 0x2c3   :  { %4905 = vmatprep.mubr.msk.f32.mxu1 %vm679_vm1, %v567_v8  ;;  %v532_v8 = vpop.f32.mrf.mxu0 }
 0x2c4   :  { %v600_v9 = vpop.trf.xlu1 }
 0x2c6   :  { %v568_v12 = vpop.trf.xlu0 }
 0x2c7   :  { %4906 = vmatmul.mubr.msk.f32.vlgmr.msra.gmra.mxu1 %vm679_vm1, %v568_v12 }
 0x2c8   :  { %v601_v14 = vpop.trf.xlu1  ;;  %4930 = vmatpush3.msra.mxu1 %v4893_v63 }
 0x2c9   :  { %4955 = vmatprep.subr.mxu1 %v522_v13 }
 0x2ca   :  { %v569_v0 = vpop.trf.xlu0 }
 0x2cb   :  { %4908 = vmatprep.mubr.msk.f32.mxu1 %vm679_vm1, %v569_v0  ;;  %v1517_v0 = vld [vmem:[#allocation2 + $0x8] sm:$0xff] }
 0x2cc   :  { %v602_v15 = vpop.trf.xlu1 }
 0x2ce   :  { %v570_v18 = vpop.trf.xlu0 }
 0x2cf   :  { %4909 = vmatmul.mubr.msk.f32.gmra.mxu1 %vm679_vm1, %v570_v18 }
 0x2d0   :  { %v603_v19 = vpop.trf.xlu1 }
 0x2d2   :  { %v571_v22 = vpop.trf.xlu0 }
 0x2d3   :  { %4911 = vmatprep.mubr.msk.f32.mxu1 %vm679_vm1, %v571_v22 }
 0x2d4   :  { %v604_v16 = vpop.trf.xlu1 }
 0x2d6   :  { %v572_v27 = vpop.trf.xlu0 }
 0x2d7   :  { %4912 = vmatmul.mubr.msk.f32.gmra.mxu1 %vm679_vm1, %v572_v27 }
 0x2d8   :  { %v605_v1 = vpop.trf.xlu1 }
 0x2da   :  { %v573_v31 = vpop.trf.xlu0 }
 0x2db   :  { %4914 = vmatprep.mubr.msk.f32.mxu1 %vm679_vm1, %v573_v31 }
 0x2dc   :  { %v606_v32 = vpop.trf.xlu1 }
 0x2de   :  { %v574_v33 = vpop.trf.xlu0 }
 0x2df   :  { %4915 = vmatmul.mubr.msk.f32.gmra.mxu1 %vm679_vm1, %v574_v33 }
 0x2e0   :  { %v607_v34 = vpop.trf.xlu1 }
 0x2e2   :  { %v575_v20 = vpop.trf.xlu0 }
 0x2e3   :  { %4917 = vmatprep.mubr.msk.f32.mxu1 %vm679_vm1, %v575_v20 }
 0x2e4   :  { %v608_v10 = vpop.trf.xlu1 }
 0x2e6   :  { %v576_v38 = vpop.trf.xlu0 }
 0x2e7   :  { %4918 = vmatmul.mubr.msk.f32.gmra.mxu1 %vm679_vm1, %v576_v38 }
 0x2e8   :  { %v609_v39 = vpop.trf.xlu1 }
 0x2ea   :  { %v577_v40 = vpop.trf.xlu0 }
 0x2eb   :  { %4920 = vmatprep.mubr.msk.f32.mxu1 %vm679_vm1, %v577_v40 }
 0x2ec   :  { %v610_v41 = vpop.trf.xlu1 }
 0x2ee   :  { %v578_v36 = vpop.trf.xlu0 }
 0x2ef   :  { %4921 = vmatmul.mubr.msk.f32.gmra.mxu1 %vm679_vm1, %v578_v36 }
 0x2f0   :  { %v611_v11 = vpop.trf.xlu1 }
 0x2f2   :  { %v579_v42 = vpop.trf.xlu0 }
 0x2f3   :  { %4923 = vmatprep.mubr.msk.f32.mxu1 %vm679_vm1, %v579_v42 }
 0x2f4   :  { %v612_v43 = vpop.trf.xlu1 }
 0x2f6   :  { %v580_v46 = vpop.trf.xlu0 }
 0x2f7   :  { %4924 = vmatmul.mubr.msk.f32.gmra.mxu1 %vm679_vm1, %v580_v46 }
 0x2f8   :  { %v613_v23 = vpop.trf.xlu1 }
 0x2fa   :  { %v581_v24 = vpop.trf.xlu0 }
 0x2fb   :  { %4926 = vmatprep.mubr.msk.f32.mxu1 %vm679_vm1, %v581_v24  ;;  %v1565_v24 = vld [vmem:[#allocation2 + $0x188] sm:$0xff] }
 0x2fc   :  { %v614_v25 = vpop.trf.xlu1 }
 0x2fe   :  { %v582_v49 = vpop.trf.xlu0 }
 0x2ff   :  { %4927 = vmatmul.mubr.msk.f32.gmra.mxu1 %vm679_vm1, %v582_v49 }
 0x300   :  { %v663_v50 = vpop.trf.xlu1  ;;  %4931 = vmatprep.mubr.msk.f32.mxu1 %vm679_vm1, %v599_v7 }
 0x301   :  { %4983 = vmatprep.mubr.msk.f32.mxu0 %vm679_vm1, %v663_v50 }
 0x302   :  { %v631_v17 = vpop.trf.xlu0 }
 0x303   :  { %4932 = vmatmul.mubr.msk.f32.vlgmr.msra.gmra.mxu1 %vm679_vm1, %v600_v9  ;;  %v6164_v9 = vpop.f32.mrf.mxu0 }
 0x304   :  { %4956 = vmatpush3.msra.mxu1 %v522_v13  ;;  %v664_v37 = vpop.trf.xlu1  ;;  %4934 = vmatprep.mubr.msk.f32.mxu1 %vm679_vm1, %v601_v14  ;;  %7499 = vst [vmem:[#allocation5_spill] sm:$0xff] %v6164_v9 }
 0x305   :  { %5303 = vmatprep.subr.mxu1 %v6089_v5  ;;  %4984 = vmatmul.mubr.msk.f32.vlgmr.msra.gmra.mxu0 %vm679_vm1, %v664_v37  ;;  %v6169_v13 = vpop.f32.mrf.mxu0 }
 0x306   :  { %v632_v44 = vpop.trf.xlu0  ;;  %5034 = vmatpush3.xpose.msra.mxu0 %v4899_v6  ;;  %7500 = vst [vmem:[#allocation6_spill] sm:$0xff] %v6169_v13 }
 0x307   :  { %4935 = vmatmul.mubr.msk.f32.gmra.mxu1 %vm679_vm1, %v602_v15  ;;  %5085 = vmatprep.subr.mxu0 %v6164_v9 }
 0x308   :  { %v665_v35 = vpop.trf.xlu1  ;;  %4937 = vmatprep.mubr.msk.f32.mxu1 %vm679_vm1, %v603_v19  ;;  %v1516_v19 = vld [vmem:[#allocation2] sm:$0xff] }
 0x309   :  { %4986 = vmatprep.mubr.msk.f32.mxu0 %vm679_vm1, %v665_v35 }
 0x30a   :  { %v633_v51 = vpop.trf.xlu0 }
 0x30b   :  { %4938 = vmatmul.mubr.msk.f32.gmra.mxu1 %vm679_vm1, %v604_v16 }
 0x30c   :  { %v666_v52 = vpop.trf.xlu1  ;;  %4940 = vmatprep.mubr.msk.f32.mxu1 %vm679_vm1, %v605_v1 }
 0x30d   :  { %4987 = vmatmul.mubr.msk.f32.gmra.mxu0 %vm679_vm1, %v666_v52 }
 0x30e   :  { %v634_v28 = vpop.trf.xlu0 }
 0x30f   :  { %4941 = vmatmul.mubr.msk.f32.gmra.mxu1 %vm679_vm1, %v606_v32 }
 0x310   :  { %v667_v29 = vpop.trf.xlu1  ;;  %4943 = vmatprep.mubr.msk.f32.mxu1 %vm679_vm1, %v607_v34 }
 0x311   :  { %4989 = vmatprep.mubr.msk.f32.mxu0 %vm679_vm1, %v667_v29 }
 0x312   :  { %v635_v21 = vpop.trf.xlu0 }
 0x313   :  { %4944 = vmatmul.mubr.msk.f32.gmra.mxu1 %vm679_vm1, %v608_v10 }
 0x314   :  { %v668_v53 = vpop.trf.xlu1  ;;  %4946 = vmatprep.mubr.msk.f32.mxu1 %vm679_vm1, %v609_v39 }
 0x315   :  { %4990 = vmatmul.mubr.msk.f32.gmra.mxu0 %vm679_vm1, %v668_v53 }
 0x316   :  { %v636_v56 = vpop.trf.xlu0 }
 0x317   :  { %4947 = vmatmul.mubr.msk.f32.gmra.mxu1 %vm679_vm1, %v610_v41 }
 0x318   :  { %v669_v47 = vpop.trf.xlu1  ;;  %4949 = vmatprep.mubr.msk.f32.mxu1 %vm679_vm1, %v611_v11 }
 0x319   :  { %4992 = vmatprep.mubr.msk.f32.mxu0 %vm679_vm1, %v669_v47 }
 0x31a   :  { %v637_v48 = vpop.trf.xlu0 }
 0x31b   :  { %4950 = vmatmul.mubr.msk.f32.gmra.mxu1 %vm679_vm1, %v612_v43 }
 0x31c   :  { %v670_v26 = vpop.trf.xlu1  ;;  %4952 = vmatprep.mubr.msk.f32.mxu1 %vm679_vm1, %v613_v23 }
 0x31d   :  { %4993 = vmatmul.mubr.msk.f32.gmra.mxu0 %vm679_vm1, %v670_v26 }
 0x31e   :  { %v638_v30 = vpop.trf.xlu0 }
 0x31f   :  { %4953 = vmatmul.mubr.msk.f32.gmra.mxu1 %vm679_vm1, %v614_v25 }
 0x320   :  { %v671_v57 = vpop.trf.xlu1  ;;  %4957 = vmatprep.mubr.msk.f32.mxu1 %vm679_vm1, %v631_v17  ;;  %v1564_v17 = vld [vmem:[#allocation2 + $0x180] sm:$0xff] }
 0x321   :  { %4995 = vmatprep.mubr.msk.f32.mxu0 %vm679_vm1, %v671_v57 }
 0x322   :  { %v639_v58 = vpop.trf.xlu0 }
 0x323   :  { %4958 = vmatmul.mubr.msk.f32.vlgmr.msra.gmra.mxu1 %vm679_vm1, %v632_v44 }
 0x324   :  { %5304 = vmatpush3.msra.mxu1 %v6089_v5  ;;  %v672_v45 = vpop.trf.xlu1  ;;  %4960 = vmatprep.mubr.msk.f32.mxu1 %vm679_vm1, %v633_v51 }
 0x325   :  { %4996 = vmatmul.mubr.msk.f32.gmra.mxu0 %vm679_vm1, %v672_v45  ;;  %5007 = vmatprep.subr.mxu1 %v532_v8 }
 0x326   :  { %v640_v59 = vpop.trf.xlu0 }
 0x327   :  { %4961 = vmatmul.mubr.msk.f32.gmra.mxu1 %vm679_vm1, %v634_v28  ;;  %v1519_v28 = vld [vmem:[#allocation2 + $0x18] sm:$0xff] }
 0x328   :  { %v673_v60 = vpop.trf.xlu1  ;;  %4963 = vmatprep.mubr.msk.f32.mxu1 %vm679_vm1, %v635_v21 }
 0x329   :  { %4998 = vmatprep.mubr.msk.f32.mxu0 %vm679_vm1, %v673_v60 }
 0x32a   :  { %v641_v61 = vpop.trf.xlu0 }
 0x32b   :  { %4964 = vmatmul.mubr.msk.f32.gmra.mxu1 %vm679_vm1, %v636_v56  ;;  %v1567_v56 = vld [vmem:[#allocation2 + $0x198] sm:$0xff] }
 0x32c   :  { %v674_v62 = vpop.trf.xlu1  ;;  %4966 = vmatprep.mubr.msk.f32.mxu1 %vm679_vm1, %v637_v48 }
 0x32d   :  { %4999 = vmatmul.mubr.msk.f32.gmra.mxu0 %vm679_vm1, %v674_v62  ;;  %v1566_v62 = vld [vmem:[#allocation2 + $0x190] sm:$0xff] }
 0x32e   :  { %v642_v54 = vpop.trf.xlu0 }
 0x32f   :  { %4967 = vmatmul.mubr.msk.f32.gmra.mxu1 %vm679_vm1, %v638_v30  ;;  %v1518_v30 = vld [vmem:[#allocation2 + $0x10] sm:$0xff] }
 0x330   :  { %4969 = vmatprep.mubr.msk.f32.mxu1 %vm679_vm1, %v639_v58  ;;  %v675_v63 = vpop.trf.xlu1 }
 0x332   :  { %v643_v2 = vpop.trf.xlu0 }
 0x333   :  { %4970 = vmatmul.mubr.msk.f32.gmra.mxu1 %vm679_vm1, %v640_v59 }
 0x334   :  { %4972 = vmatprep.mubr.msk.f32.mxu1 %vm679_vm1, %v641_v61  ;;  %v676_v4 = vpop.trf.xlu1 }
 0x336   :  { %v644_v3 = vpop.trf.xlu0 }
 0x337   :  { %4973 = vmatmul.mubr.msk.f32.gmra.mxu1 %vm679_vm1, %v642_v54 }
 0x338   :  { %4975 = vmatprep.mubr.msk.f32.mxu1 %vm679_vm1, %v643_v2  ;;  %v677_v55 = vpop.trf.xlu1 }
 0x33a   :  { %v645_v5 = vpop.trf.xlu0 }
 0x33b   :  { %4976 = vmatmul.mubr.msk.f32.gmra.mxu1 %vm679_vm1, %v644_v3  ;;  %v1569_v3 = vld [vmem:[#allocation2 + $0x1a8] sm:$0xff] }
 0x33c   :  { %4978 = vmatprep.mubr.msk.f32.mxu1 %vm679_vm1, %v645_v5  ;;  %v678_v12 = vpop.trf.xlu1 }
 0x33e   :  { %v646_v7 = vpop.trf.xlu0 }
 0x33f   :  { %4979 = vmatmul.mubr.msk.f32.gmra.mxu1 %vm679_vm1, %v646_v7 }
 0x340   :  { %5001 = vmatprep.mubr.msk.f32.mxu1 %vm679_vm1, %v675_v63 }
 0x343   :  { %5002 = vmatmul.mubr.msk.f32.vlgmr.msra.gmra.mxu1 %vm679_vm1, %v676_v4 }
 0x344   :  { %5004 = vmatprep.mubr.msk.f32.mxu1 %vm679_vm1, %v677_v55  ;;  %5008 = vmatpush3.xpose.msra.mxu1 %v532_v8  ;;  %v1521_v55 = vld [vmem:[#allocation2 + $0x28] sm:$0xff] }
 0x345   :  { %5059 = vmatprep.subr.mxu1 %v6169_v13 }
 0x347   :  { %5005 = vmatmul.mubr.msk.f32.gmra.mxu1 %vm679_vm1, %v678_v12 }
 0x387   :  { %v4907_v14 = vpop.f32.mrf.mxu1 }
 0x388   :  { %v1453_v15 = vmul.f32 0.35355338, %v4907_v14 }
 0x389   :  { %v794_v18 = vpop.f32.mrf.mxu1 }
 0x38a   :  { %v1452_v22 = vmul.f32 0.35355338, %v794_v18  ;;  %v6173_v16 = vadd.f32 %v1517_v0, %v1453_v15  ;;  %v1520_v15 = vld [vmem:[#allocation2 + $0x20] sm:$0xff] }
 0x38c   :  { %v6175_v27 = vadd.f32 %v1516_v19, %v1452_v22  ;;  %1646 = vmax.xlane.f32.xlu0 %v6173_v16 }
 0x38f   :  { %v4910_v1 = vpop.f32.mrf.mxu1 }
 0x390   :  { %1644 = vmax.xlane.f32.xlu0 %v6175_v27  ;;  %v1455_v51 = vmul.f32 0.35355338, %v4910_v1  ;;  %v1571_v1 = vld [vmem:[#allocation2 + $0x1b8] sm:$0xff] }
 0x391   :  { %v804_v31 = vpop.f32.mrf.mxu1 }
 0x392   :  { %v6217_v47 = vadd.f32 %v1519_v28, %v1455_v51  ;;  %v1454_v48 = vmul.f32 0.35355338, %v804_v31 }
 0x394   :  { %v6226_v60 = vadd.f32 %v1518_v30, %v1454_v48 }
 0x397   :  { %v4913_v32 = vpop.f32.mrf.mxu1 }
 0x398   :  { %v1457_v4 = vmul.f32 0.35355338, %v4913_v32 }
 0x399   :  { %v814_v33 = vpop.f32.mrf.mxu1 }
 0x39a   :  { %v6243_v14 = vadd.f32 %v1521_v55, %v1457_v4  ;;  %v1456_v0 = vmul.f32 0.35355338, %v814_v33  ;;  %v1575_v55 = vld [vmem:[#allocation2 + $0x1d8] sm:$0xff] }
 0x39c   :  { %v6249_v31 = vadd.f32 %v1520_v15, %v1456_v0 }
 0x39f   :  { %v6179_v34 = vpop.f32.mrf.mxu1 }
 0x3a1   :  { %v6181_v20 = vpop.f32.mrf.mxu1 }
 0x3a7   :  { %v6183_v10 = vpop.f32.mrf.mxu1 }
 0x3a8   :  { %v1461_v0 = vmul.f32 0.35355338, %v6183_v10  ;;  %v1524_v10 = vld [vmem:[#allocation2 + $0x40] sm:$0xff] }
 0x3a9   :  { %v6185_v38 = vpop.f32.mrf.mxu1 }
 0x3af   :  { %v6187_v39 = vpop.f32.mrf.mxu1 }
 0x3b1   :  { %v6189_v40 = vpop.f32.mrf.mxu1 }
 0x3b7   :  { %v6191_v41 = vpop.f32.mrf.mxu1 }
 0x3b9   :  { %v6193_v36 = vpop.f32.mrf.mxu1 }
 0x3ba   :  { %v1464_v9 = vmul.f32 0.35355338, %v6193_v36 }
 0x3bf   :  { %v6195_v11 = vpop.f32.mrf.mxu1 }
 0x3c0   :  { %v1467_v13 = vmul.f32 0.35355338, %v6195_v11 }
 0x3c1   :  { %v6197_v42 = vpop.f32.mrf.mxu1 }
 0x3c3   :  { %v6199_v43 = vpop.f32.mrf.mxu1 }
 0x3c5   :  { %v6201_v46 = vpop.f32.mrf.mxu1  ;;  %v4985_v23 = vpop.f32.mrf.mxu0 }
 0x3c6   :  { %v1501_v25 = vmul.f32 0.35355338, %v4985_v23 }
 0x3c7   :  { %v6203_v49 = vpop.f32.mrf.mxu1  ;;  %v1373_v50 = vpop.f32.mrf.mxu0 }
 0x3c8   :  { %v1500_v37 = vmul.f32 0.35355338, %v1373_v50  ;;  %v6205_v44 = vadd.f32 %v1565_v24, %v1501_v25  ;;  %v1568_v24 = vld [vmem:[#allocation2 + $0x1a0] sm:$0xff]  ;;  %v1459_v50 = vmul.f32 0.35355338, %v6179_v34 }
 0x3c9   :  { %v6207_v35 = vpop.f32.mrf.mxu1 }
 0x3ca   :  { %v6209_v52 = vadd.f32 %v1564_v17, %v1500_v37  ;;  %1742 = vmax.xlane.f32.xlu1 %v6205_v44  ;;  %v1523_v37 = vld [vmem:[#allocation2 + $0x38] sm:$0xff] }
 0x3cb   :  { %v6212_v29 = vpop.f32.mrf.mxu1  ;;  %v6263_v48 = vadd.f32 %v1523_v37, %v1459_v50 }
 0x3cc   :  { %1740 = vmax.xlane.f32.xlu0 %v6209_v52 }
 0x3cd   :  { %v6215_v21 = vpop.f32.mrf.mxu1  ;;  %v4988_v53 = vpop.f32.mrf.mxu0 }
 0x3ce   :  { %v1503_v26 = vmul.f32 0.35355338, %v4988_v53 }
 0x3cf   :  { %v6219_v57 = vpop.f32.mrf.mxu1  ;;  %v1383_v58 = vpop.f32.mrf.mxu0 }
 0x3d0   :  { %v6221_v45 = vadd.f32 %v1567_v56, %v1503_v26  ;;  %1650 = vmax.xlane.f32.xlu0 %v6217_v47  ;;  %v1502_v61 = vmul.f32 0.35355338, %v1383_v58  ;;  %v1573_v56 = vld [vmem:[#allocation2 + $0x1c8] sm:$0xff]  ;;  %v1458_v26 = vmul.f32 0.35355338, %v6181_v20  ;;  %v1522_v58 = vld [vmem:[#allocation2 + $0x30] sm:$0xff] }
 0x3d1   :  { %v6224_v59 = vpop.f32.mrf.mxu1 }
 0x3d2   :  { %1746 = vmax.xlane.f32.xlu1 %v6221_v45  ;;  %v6234_v5 = vadd.f32 %v1566_v62, %v1502_v61  ;;  %v6271_v62 = vadd.f32 %v1522_v58, %v1458_v26 }
 0x3d3   :  { %v6229_v54 = vpop.f32.mrf.mxu1 }
 0x3d4   :  { %1648 = vmax.xlane.f32.xlu0 %v6226_v60  ;;  %v1477_v36 = vmul.f32 0.35355338, %v6229_v54 }
 0x3d5   :  { %v6232_v63 = vpop.f32.mrf.mxu1  ;;  %v4991_v2 = vpop.f32.mrf.mxu0 }
 0x3d6   :  { %v1505_v6 = vmul.f32 0.35355338, %v4991_v2 }
 0x3d7   :  { %v6236_v7 = vpop.f32.mrf.mxu1  ;;  %v1393_v18 = vpop.f32.mrf.mxu0 }
 0x3d8   :  { %v6238_v8 = vadd.f32 %v1569_v3, %v1505_v6  ;;  %1744 = vmax.xlane.f32.xlu0 %v6234_v5  ;;  %v1504_v32 = vmul.f32 0.35355338, %v1393_v18  ;;  %v1570_v3 = vld [vmem:[#allocation2 + $0x1b0] sm:$0xff] }
 0x3d9   :  { %v6241_v12 = vpop.f32.mrf.mxu1 }
 0x3da   :  { %1750 = vmax.xlane.f32.xlu1 %v6238_v8  ;;  %v6257_v17 = vadd.f32 %v1568_v24, %v1504_v32  ;;  %v1469_v32 = vmul.f32 0.35355338, %v6199_v43  ;;  %v1533_v24 = vld [vmem:[#allocation2 + $0x88] sm:$0xff]  ;;  %v1532_v43 = vld [vmem:[#allocation2 + $0x80] sm:$0xff] }
 0x3db   :  { %v6247_v19 = vpop.f32.mrf.mxu1 }
 0x3dc   :  { %1654 = vmax.xlane.f32.xlu0 %v6243_v14 }
 0x3dd   :  { %v4994_v22 = vpop.f32.mrf.mxu0  ;;  %v6254_v33 = vpop.f32.mrf.mxu1 }
 0x3de   :  { %v1507_v23 = vmul.f32 0.35355338, %v4994_v22  ;;  %v1525_v22 = vld [vmem:[#allocation2 + $0x48] sm:$0xff] }
 0x3df   :  { %v1403_v51 = vpop.f32.mrf.mxu0  ;;  %v6261_v28 = vpop.f32.mrf.mxu1  ;;  %v6288_v37 = vadd.f32 %v1525_v22, %v1461_v0  ;;  %v1470_v22 = vmul.f32 0.35355338, %v6207_v35  ;;  %v1537_v35 = vld [vmem:[#allocation2 + $0xa8] sm:$0xff] }
 0x3e0   :  { %v6251_v25 = vadd.f32 %v1571_v1, %v1507_v23  ;;  %1652 = vmax.xlane.f32.xlu0 %v6249_v31  ;;  %v1506_v2 = vmul.f32 0.35355338, %v1403_v51  ;;  %v1460_v51 = vmul.f32 0.35355338, %v6185_v38  ;;  %v1471_v38 = vmul.f32 0.35355338, %v6203_v49 }
 0x3e1   :  { %v6269_v34 = vpop.f32.mrf.mxu1 }
 0x3e2   :  { %1754 = vmax.xlane.f32.xlu1 %v6251_v25  ;;  %v6278_v15 = vadd.f32 %v1570_v3, %v1506_v2  ;;  %v1572_v2 = vld [vmem:[#allocation2 + $0x1c0] sm:$0xff] }
 0x3e3   :  { %v6274_v6 = vpop.f32.mrf.mxu1 }
 0x3e4   :  { %1748 = vmax.xlane.f32.xlu0 %v6257_v17 }
 0x3e5   :  { %v4997_v53 = vpop.f32.mrf.mxu0  ;;  %v6280_v1 = vpop.f32.mrf.mxu1 }
 0x3e6   :  { %v1509_v30 = vmul.f32 0.35355338, %v4997_v53  ;;  %v6292_v53 = vadd.f32 %v1533_v24, %v1469_v32  ;;  %v1534_v32 = vld [vmem:[#allocation2 + $0x90] sm:$0xff] }
 0x3e7   :  { %v1413_v4 = vpop.f32.mrf.mxu0  ;;  %v6286_v50 = vpop.f32.mrf.mxu1 }
 0x3e8   :  { %v6266_v61 = vadd.f32 %v1573_v56, %v1509_v30  ;;  %1658 = vmax.xlane.f32.xlu0 %v6263_v48  ;;  %v1468_v56 = vmul.f32 0.35355338, %v6201_v46  ;;  %v6298_v30 = vadd.f32 %v1524_v10, %v1460_v51  ;;  %v1508_v58 = vmul.f32 0.35355338, %v1413_v4 }
 0x3e9   :  { %v6296_v26 = vpop.f32.mrf.mxu1  ;;  %v1463_v46 = vmul.f32 0.35355338, %v6187_v39  ;;  %v1462_v51 = vmul.f32 0.35355338, %v6189_v40  ;;  %v1526_v39 = vld [vmem:[#allocation2 + $0x50] sm:$0xff] }
 0x3ea   :  { %1758 = vmax.xlane.f32.xlu1 %v6266_v61  ;;  %v6301_v3 = vadd.f32 %v1532_v43, %v1468_v56  ;;  %v6308_v0 = vadd.f32 %v1572_v2, %v1508_v58  ;;  %v6321_v56 = vadd.f32 %v1534_v32, %v1470_v22  ;;  %v1473_v43 = vmul.f32 0.35355338, %v6212_v29 }
 0x3eb   :  { %v6327_v2 = vadd.f32 %v1526_v39, %v1462_v51  ;;  %v1465_v29 = vmul.f32 0.35355338, %v6191_v41  ;;  %v1529_v51 = vld [vmem:[#allocation2 + $0x68] sm:$0xff]  ;;  %v1528_v41 = vld [vmem:[#allocation2 + $0x60] sm:$0xff] }
 0x3ec   :  { %1656 = vmax.xlane.f32.xlu0 %v6271_v62  ;;  %v6330_v40 = vadd.f32 %v1537_v35, %v1473_v43  ;;  %v1539_v43 = vld [vmem:[#allocation2 + $0xb8] sm:$0xff] }
 0x3ed   :  { %v5000_v20 = vpop.f32.mrf.mxu0 }
 0x3ee   :  { %v1511_v18 = vmul.f32 0.35355338, %v5000_v20  ;;  %v1535_v20 = vld [vmem:[#allocation2 + $0x98] sm:$0xff] }
 0x3ef   :  { %v6311_v4 = vadd.f32 %v1535_v20, %v1471_v38  ;;  %v1423_v10 = vpop.f32.mrf.mxu0  ;;  %v1574_v20 = vld [vmem:[#allocation2 + $0x1d0] sm:$0xff] }
 0x3f0   :  { %v6283_v23 = vadd.f32 %v1575_v55, %v1511_v18  ;;  %1752 = vmax.xlane.f32.xlu0 %v6278_v15  ;;  %v6305_v55 = vpop.f32.mrf.mxu1  ;;  %v1527_v18 = vld [vmem:[#allocation2 + $0x58] sm:$0xff]  ;;  %v1510_v38 = vmul.f32 0.35355338, %v1423_v10  ;;  %v1475_v10 = vmul.f32 0.35355338, %v6219_v57 }
 0x3f1   :  { %v6317_v24 = vadd.f32 %v1527_v18, %v1463_v46  ;;  %v1472_v46 = vmul.f32 0.35355338, %v6215_v21  ;;  %v1536_v18 = vld [vmem:[#allocation2 + $0xa0] sm:$0xff]  ;;  %v6344_v21 = vadd.f32 %v1529_v51, %v1465_v29  ;;  %v1531_v29 = vld [vmem:[#allocation2 + $0x78] sm:$0xff] }
 0x3f2   :  { %1762 = vmax.xlane.f32.xlu1 %v6283_v23  ;;  %v6315_v49 = vpop.f32.mrf.mxu1  ;;  %v6335_v32 = vadd.f32 %v1574_v20, %v1510_v38  ;;  %v6348_v38 = vadd.f32 %v1539_v43, %v1475_v10  ;;  %v1474_v20 = vmul.f32 0.35355338, %v6224_v59  ;;  %v1541_v10 = vld [vmem:[#allocation2 + $0xc8] sm:$0xff]  ;;  %v6362_v59 = vadd.f32 %v1531_v29, %v1467_v13  ;;  %v1548_v13 = vld [vmem:[#allocation2 + $0x100] sm:$0xff] }
 0x3f3   :  { %v6338_v39 = vadd.f32 %v1536_v18, %v1472_v46  ;;  %7501 = vst [vmem:[#allocation7_spill] sm:$0xff] %v6344_v21  ;;  %v1538_v46 = vld [vmem:[#allocation2 + $0xb0] sm:$0xff]  ;;  %v6352_v18 = vadd.f32 %v1528_v41, %v1464_v9  ;;  %v6366_v11 = vadd.f32 %v1541_v10, %v1477_v36  ;;  %v1476_v41 = vmul.f32 0.35355338, %v6232_v63  ;;  %v1543_v63 = vld [vmem:[#allocation2 + $0xd8] sm:$0xff] }
 0x3f4   :  { %1662 = vmax.xlane.f32.xlu0 %v6288_v37  ;;  %v6325_v58 = vpop.f32.mrf.mxu1  ;;  %v6356_v51 = vadd.f32 %v1538_v46, %v1474_v20  ;;  %7504 = vst [vmem:[#allocation10_spill] sm:$0xff] %v6362_v59  ;;  %v1530_v9 = vld [vmem:[#allocation2 + $0x70] sm:$0xff]  ;;  %v1540_v20 = vld [vmem:[#allocation2 + $0xc0] sm:$0xff]  ;;  %v1486_v36 = vmul.f32 0.35355338, %v6296_v26 }
 0x3f5   :  { %7502 = vst [vmem:[#allocation8_spill] sm:$0xff] %v6352_v18  ;;  %v6374_v29 = vadd.f32 %v1540_v20, %v1476_v41  ;;  %v1550_v10 = vld [vmem:[#allocation2 + $0x110] sm:$0xff]  ;;  %v1552_v26 = vld [vmem:[#allocation2 + $0x120] sm:$0xff] }
 0x3f6   :  { %1678 = vmax.xlane.f32.xlu1 %v6292_v53  ;;  %v1210_v22 = vpop.f32.mrf.mxu1  ;;  %7503 = vst [vmem:[#allocation9_spill] sm:$0xff] %v6356_v51  ;;  %v1542_v41 = vld [vmem:[#allocation2 + $0xd0] sm:$0xff] }
 0x3f8   :  { %1660 = vmax.xlane.f32.xlu0 %v6298_v30  ;;  %v6342_v35 = vpop.f32.mrf.mxu1 }
 0x3fa   :  { %1676 = vmax.xlane.f32.xlu1 %v6301_v3  ;;  %v1220_v57 = vpop.f32.mrf.mxu1 }
 0x3fc   :  { %1756 = vmax.xlane.f32.xlu0 %v6308_v0  ;;  %v6360_v43 = vpop.f32.mrf.mxu1 }
 0x3fe   :  { %1682 = vmax.xlane.f32.xlu1 %v6311_v4  ;;  %v1230_v54 = vpop.f32.mrf.mxu1 }
 0x400   :  { %1666 = vmax.xlane.f32.xlu0 %v6317_v24 }
 0x402   :  { %1680 = vmax.xlane.f32.xlu1 %v6321_v56 }
 0x404   :  { %1664 = vmax.xlane.f32.xlu0 %v6327_v2 }
 0x406   :  { %1686 = vmax.xlane.f32.xlu1 %v6330_v40 }
 0x408   :  { %1760 = vmax.xlane.f32.xlu0 %v6335_v32 }
 0x40a   :  { %1684 = vmax.xlane.f32.xlu1 %v6338_v39 }
 0x40c   :  { %1670 = vmax.xlane.f32.xlu0 %v6344_v21  ;;  %v1466_v21 = vmul.f32 0.35355338, %v6197_v42  ;;  %v1479_v42 = vmul.f32 0.35355338, %v6236_v7  ;;  %v1488_v7 = vmul.f32 0.35355338, %v6315_v49 }
 0x40e   :  { %1690 = vmax.xlane.f32.xlu1 %v6348_v38  ;;  %v6370_v46 = vadd.f32 %v1530_v9, %v1466_v21  ;;  %v1478_v21 = vmul.f32 0.35355338, %v6241_v12  ;;  %v6387_v9 = vadd.f32 %v1550_v10, %v1486_v36  ;;  %v1490_v12 = vmul.f32 0.35355338, %v1210_v22  ;;  %v1554_v36 = vld [vmem:[#allocation2 + $0x130] sm:$0xff] }
 0x40f   :  { %v1480_v10 = vmul.f32 0.35355338, %v6254_v33  ;;  %v1547_v33 = vld [vmem:[#allocation2 + $0xf8] sm:$0xff] }
 0x410   :  { %1668 = vmax.xlane.f32.xlu0 %v6352_v18  ;;  %7505 = vst [vmem:[#allocation11_spill] sm:$0xff] %v6370_v46  ;;  %v1484_v18 = vmul.f32 0.35355338, %v6280_v1  ;;  %v6384_v1 = vadd.f32 %v1543_v63, %v1479_v42  ;;  %7507 = vst [vmem:[#allocation13_spill] sm:$0xff] %v6387_v9  ;;  %v1545_v42 = vld [vmem:[#allocation2 + $0xe8] sm:$0xff] }
 0x412   :  { %1688 = vmax.xlane.f32.xlu1 %v6356_v51  ;;  %v6381_v51 = vadd.f32 %v1548_v13, %v1484_v18  ;;  %7506 = vst [vmem:[#allocation12_spill] sm:$0xff] %v6384_v1  ;;  %v1481_v18 = vmul.f32 0.35355338, %v6247_v19  ;;  %v6395_v13 = vadd.f32 %v1552_v26, %v1488_v7  ;;  %v1492_v19 = vmul.f32 0.35355338, %v1220_v57  ;;  %v1556_v7 = vld [vmem:[#allocation2 + $0x140] sm:$0xff] }
 0x413   :  { %v1483_v26 = vmul.f32 0.35355338, %v6261_v28 }
 0x414   :  { %1674 = vmax.xlane.f32.xlu0 %v6362_v59  ;;  %v6379_v59 = vpop.f32.mrf.mxu1  ;;  %7508 = vst [vmem:[#allocation14_spill] sm:$0xff] %v6395_v13  ;;  %v6401_v49 = vadd.f32 %v1545_v42, %v1481_v18  ;;  %v1494_v18 = vmul.f32 0.35355338, %v1230_v54  ;;  %v1558_v42 = vld [vmem:[#allocation2 + $0x150] sm:$0xff] }
 0x415   :  { %v6417_v57 = vadd.f32 %v1547_v33, %v1483_v26  ;;  %v1485_v26 = vmul.f32 0.35355338, %v6274_v6 }
 0x416   :  { %1694 = vmax.xlane.f32.xlu1 %v6366_v11  ;;  %v1240_v20 = vpop.f32.mrf.mxu1  ;;  %7509 = vst [vmem:[#allocation15_spill] sm:$0xff] %v6401_v49 }
 0x417   :  { %v1496_v28 = vmul.f32 0.35355338, %v1240_v20 }
 0x418   :  { %1672 = vmax.xlane.f32.xlu0 %v6370_v46  ;;  %v6392_v46 = vadd.f32 %v1542_v41, %v1478_v21  ;;  %v6398_v63 = vpop.f32.mrf.mxu1  ;;  %v1544_v21 = vld [vmem:[#allocation2 + $0xe0] sm:$0xff] }
 0x419   :  { %v6408_v22 = vadd.f32 %v1544_v21, %v1480_v10  ;;  %v6420_v10 = vadd.f32 %v1558_v42, %v1494_v18  ;;  %v1560_v21 = vld [vmem:[#allocation2 + $0x160] sm:$0xff]  ;;  %v1549_v18 = vld [vmem:[#allocation2 + $0x108] sm:$0xff]  ;;  %v1562_v42 = vld [vmem:[#allocation2 + $0x170] sm:$0xff] }
 0x41a   :  { %1692 = vmax.xlane.f32.xlu1 %v6374_v29  ;;  %v1250_v41 = vpop.f32.mrf.mxu1  ;;  %v6428_v33 = vadd.f32 %v1560_v21, %v1496_v28  ;;  %v1551_v28 = vld [vmem:[#allocation2 + $0x118] sm:$0xff] }
 0x41b   :  { %7511 = vst [vmem:[#allocation17_spill] sm:$0xff] %v6408_v22 }
 0x41c   :  { %1708 = vmax.xlane.f32.xlu0 %v6381_v51 }
 0x41e   :  { %1698 = vmax.xlane.f32.xlu1 %v6384_v1  ;;  %v6404_v1 = vadd.f32 %v1554_v36, %v1490_v12  ;;  %v1647_v12 = vpop.xlane.xlu0 %1646  ;;  %v6414_v36 = vpop.f32.mrf.mxu1 }
 0x41f   :  { %v1773_v54 = vsub.f32 %v6173_v16, %v1647_v12  ;;  %v6433_v16 = vadd.f32 %v1549_v18, %v1485_v26  ;;  %v1553_v26 = vld [vmem:[#allocation2 + $0x128] sm:$0xff]  ;;  %v1555_v18 = vld [vmem:[#allocation2 + $0x138] sm:$0xff] }
 0x420   :  { %1712 = vmax.xlane.f32.xlu0 %v6387_v9  ;;  %7510 = vst [vmem:[#allocation16_spill] sm:$0xff] %v6404_v1  ;;  %v6411_v9 = vadd.f32 %v1556_v7, %v1492_v19  ;;  %v1546_v19 = vld [vmem:[#allocation2 + $0xf0] sm:$0xff]  ;;  %v1433_v7 = vpop.f32.mrf.mxu1 }
 0x421   :  { %v1512_v6 = vmul.f32 0.35355338, %v1433_v7 }
 0x422   :  { %1696 = vmax.xlane.f32.xlu1 %v6392_v46  ;;  %7512 = vst [vmem:[#allocation18_spill] sm:$0xff] %v6411_v9  ;;  %v5006_v20 = vpop.f32.mrf.mxu1 }
 0x424   :  { %1716 = vmax.xlane.f32.xlu0 %v6395_v13 }
 0x426   :  { %1702 = vmax.xlane.f32.xlu1 %v6401_v49  ;;  %v1482_v49 = vmul.f32 0.35355338, %v6269_v34  ;;  %v1498_v34 = vmul.f32 0.35355338, %v1250_v41  ;;  %v1443_v41 = vpop.f32.mrf.mxu1 }
 0x428   :  { %1720 = vmax.xlane.f32.xlu0 %v6404_v1  ;;  %v1645_v1 = vpop.xlane.xlu0 %1644  ;;  %v6425_v13 = vadd.f32 %v1546_v19, %v1482_v49  ;;  %v1487_v49 = vmul.f32 0.35355338, %v6286_v50  ;;  %v6436_v12 = vadd.f32 %v1562_v42, %v1498_v34  ;;  %v1576_v19 = vld [vmem:[#allocation2 + $0x1e0] sm:$0xff]  ;;  %v1514_v50 = vmul.f32 0.35355338, %v1443_v41  ;;  %v1578_v34 = vld [vmem:[#allocation2 + $0x1f0] sm:$0xff] }
 0x429   :  { %v1493_v42 = vmul.f32 0.35355338, %v6342_v35  ;;  %v1497_v35 = vmul.f32 0.35355338, %v6379_v59 }
 0x42a   :  { %1700 = vmax.xlane.f32.xlu1 %v6408_v22  ;;  %v1772_v22 = vsub.f32 %v6175_v27, %v1645_v1  ;;  %v1489_v27 = vmul.f32 0.35355338, %v6305_v55  ;;  %v6443_v1 = vadd.f32 %v1576_v19, %v1512_v6  ;;  %v1559_v19 = vld [vmem:[#allocation2 + $0x158] sm:$0xff] }
 0x42c   :  { %1724 = vmax.xlane.f32.xlu0 %v6411_v9  ;;  %v1838_v9 = vmul.f32 1.442695, %v1773_v54  ;;  %v1836_v21 = vmul.f32 1.442695, %v1772_v22  ;;  %v6440_v54 = vadd.f32 %v1551_v28, %v1487_v49  ;;  %v6447_v7 = vadd.f32 %v1553_v26, %v1489_v27  ;;  %v1557_v49 = vld [vmem:[#allocation2 + $0x148] sm:$0xff]  ;;  %v1563_v26 = vld [vmem:[#allocation2 + $0x178] sm:$0xff] }
 0x42d   :  { %v6450_v22 = vadd.f32 %v1578_v34, %v1514_v50  ;;  %v6461_v28 = vadd.f32 %v1557_v49, %v1493_v42  ;;  %v1561_v27 = vld [vmem:[#allocation2 + $0x168] sm:$0xff]  ;;  %v1515_v49 = vmul.f32 0.35355338, %v5006_v20 }
 0x42e   :  { %1706 = vmax.xlane.f32.xlu1 %v6417_v57  ;;  %5341 = vpow2.f32 %v1838_v9  ;;  %v1491_v9 = vmul.f32 0.35355338, %v6325_v58  ;;  %v1495_v58 = vmul.f32 0.35355338, %v6360_v43  ;;  %v6473_v50 = vadd.f32 %v1561_v27, %v1497_v35 }
 0x42f   :  { %5343 = vpow2.f32 %v1836_v21  ;;  %v1499_v43 = vmul.f32 0.35355338, %v6398_v63 }
 0x430   :  { %1728 = vmax.xlane.f32.xlu0 %v6420_v10  ;;  %v6454_v55 = vadd.f32 %v1555_v18, %v1491_v9  ;;  %v6468_v21 = vadd.f32 %v1559_v19, %v1495_v58  ;;  %v1513_v9 = vmul.f32 0.35355338, %v6414_v36  ;;  %v1577_v18 = vld [vmem:[#allocation2 + $0x1e8] sm:$0xff]  ;;  %v1579_v19 = vld [vmem:[#allocation2 + $0x1f8] sm:$0xff] }
 0x431   :  { %v6477_v34 = vadd.f32 %v1563_v26, %v1499_v43  ;;  %v6486_v43 = vadd.f32 %v1579_v19, %v1515_v49 }
 0x432   :  { %1704 = vmax.xlane.f32.xlu1 %v6425_v13  ;;  %v6481_v42 = vadd.f32 %v1577_v18, %v1513_v9 }
 0x434   :  { %1732 = vmax.xlane.f32.xlu0 %v6428_v33 }
 0x436   :  { %1710 = vmax.xlane.f32.xlu1 %v6433_v16 }
 0x438   :  { %1736 = vmax.xlane.f32.xlu0 %v6436_v12 }
 0x43a   :  { %1714 = vmax.xlane.f32.xlu1 %v6440_v54 }
 0x43b   :  { %v6459_v6 = vpop.eup %5341 }
 0x43c   :  { %1764 = vmax.xlane.f32.xlu0 %v6443_v1  ;;  %7513 = vst [vmem:[#allocation19_spill] sm:$0xff] %v6459_v6  ;;  %v6466_v41 = vpop.eup %5343 }
 0x43e   :  { %1718 = vmax.xlane.f32.xlu1 %v6447_v7 }
 0x440   :  { %1768 = vmax.xlane.f32.xlu0 %v6450_v22 }
 0x442   :  { %1722 = vmax.xlane.f32.xlu1 %v6454_v55 }
 0x444   :  { %1966 = vadd.xlane.f32.xlu0 %v6459_v6 }
 0x446   :  { %1726 = vmax.xlane.f32.xlu1 %v6461_v28 }
 0x448   :  { %1964 = vadd.xlane.f32.xlu0 %v6466_v41 }
 0x44a   :  { %1730 = vmax.xlane.f32.xlu1 %v6468_v21 }
 0x44e   :  { %1734 = vmax.xlane.f32.xlu1 %v6473_v50 }
 0x452   :  { %1738 = vmax.xlane.f32.xlu1 %v6477_v34 }
 0x453   :  { %v1743_v59 = vpop.xlane.xlu1 %1742 }
 0x454   :  { %v1821_v58 = vsub.f32 %v6205_v44, %v1743_v59 }
 0x455   :  { %v1741_v35 = vpop.xlane.xlu0 %1740 }
 0x456   :  { %v1934_v27 = vmul.f32 1.442695, %v1821_v58  ;;  %v1820_v63 = vsub.f32 %v6209_v52, %v1741_v35  ;;  %1766 = vmax.xlane.f32.xlu1 %v6481_v42 }
 0x458   :  { %5345 = vpow2.f32 %v1934_v27  ;;  %v1932_v36 = vmul.f32 1.442695, %v1820_v63 }
 0x459   :  { %v1651_v26 = vpop.xlane.xlu0 %1650 }
 0x45a   :  { %5347 = vpow2.f32 %v1932_v36  ;;  %v1775_v6 = vsub.f32 %v6217_v47, %v1651_v26  ;;  %1770 = vmax.xlane.f32.xlu1 %v6486_v43 }
 0x45b   :  { %v1747_v20 = vpop.xlane.xlu1 %1746 }
 0x45c   :  { %v1842_v9 = vmul.f32 1.442695, %v1775_v6  ;;  %v1823_v44 = vsub.f32 %v6221_v45, %v1747_v20 }
 0x45d   :  { %v1649_v18 = vpop.xlane.xlu0 %1648 }
 0x45e   :  { %5349 = vpow2.f32 %v1842_v9  ;;  %v1938_v59 = vmul.f32 1.442695, %v1823_v44  ;;  %v1774_v52 = vsub.f32 %v6226_v60, %v1649_v18 }
 0x460   :  { %5351 = vpow2.f32 %v1938_v59  ;;  %v1840_v49 = vmul.f32 1.442695, %v1774_v52 }
 0x461   :  { %v1745_v58 = vpop.xlane.xlu0 %1744 }
 0x462   :  { %5353 = vpow2.f32 %v1840_v49  ;;  %v1822_v19 = vsub.f32 %v6234_v5, %v1745_v58 }
 0x463   :  { %v1751_v35 = vpop.xlane.xlu1 %1750 }
 0x464   :  { %v1936_v27 = vmul.f32 1.442695, %v1822_v19  ;;  %v1825_v47 = vsub.f32 %v6238_v8, %v1751_v35 }
 0x465   :  { %v6494_v63 = vpop.eup %5345  ;;  %v1655_v6 = vpop.xlane.xlu0 %1654 }
 0x466   :  { %5355 = vpow2.f32 %v1936_v27  ;;  %v1942_v45 = vmul.f32 1.442695, %v1825_v47  ;;  %v1777_v36 = vsub.f32 %v6243_v14, %v1655_v6  ;;  %2062 = vadd.xlane.f32.xlu1 %v6494_v63 }
 0x467   :  { %v6498_v60 = vpop.eup %5347 }
 0x468   :  { %5357 = vpow2.f32 %v1942_v45  ;;  %v1846_v26 = vmul.f32 1.442695, %v1777_v36  ;;  %2060 = vadd.xlane.f32.xlu0 %v6498_v60 }
 0x469   :  { %v1653_v5 = vpop.xlane.xlu0 %1652 }
 0x46a   :  { %5359 = vpow2.f32 %v1846_v26  ;;  %v1776_v20 = vsub.f32 %v6249_v31, %v1653_v5 }
 0x46b   :  { %v6502_v8 = vpop.eup %5349  ;;  %v1755_v9 = vpop.xlane.xlu1 %1754 }
 0x46c   :  { %v1844_v44 = vmul.f32 1.442695, %v1776_v20  ;;  %v1827_v18 = vsub.f32 %v6251_v25, %v1755_v9  ;;  %1970 = vadd.xlane.f32.xlu0 %v6502_v8 }
 0x46d   :  { %v6506_v14 = vpop.eup %5351  ;;  %v1749_v59 = vpop.xlane.xlu0 %1748 }
 0x46e   :  { %5361 = vpow2.f32 %v1844_v44  ;;  %v1946_v52 = vmul.f32 1.442695, %v1827_v18  ;;  %v1824_v49 = vsub.f32 %v6257_v17, %v1749_v59  ;;  %2066 = vadd.xlane.f32.xlu1 %v6506_v14 }
 0x46f   :  { %v6510_v58 = vpop.eup %5353 }
 0x470   :  { %5363 = vpow2.f32 %v1946_v52  ;;  %v1940_v31 = vmul.f32 1.442695, %v1824_v49  ;;  %1968 = vadd.xlane.f32.xlu0 %v6510_v58 }
 0x471   :  { %v1659_v19 = vpop.xlane.xlu0 %1658 }
 0x472   :  { %5365 = vpow2.f32 %v1940_v31  ;;  %v1779_v25 = vsub.f32 %v6263_v48, %v1659_v19 }
 0x473   :  { %v6514_v35 = vpop.eup %5355  ;;  %v1759_v27 = vpop.xlane.xlu1 %1758 }
 0x474   :  { %v1850_v47 = vmul.f32 1.442695, %v1779_v25  ;;  %v1829_v6 = vsub.f32 %v6266_v61, %v1759_v27  ;;  %2064 = vadd.xlane.f32.xlu0 %v6514_v35 }
 0x475   :  { %v6518_v17 = vpop.eup %5357  ;;  %v1657_v45 = vpop.xlane.xlu0 %1656 }
 0x476   :  { %5367 = vpow2.f32 %v1850_v47  ;;  %v1950_v36 = vmul.f32 1.442695, %v1829_v6  ;;  %v1778_v26 = vsub.f32 %v6271_v62, %v1657_v45  ;;  %2070 = vadd.xlane.f32.xlu1 %v6518_v17 }
 0x477   :  { %v6522_v5 = vpop.eup %5359 }
 0x478   :  { %5369 = vpow2.f32 %v1950_v36  ;;  %v1848_v48 = vmul.f32 1.442695, %v1778_v26  ;;  %1974 = vadd.xlane.f32.xlu0 %v6522_v5 }
 0x479   :  { %v1753_v20 = vpop.xlane.xlu0 %1752 }
 0x47a   :  { %5371 = vpow2.f32 %v1848_v48  ;;  %v1826_v61 = vsub.f32 %v6278_v15, %v1753_v20 }
 0x47b   :  { %v6526_v9 = vpop.eup %5361  ;;  %v1763_v44 = vpop.xlane.xlu1 %1762 }
 0x47c   :  { %v1944_v18 = vmul.f32 1.442695, %v1826_v61  ;;  %v1831_v59 = vsub.f32 %v6283_v23, %v1763_v44  ;;  %1972 = vadd.xlane.f32.xlu0 %v6526_v9 }
 0x47d   :  { %v6530_v62 = vpop.eup %5363  ;;  %v1663_v52 = vpop.xlane.xlu0 %1662 }
 0x47e   :  { %7514 = vst [vmem:[#allocation20_spill] sm:$0xff] %v6530_v62  ;;  %5373 = vpow2.f32 %v1944_v18  ;;  %v1954_v49 = vmul.f32 1.442695, %v1831_v59  ;;  %v1781_v31 = vsub.f32 %v6288_v37, %v1663_v52  ;;  %2074 = vadd.xlane.f32.xlu1 %v6530_v62 }
 0x47f   :  { %v6534_v19 = vpop.eup %5365  ;;  %v1679_v15 = vpop.xlane.xlu1 %1678 }
 0x480   :  { %5375 = vpow2.f32 %v1954_v49  ;;  %v1854_v25 = vmul.f32 1.442695, %v1781_v31  ;;  %v1789_v27 = vsub.f32 %v6292_v53, %v1679_v15  ;;  %2068 = vadd.xlane.f32.xlu0 %v6534_v19 }
 0x481   :  { %v1661_v23 = vpop.xlane.xlu0 %1660 }
 0x482   :  { %5377 = vpow2.f32 %v1854_v25  ;;  %v1870_v47 = vmul.f32 1.442695, %v1789_v27  ;;  %v1780_v6 = vsub.f32 %v6298_v30, %v1661_v23 }
 0x483   :  { %v6539_v45 = vpop.eup %5367  ;;  %v1677_v36 = vpop.xlane.xlu1 %1676 }
 0x484   :  { %5379 = vpow2.f32 %v1870_v47  ;;  %v1852_v37 = vmul.f32 1.442695, %v1780_v6  ;;  %v1788_v26 = vsub.f32 %v6301_v3, %v1677_v36  ;;  %1978 = vadd.xlane.f32.xlu0 %v6539_v45 }
 0x485   :  { %v6543_v48 = vpop.eup %5369  ;;  %v1757_v20 = vpop.xlane.xlu0 %1756 }
 0x486   :  { %7515 = vst [vmem:[#allocation21_spill] sm:$0xff] %v6543_v48  ;;  %5381 = vpow2.f32 %v1852_v37  ;;  %v1868_v53 = vmul.f32 1.442695, %v1788_v26  ;;  %v1828_v61 = vsub.f32 %v6308_v0, %v1757_v20  ;;  %2078 = vadd.xlane.f32.xlu1 %v6543_v48 }
 0x487   :  { %v6547_v44 = vpop.eup %5371  ;;  %v1683_v30 = vpop.xlane.xlu1 %1682 }
 0x488   :  { %5383 = vpow2.f32 %v1868_v53  ;;  %v1948_v18 = vmul.f32 1.442695, %v1828_v61  ;;  %v1791_v59 = vsub.f32 %v6311_v4, %v1683_v30  ;;  %1976 = vadd.xlane.f32.xlu0 %v6547_v44 }
 0x489   :  { %v1667_v3 = vpop.xlane.xlu0 %1666 }
 0x48a   :  { %5385 = vpow2.f32 %v1948_v18  ;;  %v1874_v52 = vmul.f32 1.442695, %v1791_v59  ;;  %v1783_v49 = vsub.f32 %v6317_v24, %v1667_v3 }
 0x48b   :  { %v6552_v31 = vpop.eup %5373  ;;  %v1681_v15 = vpop.xlane.xlu1 %1680 }
 0x48c   :  { %5387 = vpow2.f32 %v1874_v52  ;;  %v1858_v0 = vmul.f32 1.442695, %v1783_v49  ;;  %v1790_v25 = vsub.f32 %v6321_v56, %v1681_v15  ;;  %2072 = vadd.xlane.f32.xlu0 %v6552_v31  ;;  %v7517_v52 = vld [vmem:[#allocation7_spill] sm:$0xff] }
 0x48d   :  { %v6556_v27 = vpop.eup %5375  ;;  %v1665_v23 = vpop.xlane.xlu0 %1664 }
 0x48e   :  { %7516 = vst [vmem:[#allocation22_spill] sm:$0xff] %v6556_v27  ;;  %5389 = vpow2.f32 %v1858_v0  ;;  %v1872_v4 = vmul.f32 1.442695, %v1790_v25  ;;  %v1782_v47 = vsub.f32 %v6327_v2, %v1665_v23  ;;  %2082 = vadd.xlane.f32.xlu1 %v6556_v27 }
 0x48f   :  { %v6560_v6 = vpop.eup %5377  ;;  %v1687_v24 = vpop.xlane.xlu1 %1686 }
 0x490   :  { %5391 = vpow2.f32 %v1872_v4  ;;  %v1856_v36 = vmul.f32 1.442695, %v1782_v47  ;;  %v1793_v37 = vsub.f32 %v6330_v40, %v1687_v24  ;;  %1982 = vadd.xlane.f32.xlu0 %v6560_v6  ;;  %v7519_v47 = vld [vmem:[#allocation8_spill] sm:$0xff] }
 0x491   :  { %v6564_v56 = vpop.eup %5379  ;;  %v1761_v26 = vpop.xlane.xlu0 %1760 }
 0x492   :  { %5393 = vpow2.f32 %v1856_v36  ;;  %v1878_v20 = vmul.f32 1.442695, %v1793_v37  ;;  %v1830_v53 = vsub.f32 %v6335_v32, %v1761_v26  ;;  %1998 = vadd.xlane.f32.xlu1 %v6564_v56 }
 0x493   :  { %v6568_v2 = vpop.eup %5381  ;;  %v1685_v61 = vpop.xlane.xlu1 %1684 }
 0x494   :  { %5395 = vpow2.f32 %v1878_v20  ;;  %v1952_v30 = vmul.f32 1.442695, %v1830_v53  ;;  %v1792_v18 = vsub.f32 %v6338_v39, %v1685_v61  ;;  %1980 = vadd.xlane.f32.xlu0 %v6568_v2  ;;  %v7520_v20 = vld [vmem:[#allocation9_spill] sm:$0xff] }
 0x495   :  { %v6572_v40 = vpop.eup %5383  ;;  %v1671_v59 = vpop.xlane.xlu0 %1670 }
 0x496   :  { %5397 = vpow2.f32 %v1952_v30  ;;  %v1876_v3 = vmul.f32 1.442695, %v1792_v18  ;;  %v1785_v49 = vsub.f32 %v7517_v52, %v1671_v59  ;;  %1996 = vadd.xlane.f32.xlu1 %v6572_v40  ;;  %v7521_v18 = vld [vmem:[#allocation10_spill] sm:$0xff] }
 0x497   :  { %v6576_v32 = vpop.eup %5385  ;;  %v1691_v15 = vpop.xlane.xlu1 %1690 }
 0x498   :  { %7518 = vst [vmem:[#allocation7_spill] sm:$0xff] %v6576_v32  ;;  %5399 = vpow2.f32 %v1876_v3  ;;  %v1862_v0 = vmul.f32 1.442695, %v1785_v49  ;;  %v1795_v25 = vsub.f32 %v6348_v38, %v1691_v15  ;;  %2076 = vadd.xlane.f32.xlu0 %v6576_v32 }
 0x499   :  { %v6580_v39 = vpop.eup %5387  ;;  %v1669_v23 = vpop.xlane.xlu0 %1668 }
 0x49a   :  { %5401 = vpow2.f32 %v1862_v0  ;;  %v1882_v4 = vmul.f32 1.442695, %v1795_v25  ;;  %v1784_v24 = vsub.f32 %v7519_v47, %v1669_v23  ;;  %2002 = vadd.xlane.f32.xlu1 %v6580_v39 }
 0x49b   :  { %v6584_v36 = vpop.eup %5389  ;;  %v1689_v37 = vpop.xlane.xlu1 %1688 }
 0x49c   :  { %5403 = vpow2.f32 %v1882_v4  ;;  %v1860_v26 = vmul.f32 1.442695, %v1784_v24  ;;  %v1794_v53 = vsub.f32 %v7520_v20, %v1689_v37  ;;  %1986 = vadd.xlane.f32.xlu0 %v6584_v36  ;;  %v7522_v4 = vld [vmem:[#allocation11_spill] sm:$0xff] }
 0x49d   :  { %v6588_v38 = vpop.eup %5391  ;;  %v1675_v61 = vpop.xlane.xlu0 %1674 }
 0x49e   :  { %5405 = vpow2.f32 %v1860_v26  ;;  %v1880_v30 = vmul.f32 1.442695, %v1794_v53  ;;  %v1787_v59 = vsub.f32 %v7521_v18, %v1675_v61  ;;  %2000 = vadd.xlane.f32.xlu1 %v6588_v38 }
 0x49f   :  { %v6592_v3 = vpop.eup %5393  ;;  %v1695_v52 = vpop.xlane.xlu1 %1694 }
 0x4a0   :  { %5407 = vpow2.f32 %v1880_v30  ;;  %v1866_v49 = vmul.f32 1.442695, %v1787_v59  ;;  %v1797_v15 = vsub.f32 %v6366_v11, %v1695_v52  ;;  %1984 = vadd.xlane.f32.xlu0 %v6592_v3 }
 0x4a1   :  { %v6596_v0 = vpop.eup %5395  ;;  %v1673_v25 = vpop.xlane.xlu0 %1672 }
 0x4a2   :  { %5409 = vpow2.f32 %v1866_v49  ;;  %v1886_v23 = vmul.f32 1.442695, %v1797_v15  ;;  %v1786_v47 = vsub.f32 %v7522_v4, %v1673_v25  ;;  %2006 = vadd.xlane.f32.xlu1 %v6596_v0  ;;  %v7524_v49 = vld [vmem:[#allocation12_spill] sm:$0xff]  ;;  %v7525_v4 = vld [vmem:[#allocation13_spill] sm:$0xff] }
 0x4a3   :  { %v6600_v24 = vpop.eup %5397  ;;  %v1693_v37 = vpop.xlane.xlu1 %1692 }
 0x4a4   :  { %7523 = vst [vmem:[#allocation8_spill] sm:$0xff] %v6600_v24  ;;  %5411 = vpow2.f32 %v1886_v23  ;;  %v1864_v26 = vmul.f32 1.442695, %v1786_v47  ;;  %v1796_v20 = vsub.f32 %v6374_v29, %v1693_v37  ;;  %2080 = vadd.xlane.f32.xlu0 %v6600_v24 }
 0x4a5   :  { %v6604_v11 = vpop.eup %5399  ;;  %v1709_v53 = vpop.xlane.xlu0 %1708 }
 0x4a6   :  { %5413 = vpow2.f32 %v1864_v26  ;;  %v1884_v61 = vmul.f32 1.442695, %v1796_v20  ;;  %v1804_v30 = vsub.f32 %v6381_v51, %v1709_v53  ;;  %2004 = vadd.xlane.f32.xlu1 %v6604_v11 }
 0x4a7   :  { %v6608_v18 = vpop.eup %5401  ;;  %v1699_v59 = vpop.xlane.xlu1 %1698 }
 0x4a8   :  { %5415 = vpow2.f32 %v1884_v61  ;;  %v1900_v52 = vmul.f32 1.442695, %v1804_v30  ;;  %v1799_v15 = vsub.f32 %v7524_v49, %v1699_v59  ;;  %1990 = vadd.xlane.f32.xlu0 %v6608_v18  ;;  %v7526_v59 = vld [vmem:[#allocation14_spill] sm:$0xff] }
 0x4a9   :  { %v6612_v29 = vpop.eup %5403  ;;  %v1713_v25 = vpop.xlane.xlu0 %1712 }
 0x4aa   :  { %5417 = vpow2.f32 %v1900_v52  ;;  %v1890_v23 = vmul.f32 1.442695, %v1799_v15  ;;  %v1806_v47 = vsub.f32 %v7525_v4, %v1713_v25  ;;  %2010 = vadd.xlane.f32.xlu1 %v6612_v29 }
 0x4ab   :  { %v6616_v51 = vpop.eup %5405  ;;  %v1697_v37 = vpop.xlane.xlu1 %1696 }
 0x4ac   :  { %5419 = vpow2.f32 %v1890_v23  ;;  %v1904_v26 = vmul.f32 1.442695, %v1806_v47  ;;  %v1798_v20 = vsub.f32 %v6392_v46, %v1697_v37  ;;  %1988 = vadd.xlane.f32.xlu0 %v6616_v51  ;;  %v7527_v23 = vld [vmem:[#allocation15_spill] sm:$0xff] }
 0x4ad   :  { %v6620_v53 = vpop.eup %5407  ;;  %v1717_v61 = vpop.xlane.xlu0 %1716 }
 0x4ae   :  { %5421 = vpow2.f32 %v1904_v26  ;;  %v1888_v30 = vmul.f32 1.442695, %v1798_v20  ;;  %v1808_v52 = vsub.f32 %v7526_v59, %v1717_v61  ;;  %2008 = vadd.xlane.f32.xlu1 %v6620_v53  ;;  %v7528_v26 = vld [vmem:[#allocation16_spill] sm:$0xff] }
 0x4af   :  { %v6624_v49 = vpop.eup %5409  ;;  %v1703_v15 = vpop.xlane.xlu1 %1702 }
 0x4b0   :  { %5423 = vpow2.f32 %v1888_v30  ;;  %v1908_v25 = vmul.f32 1.442695, %v1808_v52  ;;  %v1801_v4 = vsub.f32 %v7527_v23, %v1703_v15  ;;  %1994 = vadd.xlane.f32.xlu0 %v6624_v49  ;;  %v7529_v30 = vld [vmem:[#allocation17_spill] sm:$0xff] }
 0x4b1   :  { %v6628_v46 = vpop.eup %5411  ;;  %v1721_v47 = vpop.xlane.xlu0 %1720 }
 0x4b2   :  { %5425 = vpow2.f32 %v1908_v25  ;;  %v1894_v37 = vmul.f32 1.442695, %v1801_v4  ;;  %v1810_v20 = vsub.f32 %v7528_v26, %v1721_v47  ;;  %2014 = vadd.xlane.f32.xlu1 %v6628_v46  ;;  %v7530_v25 = vld [vmem:[#allocation18_spill] sm:$0xff] }
 0x4b3   :  { %v6632_v61 = vpop.eup %5413  ;;  %v1701_v59 = vpop.xlane.xlu1 %1700 }
 0x4b4   :  { %5427 = vpow2.f32 %v1894_v37  ;;  %v1912_v27 = vmul.f32 1.442695, %v1810_v20  ;;  %v1800_v52 = vsub.f32 %v7529_v30, %v1701_v59  ;;  %1992 = vadd.xlane.f32.xlu0 %v6632_v61 }
 0x4b5   :  { %v6636_v15 = vpop.eup %5415  ;;  %v1725_v23 = vpop.xlane.xlu0 %1724 }
 0x4b6   :  { %5429 = vpow2.f32 %v1912_v27  ;;  %v1892_v24 = vmul.f32 1.442695, %v1800_v52  ;;  %v1812_v4 = vsub.f32 %v7530_v25, %v1725_v23  ;;  %2012 = vadd.xlane.f32.xlu1 %v6636_v15 }
 0x4b7   :  { %v6640_v47 = vpop.eup %5417  ;;  %v1707_v26 = vpop.xlane.xlu1 %1706 }
 0x4b8   :  { %5431 = vpow2.f32 %v1892_v24  ;;  %v1916_v48 = vmul.f32 1.442695, %v1812_v4  ;;  %v1803_v37 = vsub.f32 %v6417_v57, %v1707_v26  ;;  %2028 = vadd.xlane.f32.xlu0 %v6640_v47 }
 0x4b9   :  { %v6644_v20 = vpop.eup %5419  ;;  %v1729_v59 = vpop.xlane.xlu0 %1728 }
 0x4ba   :  { %5433 = vpow2.f32 %v1916_v48  ;;  %v1898_v30 = vmul.f32 1.442695, %v1803_v37  ;;  %v1814_v27 = vsub.f32 %v6420_v10, %v1729_v59  ;;  %2018 = vadd.xlane.f32.xlu1 %v6644_v20 }
 0x4bb   :  { %v6648_v52 = vpop.eup %5421  ;;  %v1705_v23 = vpop.xlane.xlu1 %1704 }
 0x4bc   :  { %5435 = vpow2.f32 %v1898_v30  ;;  %v1920_v25 = vmul.f32 1.442695, %v1814_v27  ;;  %v1802_v24 = vsub.f32 %v6425_v13, %v1705_v23  ;;  %2032 = vadd.xlane.f32.xlu0 %v6648_v52 }
 0x4bd   :  { %v6652_v57 = vpop.eup %5423  ;;  %v1733_v4 = vpop.xlane.xlu0 %1732 }
 0x4be   :  { %5437 = vpow2.f32 %v1920_v25  ;;  %v1896_v26 = vmul.f32 1.442695, %v1802_v24  ;;  %v1816_v48 = vsub.f32 %v6428_v33, %v1733_v4  ;;  %2016 = vadd.xlane.f32.xlu1 %v6652_v57 }
 0x4bf   :  { %v6656_v10 = vpop.eup %5425  ;;  %v1711_v37 = vpop.xlane.xlu1 %1710 }
 0x4c0   :  { %5439 = vpow2.f32 %v1896_v26  ;;  %v1924_v59 = vmul.f32 1.442695, %v1816_v48  ;;  %v1805_v30 = vsub.f32 %v6433_v16, %v1711_v37  ;;  %2036 = vadd.xlane.f32.xlu0 %v6656_v10 }
 0x4c1   :  { %v6660_v13 = vpop.eup %5427  ;;  %v1737_v27 = vpop.xlane.xlu0 %1736 }
 0x4c2   :  { %5441 = vpow2.f32 %v1924_v59  ;;  %v1902_v23 = vmul.f32 1.442695, %v1805_v30  ;;  %v1818_v25 = vsub.f32 %v6436_v12, %v1737_v27  ;;  %2022 = vadd.xlane.f32.xlu1 %v6660_v13 }
 0x4c3   :  { %v6664_v33 = vpop.eup %5429  ;;  %v1715_v24 = vpop.xlane.xlu1 %1714 }
 0x4c4   :  { %5443 = vpow2.f32 %v1902_v23  ;;  %v1928_v4 = vmul.f32 1.442695, %v1818_v25  ;;  %v1807_v26 = vsub.f32 %v6440_v54, %v1715_v24  ;;  %2040 = vadd.xlane.f32.xlu0 %v6664_v33 }
 0x4c5   :  { %v6668_v16 = vpop.eup %5431  ;;  %v1765_v48 = vpop.xlane.xlu0 %1764 }
 0x4c6   :  { %5445 = vpow2.f32 %v1928_v4  ;;  %v1906_v37 = vmul.f32 1.442695, %v1807_v26  ;;  %v1832_v59 = vsub.f32 %v6443_v1, %v1765_v48  ;;  %2020 = vadd.xlane.f32.xlu1 %v6668_v16 }
 0x4c7   :  { %v6672_v12 = vpop.eup %5433  ;;  %v1719_v30 = vpop.xlane.xlu1 %1718 }
 0x4c8   :  { %7531 = vst [vmem:[#allocation9_spill] sm:$0xff] %v6672_v12  ;;  %5447 = vpow2.f32 %v1906_v37  ;;  %v1956_v27 = vmul.f32 1.442695, %v1832_v59  ;;  %v1809_v23 = vsub.f32 %v6447_v7, %v1719_v30  ;;  %2044 = vadd.xlane.f32.xlu0 %v6672_v12 }
 0x4c9   :  { %v6676_v54 = vpop.eup %5435  ;;  %v1769_v25 = vpop.xlane.xlu0 %1768 }
 0x4ca   :  { %5449 = vpow2.f32 %v1956_v27  ;;  %v1910_v24 = vmul.f32 1.442695, %v1809_v23  ;;  %v1834_v4 = vsub.f32 %v6450_v22, %v1769_v25  ;;  %2026 = vadd.xlane.f32.xlu1 %v6676_v54 }
 0x4cb   :  { %v6680_v1 = vpop.eup %5437  ;;  %v1723_v26 = vpop.xlane.xlu1 %1722 }
 0x4cc   :  { %7532 = vst [vmem:[#allocation10_spill] sm:$0xff] %v6680_v1  ;;  %5451 = vpow2.f32 %v1910_v24  ;;  %v1960_v48 = vmul.f32 1.442695, %v1834_v4  ;;  %v1811_v37 = vsub.f32 %v6454_v55, %v1723_v26  ;;  %2048 = vadd.xlane.f32.xlu0 %v6680_v1 }
 0x4cd   :  { %v6684_v7 = vpop.eup %5439  ;;  %v1967_v59 = vpop.xlane.xlu0 %1966 }
 0x4ce   :  { %5453 = vpow2.f32 %v1960_v48  ;;  %v1914_v30 = vmul.f32 1.442695, %v1811_v37  ;;  %2024 = vadd.xlane.f32.xlu1 %v6684_v7 }
 0x4cf   :  { %v6687_v27 = vpop.eup %5441  ;;  %v1727_v22 = vpop.xlane.xlu1 %1726 }
 0x4d0   :  { %7533 = vst [vmem:[#allocation11_spill] sm:$0xff] %v6687_v27  ;;  %5455 = vpow2.f32 %v1914_v30  ;;  %v1813_v23 = vsub.f32 %v6461_v28, %v1727_v22  ;;  %2052 = vadd.xlane.f32.xlu0 %v6687_v27 }
 0x4d1   :  { %v6691_v25 = vpop.eup %5443  ;;  %5457 = vrcp.f32 %v1967_v59  ;;  %v1965_v55 = vpop.xlane.xlu0 %1964 }
 0x4d2   :  { %v1918_v24 = vmul.f32 1.442695, %v1813_v23  ;;  %5459 = vrcp.f32 %v1965_v55  ;;  %2030 = vadd.xlane.f32.xlu1 %v6691_v25 }
 0x4d3   :  { %v6694_v4 = vpop.eup %5445  ;;  %v1731_v26 = vpop.xlane.xlu1 %1730 }
 0x4d4   :  { %7534 = vst [vmem:[#allocation12_spill] sm:$0xff] %v6694_v4  ;;  %5461 = vpow2.f32 %v1918_v24  ;;  %v1815_v48 = vsub.f32 %v6468_v21, %v1731_v26  ;;  %2056 = vadd.xlane.f32.xlu0 %v6694_v4 }
 0x4d5   :  { %v6698_v37 = vpop.eup %5447 }
 0x4d6   :  { %v1922_v28 = vmul.f32 1.442695, %v1815_v48  ;;  %2034 = vadd.xlane.f32.xlu1 %v6698_v37 }
 0x4d7   :  { %v6701_v30 = vpop.eup %5449  ;;  %v1735_v59 = vpop.xlane.xlu1 %1734 }
 0x4d8   :  { %7535 = vst [vmem:[#allocation13_spill] sm:$0xff] %v6701_v30  ;;  %5463 = vpow2.f32 %v1922_v28  ;;  %v1817_v22 = vsub.f32 %v6473_v50, %v1735_v59  ;;  %2084 = vadd.xlane.f32.xlu0 %v6701_v30 }
 0x4d9   :  { %v6705_v23 = vpop.eup %5451 }
 0x4da   :  { %v1926_v55 = vmul.f32 1.442695, %v1817_v22  ;;  %2038 = vadd.xlane.f32.xlu1 %v6705_v23 }
 0x4db   :  { %v6708_v21 = vpop.eup %5453  ;;  %v1739_v24 = vpop.xlane.xlu1 %1738 }
 0x4dc   :  { %7536 = vst [vmem:[#allocation14_spill] sm:$0xff] %v6708_v21  ;;  %5465 = vpow2.f32 %v1926_v55  ;;  %v1819_v26 = vsub.f32 %v6477_v34, %v1739_v24  ;;  %2088 = vadd.xlane.f32.xlu0 %v6708_v21  ;;  %v7539_v55 = vld [vmem:[#allocation19_spill] sm:$0xff]  ;;  %v7540_v21 = vld [vmem:[#allocation6_spill] sm:$0xff] }
 0x4dd   :  { %v6712_v48 = vpop.eup %5455 }
 0x4de   :  { %7537 = vst [vmem:[#allocation15_spill] sm:$0xff] %v6712_v48  ;;  %v5458_v28 = vpop.eup %5457  ;;  %v1930_v4 = vmul.f32 1.442695, %v1819_v26  ;;  %2042 = vadd.xlane.f32.xlu1 %v6712_v48 }
 0x4df   :  { %v5460_v50 = vpop.eup %5459  ;;  %v1767_v59 = vpop.xlane.xlu1 %1766  ;;  %v2157_v1 = vmul.f32 %v5458_v28, %v7539_v55 }
 0x4e0   :  { %5467 = vpow2.f32 %v1930_v4  ;;  %v1833_v22 = vsub.f32 %v6481_v42, %v1767_v59  ;;  %v2156_v30 = vmul.f32 %v5460_v50, %v6466_v41 }
 0x4e1   :  { %v6717_v27 = vpop.eup %5461 }
 0x4e2   :  { %7538 = vst [vmem:[#allocation16_spill] sm:$0xff] %v6717_v27  ;;  %v1958_v34 = vmul.f32 1.442695, %v1833_v22  ;;  %2046 = vadd.xlane.f32.xlu1 %v6717_v27  ;;  %5009 = vmatprep.mubr.f32.mxu1 %v2156_v30 }
 0x4e3   :  { %v1771_v24 = vpop.xlane.xlu1 %1770  ;;  %5010 = vmatmul.mubr.f32.vlgmr.msra.gmra.mxu1 %v2157_v1 }
 0x4e4   :  { %5469 = vpow2.f32 %v1958_v34  ;;  %v1835_v26 = vsub.f32 %v6486_v43, %v1771_v24  ;;  %5060 = vmatpush3.xpose.msra.mxu1 %v7540_v21 }
 0x4e5   :  { %v6723_v4 = vpop.eup %5463 }
 0x4e6   :  { %7541 = vst [vmem:[#allocation17_spill] sm:$0xff] %v6723_v4  ;;  %v1962_v42 = vmul.f32 1.442695, %v1835_v26  ;;  %2050 = vadd.xlane.f32.xlu1 %v6723_v4 }
 0x4e8   :  { %5471 = vpow2.f32 %v1962_v42 }
 0x4e9   :  { %v6726_v41 = vpop.eup %5465 }
 0x4ea   :  { %7542 = vst [vmem:[#allocation18_spill] sm:$0xff] %v6726_v41  ;;  %2054 = vadd.xlane.f32.xlu1 %v6726_v41 }
 0x4ed   :  { %v6729_v28 = vpop.eup %5467 }
 0x4ee   :  { %7543 = vst [vmem:[#allocation19_spill] sm:$0xff] %v6729_v28  ;;  %2058 = vadd.xlane.f32.xlu1 %v6729_v28 }
 0x4ef   :  { %v6742_v55 = vpop.xlane.xlu1 %2062 }
 0x4f1   :  { %v6732_v1 = vpop.eup %5469  ;;  %v6734_v30 = vpop.xlane.xlu0 %2060 }
 0x4f2   :  { %7544 = vst [vmem:[#allocation6_spill] sm:$0xff] %v6732_v1  ;;  %2086 = vadd.xlane.f32.xlu1 %v6732_v1 }
 0x4f5   :  { %v6737_v43 = vpop.eup %5471  ;;  %v1971_v21 = vpop.xlane.xlu0 %1970 }
 0x4f6   :  { %7545 = vst [vmem:[#allocation23_spill] sm:$0xff] %v6737_v43  ;;  %2090 = vadd.xlane.f32.xlu1 %v6737_v43  ;;  %5473 = vrcp.f32 %v1971_v21 }
 0x4f7   :  { %v6744_v42 = vpop.xlane.xlu1 %2066 }
 0x4f9   :  { %v1969_v50 = vpop.xlane.xlu0 %1968 }
 0x4fa   :  { %5475 = vrcp.f32 %v1969_v50 }
 0x4fd   :  { %v6740_v59 = vpop.xlane.xlu0 %2064 }
 0x4ff   :  { %v6750_v50 = vpop.xlane.xlu1 %2070 }
 0x501   :  { %v1975_v22 = vpop.xlane.xlu0 %1974 }
 0x502   :  { %5477 = vrcp.f32 %v1975_v22 }
 0x503   :  { %v5474_v24 = vpop.eup %5473 }
 0x504   :  { %v2159_v21 = vmul.f32 %v5474_v24, %v6502_v8 }
 0x505   :  { %v1973_v34 = vpop.xlane.xlu0 %1972 }
 0x506   :  { %5479 = vrcp.f32 %v1973_v34 }
 0x507   :  { %v5476_v26 = vpop.eup %5475  ;;  %v6752_v41 = vpop.xlane.xlu1 %2074 }
 0x508   :  { %v2158_v1 = vmul.f32 %v5476_v26, %v6510_v58 }
 0x509   :  { %v6747_v28 = vpop.xlane.xlu0 %2068 }
 0x50a   :  { %5012 = vmatprep.mubr.f32.mxu1 %v2158_v1 }
 0x50b   :  { %5013 = vmatmul.mubr.f32.gmra.mxu1 %v2159_v21 }
 0x50d   :  { %v1979_v43 = vpop.xlane.xlu0 %1978 }
 0x50e   :  { %5481 = vrcp.f32 %v1979_v43 }
 0x50f   :  { %v5478_v4 = vpop.eup %5477  ;;  %v6754_v27 = vpop.xlane.xlu1 %2078 }
 0x510   :  { %v2161_v8 = vmul.f32 %v5478_v4, %v6522_v5 }
 0x511   :  { %v1977_v22 = vpop.xlane.xlu0 %1976 }
 0x512   :  { %5483 = vrcp.f32 %v1977_v22 }
 0x513   :  { %v5480_v34 = vpop.eup %5479 }
 0x514   :  { %v2160_v58 = vmul.f32 %v5480_v34, %v6526_v9 }
 0x515   :  { %v6757_v26 = vpop.xlane.xlu0 %2072 }
 0x516   :  { %5015 = vmatprep.mubr.f32.mxu1 %v2160_v58 }
 0x517   :  { %v6760_v1 = vpop.xlane.xlu1 %2082  ;;  %5016 = vmatmul.mubr.f32.gmra.mxu1 %v2161_v8 }
 0x519   :  { %v1983_v24 = vpop.xlane.xlu0 %1982 }
 0x51a   :  { %5485 = vrcp.f32 %v1983_v24 }
 0x51b   :  { %v1999_v21 = vpop.xlane.xlu1 %1998  ;;  %v5482_v32 = vpop.eup %5481 }
 0x51c   :  { %v2163_v5 = vmul.f32 %v5482_v32, %v6539_v45 }
 0x51d   :  { %v1981_v43 = vpop.xlane.xlu0 %1980 }
 0x51e   :  { %5487 = vrcp.f32 %v1981_v43 }
 0x51f   :  { %v5484_v22 = vpop.eup %5483  ;;  %5489 = vrcp.f32 %v1999_v21  ;;  %v1997_v62 = vpop.xlane.xlu1 %1996 }
 0x520   :  { %5491 = vrcp.f32 %v1997_v62  ;;  %v2162_v9 = vmul.f32 %v5484_v22, %v6547_v44 }
 0x521   :  { %v6763_v34 = vpop.xlane.xlu0 %2076 }
 0x522   :  { %5018 = vmatprep.mubr.f32.mxu1 %v2162_v9 }
 0x523   :  { %v2003_v4 = vpop.xlane.xlu1 %2002  ;;  %5019 = vmatmul.mubr.f32.gmra.mxu1 %v2163_v5 }
 0x524   :  { %5493 = vrcp.f32 %v2003_v4  ;;  %v6775_v4 = vld [vmem:[%s7456_s4] sm:$0xff] }
 0x525   :  { %v1987_v58 = vpop.xlane.xlu0 %1986 }
 0x527   :  { %v2001_v8 = vpop.xlane.xlu1 %2000  ;;  %v5486_v43 = vpop.eup %5485 }
 0x528   :  { %5495 = vrcp.f32 %v2001_v8  ;;  %v2165_v45 = vmul.f32 %v5486_v43, %v6560_v6 }
 0x529   :  { %5497 = vrcp.f32 %v1987_v58  ;;  %v1985_v24 = vpop.xlane.xlu0 %1984  ;;  %v7546_v58 = vld [vmem:[#allocation5_spill] sm:$0xff] }
 0x52a   :  { %5499 = vrcp.f32 %v1985_v24 }
 0x52b   :  { %v5488_v21 = vpop.eup %5487  ;;  %v2007_v12 = vpop.xlane.xlu1 %2006 }
 0x52c   :  { %v5490_v62 = vpop.eup %5489  ;;  %v2164_v44 = vmul.f32 %v5488_v21, %v6568_v2  ;;  %5501 = vrcp.f32 %v2007_v12 }
 0x52d   :  { %v5492_v22 = vpop.eup %5491  ;;  %v6767_v48 = vpop.xlane.xlu0 %2080  ;;  %v2173_v5 = vmul.f32 %v5490_v62, %v6564_v56 }
 0x52e   :  { %5021 = vmatprep.mubr.f32.mxu1 %v2164_v44  ;;  %v2172_v32 = vmul.f32 %v5492_v22, %v6572_v40 }
 0x52f   :  { %v2005_v9 = vpop.xlane.xlu1 %2004  ;;  %5022 = vmatmul.mubr.f32.gmra.mxu1 %v2165_v45 }
 0x530   :  { %5503 = vrcp.f32 %v2005_v9  ;;  %5035 = vmatprep.mubr.f32.mxu0 %v2172_v32 }
 0x531   :  { %5036 = vmatmul.mubr.f32.vlgmr.msra.gmra.mxu0 %v2173_v5  ;;  %v1991_v2 = vpop.xlane.xlu0 %1990  ;;  %v5494_v40 = vpop.eup %5493 }
 0x532   :  { %5086 = vmatpush3.xpose.msra.mxu0 %v7546_v58  ;;  %5505 = vrcp.f32 %v1991_v2  ;;  %v2175_v62 = vmul.f32 %v5494_v40, %v6580_v39 }
 0x533   :  { %v2011_v6 = vpop.xlane.xlu1 %2010  ;;  %5137 = vmatprep.subr.mxu0 %v6775_v4 }
 0x535   :  { %v5496_v12 = vpop.eup %5495  ;;  %v1989_v8 = vpop.xlane.xlu0 %1988 }
 0x536   :  { %v5498_v24 = vpop.eup %5497  ;;  %5507 = vrcp.f32 %v1989_v8  ;;  %v2174_v56 = vmul.f32 %v5496_v12, %v6588_v38 }
 0x537   :  { %v5500_v43 = vpop.eup %5499  ;;  %5509 = vrcp.f32 %v2011_v6  ;;  %v2009_v21 = vpop.xlane.xlu1 %2008  ;;  %v2167_v45 = vmul.f32 %v5498_v24, %v6584_v36 }
 0x538   :  { %5511 = vrcp.f32 %v2009_v21  ;;  %5038 = vmatprep.mubr.f32.mxu0 %v2174_v56  ;;  %v2166_v44 = vmul.f32 %v5500_v43, %v6592_v3 }
 0x539   :  { %5039 = vmatmul.mubr.f32.gmra.mxu0 %v2175_v62  ;;  %v1995_v22 = vpop.xlane.xlu0 %1994  ;;  %v5502_v9 = vpop.eup %5501 }
 0x53a   :  { %5024 = vmatprep.mubr.f32.mxu1 %v2166_v44  ;;  %5513 = vrcp.f32 %v1995_v22  ;;  %v2177_v58 = vmul.f32 %v5502_v9, %v6596_v0 }
 0x53b   :  { %v2015_v32 = vpop.xlane.xlu1 %2014  ;;  %5025 = vmatmul.mubr.f32.gmra.mxu1 %v2167_v45 }
 0x53d   :  { %v5504_v5 = vpop.eup %5503  ;;  %v1993_v38 = vpop.xlane.xlu0 %1992 }
 0x53e   :  { %5515 = vrcp.f32 %v1993_v38  ;;  %v2176_v2 = vmul.f32 %v5504_v5, %v6604_v11 }
 0x53f   :  { %5517 = vrcp.f32 %v2015_v32  ;;  %v2013_v39 = vpop.xlane.xlu1 %2012  ;;  %v5506_v6 = vpop.eup %5505 }
 0x540   :  { %5519 = vrcp.f32 %v2013_v39  ;;  %5041 = vmatprep.mubr.f32.mxu0 %v2176_v2  ;;  %v2169_v43 = vmul.f32 %v5506_v6, %v6608_v18 }
 0x541   :  { %5042 = vmatmul.mubr.f32.gmra.mxu0 %v2177_v58  ;;  %v2029_v3 = vpop.xlane.xlu0 %2028 }
 0x542   :  { %5521 = vrcp.f32 %v2029_v3 }
 0x543   :  { %v5508_v36 = vpop.eup %5507  ;;  %v2019_v40 = vpop.xlane.xlu1 %2018 }
 0x544   :  { %v5510_v12 = vpop.eup %5509  ;;  %v2168_v8 = vmul.f32 %v5508_v36, %v6616_v51  ;;  %5523 = vrcp.f32 %v2019_v40 }
 0x545   :  { %v5512_v24 = vpop.eup %5511  ;;  %v2033_v56 = vpop.xlane.xlu0 %2032  ;;  %v2179_v21 = vmul.f32 %v5510_v12, %v6612_v29 }
 0x546   :  { %5027 = vmatprep.mubr.f32.mxu1 %v2168_v8  ;;  %v2178_v11 = vmul.f32 %v5512_v24, %v6620_v53 }
 0x547   :  { %v2017_v0 = vpop.xlane.xlu1 %2016  ;;  %5028 = vmatmul.mubr.f32.gmra.mxu1 %v2169_v43  ;;  %v5514_v44 = vpop.eup %5513 }
 0x548   :  { %5525 = vrcp.f32 %v2017_v0  ;;  %5044 = vmatprep.mubr.f32.mxu0 %v2178_v11  ;;  %v2171_v18 = vmul.f32 %v5514_v44, %v6624_v49 }
 0x549   :  { %5045 = vmatmul.mubr.f32.gmra.mxu0 %v2179_v21  ;;  %v2037_v62 = vpop.xlane.xlu0 %2036 }
 0x54b   :  { %v5516_v22 = vpop.eup %5515  ;;  %v2023_v45 = vpop.xlane.xlu1 %2022 }
 0x54c   :  { %v5518_v51 = vpop.eup %5517  ;;  %v2170_v32 = vmul.f32 %v5516_v22, %v6632_v61  ;;  %5527 = vrcp.f32 %v2023_v45 }
 0x54d   :  { %v5520_v9 = vpop.eup %5519  ;;  %v2041_v5 = vpop.xlane.xlu0 %2040  ;;  %v2181_v2 = vmul.f32 %v5518_v51, %v6628_v46 }
 0x54e   :  { %5030 = vmatprep.mubr.f32.mxu1 %v2170_v32  ;;  %v2180_v53 = vmul.f32 %v5520_v9, %v6636_v15 }
 0x54f   :  { %v5522_v38 = vpop.eup %5521  ;;  %v2021_v29 = vpop.xlane.xlu1 %2020  ;;  %5031 = vmatmul.mubr.f32.gmra.mxu1 %v2171_v18 }
 0x550   :  { %5529 = vrcp.f32 %v2021_v29  ;;  %5047 = vmatprep.mubr.f32.mxu0 %v2180_v53  ;;  %v2188_v39 = vmul.f32 %v5522_v38, %v6640_v47  ;;  %v7547_v29 = vld [vmem:[#allocation15_spill] sm:$0xff] }
 0x551   :  { %5048 = vmatmul.mubr.f32.gmra.mxu0 %v2181_v2  ;;  %v5524_v58 = vpop.eup %5523  ;;  %v2045_v3 = vpop.xlane.xlu0 %2044  ;;  %5531 = vrcp.f32 %v6734_v30 }
 0x552   :  { %5061 = vmatprep.mubr.f32.mxu1 %v2188_v39  ;;  %v2183_v36 = vmul.f32 %v5524_v58, %v6644_v20  ;;  %v7548_v39 = vld [vmem:[#allocation9_spill] sm:$0xff]  ;;  %v7549_v58 = vld [vmem:[#allocation20_spill] sm:$0xff] }
 0x553   :  { %v2027_v61 = vpop.xlane.xlu1 %2026 }
 0x554   :  { %5533 = vrcp.f32 %v2027_v61 }
 0x555   :  { %v5526_v49 = vpop.eup %5525  ;;  %v2049_v46 = vpop.xlane.xlu0 %2048 }
 0x556   :  { %v2182_v15 = vmul.f32 %v5526_v49, %v6652_v57 }
 0x557   :  { %v2025_v6 = vpop.xlane.xlu1 %2024 }
 0x558   :  { %5535 = vrcp.f32 %v2025_v6  ;;  %5050 = vmatprep.mubr.f32.mxu0 %v2182_v15 }
 0x559   :  { %5537 = vrcp.f32 %v6742_v55  ;;  %5051 = vmatmul.mubr.f32.gmra.mxu0 %v2183_v36  ;;  %v5528_v40 = vpop.eup %5527  ;;  %v2053_v55 = vpop.xlane.xlu0 %2052 }
 0x55a   :  { %5539 = vrcp.f32 %v6740_v59  ;;  %v2185_v30 = vmul.f32 %v5528_v40, %v6660_v13 }
 0x55b   :  { %5541 = vrcp.f32 %v2033_v56  ;;  %v2031_v47 = vpop.xlane.xlu1 %2030 }
 0x55c   :  { %5543 = vrcp.f32 %v2031_v47  ;;  %v7551_v47 = vld [vmem:[#allocation16_spill] sm:$0xff] }
 0x55d   :  { %v5530_v12 = vpop.eup %5529  ;;  %5545 = vrcp.f32 %v6744_v42  ;;  %v2057_v13 = vpop.xlane.xlu0 %2056 }
 0x55e   :  { %5547 = vrcp.f32 %v6747_v28  ;;  %v2184_v57 = vmul.f32 %v5530_v12, %v6668_v16  ;;  %v5532_v59 = vpop.eup %5531 }
 0x55f   :  { %5549 = vrcp.f32 %v2037_v62  ;;  %v2035_v20 = vpop.xlane.xlu1 %2034  ;;  %v2204_v11 = vmul.f32 %v5532_v59, %v6498_v60 }
 0x560   :  { %5551 = vrcp.f32 %v2035_v20  ;;  %5053 = vmatprep.mubr.f32.mxu0 %v2184_v57  ;;  %v7552_v20 = vld [vmem:[#allocation10_spill] sm:$0xff] }
 0x561   :  { %5553 = vrcp.f32 %v6750_v50  ;;  %5054 = vmatmul.mubr.f32.gmra.mxu0 %v2185_v30  ;;  %v5534_v42 = vpop.eup %5533  ;;  %v2085_v22 = vpop.xlane.xlu0 %2084 }
 0x562   :  { %5555 = vrcp.f32 %v6757_v26  ;;  %v2187_v43 = vmul.f32 %v5534_v42, %v6676_v54  ;;  %v7554_v42 = vld [vmem:[#allocation8_spill] sm:$0xff] }
 0x563   :  { %5557 = vrcp.f32 %v2041_v5  ;;  %v2039_v8 = vpop.xlane.xlu1 %2038 }
 0x564   :  { %5559 = vrcp.f32 %v2039_v8 }
 0x565   :  { %v5536_v28 = vpop.eup %5535  ;;  %5561 = vrcp.f32 %v6752_v41  ;;  %v2089_v15 = vpop.xlane.xlu0 %2088 }
 0x566   :  { %v5538_v16 = vpop.eup %5537  ;;  %5563 = vrcp.f32 %v6763_v34  ;;  %v2186_v24 = vmul.f32 %v5536_v28, %v6684_v7 }
 0x567   :  { %v5540_v56 = vpop.eup %5539  ;;  %5565 = vrcp.f32 %v2045_v3  ;;  %v2043_v50 = vpop.xlane.xlu1 %2042  ;;  %v2205_v62 = vmul.f32 %v5538_v16, %v6494_v63 }
 0x568   :  { %v5542_v26 = vpop.eup %5541  ;;  %5567 = vrcp.f32 %v2043_v50  ;;  %5056 = vmatprep.mubr.f32.mxu0 %v2186_v24  ;;  %v2206_v60 = vmul.f32 %v5540_v56, %v6514_v35  ;;  %v7556_v50 = vld [vmem:[#allocation11_spill] sm:$0xff] }
 0x569   :  { %v5544_v0 = vpop.eup %5543  ;;  %5569 = vrcp.f32 %v6754_v27  ;;  %5057 = vmatmul.mubr.f32.gmra.mxu0 %v2187_v43  ;;  %v2190_v54 = vmul.f32 %v5542_v26, %v6648_v52  ;;  %v7557_v26 = vld [vmem:[#allocation22_spill] sm:$0xff] }
 0x56a   :  { %v5546_v41 = vpop.eup %5545  ;;  %5571 = vrcp.f32 %v6767_v48  ;;  %5087 = vmatprep.mubr.f32.mxu0 %v2204_v11  ;;  %v2189_v7 = vmul.f32 %v5544_v0, %v6691_v25 }
 0x56b   :  { %v5548_v34 = vpop.eup %5547  ;;  %5573 = vrcp.f32 %v2049_v46  ;;  %v2047_v21 = vpop.xlane.xlu1 %2046  ;;  %v2207_v51 = vmul.f32 %v5546_v41, %v6506_v14  ;;  %v2801_v14 = vld [vmem:[%s7456_s4 + $0x8] sm:$0xff]  ;;  %v7558_v41 = vld [vmem:[#allocation13_spill] sm:$0xff] }
 0x56c   :  { %v5550_v44 = vpop.eup %5549  ;;  %5575 = vrcp.f32 %v2047_v21  ;;  %5062 = vmatmul.mubr.f32.vlgmr.msra.gmra.mxu1 %v2189_v7  ;;  %5111 = vmatprep.subr.mxu1 %v2801_v14  ;;  %v7559_v21 = vld [vmem:[#allocation18_spill] sm:$0xff] }
 0x56d   :  { %v5552_v27 = vpop.eup %5551  ;;  %5577 = vrcp.f32 %v6760_v1  ;;  %5064 = vmatprep.mubr.f32.mxu1 %v2190_v54  ;;  %5088 = vmatmul.mubr.f32.vlgmr.msra.gmra.mxu0 %v2205_v62  ;;  %v2192_v45 = vmul.f32 %v5550_v44, %v6656_v10  ;;  %v2208_v1 = vmul.f32 %v5548_v34, %v6534_v19  ;;  %v7560_v62 = vld [vmem:[#allocation12_spill] sm:$0xff] }
 0x56e   :  { %v5554_v48 = vpop.eup %5553  ;;  %5579 = vrcp.f32 %v2053_v55  ;;  %5090 = vmatprep.mubr.f32.mxu0 %v2206_v60  ;;  %v2191_v25 = vmul.f32 %v5552_v27, %v6698_v37  ;;  %5138 = vmatpush3.msra.mxu0 %v6775_v4  ;;  %v7553_v55 = vld [vmem:[#allocation21_spill] sm:$0xff]  ;;  %v7561_v60 = vld [vmem:[#allocation19_spill] sm:$0xff] }
 0x56f   :  { %v5556_v52 = vpop.eup %5555  ;;  %5581 = vrcp.f32 %v2085_v22  ;;  %v2051_v63 = vpop.xlane.xlu1 %2050  ;;  %v2209_v10 = vmul.f32 %v5554_v48, %v6518_v17  ;;  %5112 = vmatpush3.msra.mxu1 %v2801_v14 }
 0x570   :  { %v5558_v35 = vpop.eup %5557  ;;  %5583 = vrcp.f32 %v2051_v63  ;;  %5065 = vmatmul.mubr.f32.gmra.mxu1 %v2191_v25  ;;  %v2210_v19 = vmul.f32 %v5556_v52, %v6552_v31  ;;  %v7550_v31 = vld [vmem:[#allocation7_spill] sm:$0xff]  ;;  %v7562_v52 = vld [vmem:[#allocation6_spill] sm:$0xff] }
 0x571   :  { %v5560_v32 = vpop.eup %5559  ;;  %5067 = vmatprep.mubr.f32.mxu1 %v2192_v45  ;;  %5091 = vmatmul.mubr.f32.gmra.mxu0 %v2207_v51  ;;  %5585 = vrcp.f32 %v2057_v13  ;;  %v2194_v5 = vmul.f32 %v5558_v35, %v6664_v33  ;;  %v7555_v13 = vld [vmem:[#allocation17_spill] sm:$0xff]  ;;  %v7563_v45 = vld [vmem:[#allocation14_spill] sm:$0xff] }
 0x572   :  { %v5562_v9 = vpop.eup %5561  ;;  %5093 = vmatprep.mubr.f32.mxu0 %v2208_v1  ;;  %v2193_v37 = vmul.f32 %v5560_v32, %v6705_v23  ;;  %v7564_v1 = vld [vmem:[#allocation23_spill] sm:$0xff] }
 0x573   :  { %v5564_v4 = vpop.eup %5563  ;;  %v2055_v18 = vpop.xlane.xlu1 %2054  ;;  %v2211_v3 = vmul.f32 %v5562_v9, %v7549_v58  ;;  %v2802_v9 = vld [vmem:[%s7456_s4 + $0x10] sm:$0xff] }
 0x574   :  { %v5566_v53 = vpop.eup %5565  ;;  %5587 = vrcp.f32 %v2055_v18  ;;  %5068 = vmatmul.mubr.f32.gmra.mxu1 %v2193_v37  ;;  %v2212_v6 = vmul.f32 %v5564_v4, %v7550_v31  ;;  %v2803_v37 = vld [vmem:[%s7456_s4 + $0x18] sm:$0xff]  ;;  %5163 = vmatprep.subr.mxu1 %v2802_v9 }
 0x575   :  { %v5568_v38 = vpop.eup %5567  ;;  %5070 = vmatprep.mubr.f32.mxu1 %v2194_v5  ;;  %5094 = vmatmul.mubr.f32.gmra.mxu0 %v2209_v10  ;;  %v2196_v61 = vmul.f32 %v5566_v53, %v7548_v39 }
 0x576   :  { %v5570_v23 = vpop.eup %5569  ;;  %5096 = vmatprep.mubr.f32.mxu0 %v2210_v19  ;;  %v2195_v2 = vmul.f32 %v5568_v38, %v7547_v29  ;;  %5189 = vmatprep.subr.mxu0 %v2803_v37 }
 0x577   :  { %v5572_v33 = vpop.eup %5571  ;;  %v2059_v17 = vpop.xlane.xlu1 %2058  ;;  %v2213_v59 = vmul.f32 %v5570_v23, %v7553_v55 }
 0x578   :  { %v5574_v49 = vpop.eup %5573  ;;  %5589 = vrcp.f32 %v2059_v17  ;;  %5071 = vmatmul.mubr.f32.gmra.mxu1 %v2195_v2  ;;  %v2214_v28 = vmul.f32 %v5572_v33, %v7554_v42 }
 0x579   :  { %v5576_v36 = vpop.eup %5575  ;;  %5073 = vmatprep.mubr.f32.mxu1 %v2196_v61  ;;  %5097 = vmatmul.mubr.f32.gmra.mxu0 %v2211_v3  ;;  %5591 = vrcp.f32 %v2089_v15  ;;  %v2198_v30 = vmul.f32 %v5574_v49, %v7552_v20 }
 0x57a   :  { %v5578_v46 = vpop.eup %5577  ;;  %5099 = vmatprep.mubr.f32.mxu0 %v2212_v6  ;;  %v2197_v40 = vmul.f32 %v5576_v36, %v7551_v47 }
 0x57b   :  { %v5580_v12 = vpop.eup %5579  ;;  %v2087_v57 = vpop.xlane.xlu1 %2086  ;;  %v2215_v11 = vmul.f32 %v5578_v46, %v7557_v26 }
 0x57c   :  { %v5582_v8 = vpop.eup %5581  ;;  %5593 = vrcp.f32 %v2087_v57  ;;  %5074 = vmatmul.mubr.f32.gmra.mxu1 %v2197_v40  ;;  %v2200_v43 = vmul.f32 %v5580_v12, %v7556_v50 }
 0x57d   :  { %v5584_v16 = vpop.eup %5583  ;;  %5076 = vmatprep.mubr.f32.mxu1 %v2198_v30  ;;  %5100 = vmatmul.mubr.f32.gmra.mxu0 %v2213_v59  ;;  %v2216_v7 = vmul.f32 %v5582_v8, %v7558_v41 }
 0x57e   :  { %5102 = vmatprep.mubr.f32.mxu0 %v2214_v28  ;;  %v2199_v24 = vmul.f32 %v5584_v16, %v7555_v13  ;;  %v5586_v0 = vpop.eup %5585 }
 0x57f   :  { %v2091_v56 = vpop.xlane.xlu1 %2090  ;;  %v2202_v44 = vmul.f32 %v5586_v0, %v7560_v62 }
 0x580   :  { %5595 = vrcp.f32 %v2091_v56  ;;  %5077 = vmatmul.mubr.f32.gmra.mxu1 %v2199_v24 }
 0x581   :  { %v5588_v34 = vpop.eup %5587  ;;  %5079 = vmatprep.mubr.f32.mxu1 %v2200_v43  ;;  %5103 = vmatmul.mubr.f32.gmra.mxu0 %v2215_v11 }
 0x582   :  { %5105 = vmatprep.mubr.f32.mxu0 %v2216_v7  ;;  %v2201_v54 = vmul.f32 %v5588_v34, %v7559_v21 }
 0x584   :  { %5080 = vmatmul.mubr.f32.gmra.mxu1 %v2201_v54 }
 0x585   :  { %v5590_v22 = vpop.eup %5589  ;;  %5082 = vmatprep.mubr.f32.mxu1 %v2202_v44 }
 0x586   :  { %v2203_v27 = vmul.f32 %v5590_v22, %v7561_v60  ;;  %v5592_v48 = vpop.eup %5591 }
 0x587   :  { %v2218_v51 = vmul.f32 %v5592_v48, %v7563_v45 }
 0x588   :  { %5083 = vmatmul.mubr.f32.gmra.mxu1 %v2203_v27 }
 0x589   :  { %v5594_v25 = vpop.eup %5593 }
 0x58a   :  { %v2217_v63 = vmul.f32 %v5594_v25, %v7562_v52 }
 0x58c   :  { %5106 = vmatmul.mubr.f32.gmra.mxu0 %v2217_v63 }
 0x58d   :  { %v5596_v35 = vpop.eup %5595  ;;  %5108 = vmatprep.mubr.f32.mxu0 %v2218_v51 }
 0x58e   :  { %v2219_v32 = vmul.f32 %v5596_v35, %v7564_v1 }
 0x590   :  { %5109 = vmatmul.mubr.f32.gmra.mxu0 %v2219_v32 }
 0x5a3   :  { %v5011_v4 = vpop.f32.mrf.mxu1 }
 0x5a5   :  { %v2286_v18 = vpop.f32.mrf.mxu1 }
 0x5a6   :  { %5139 = vmatprep.mubr.msk.f32.mxu0 %vm679_vm1, %v2286_v18 }
 0x5a7   :  { %5140 = vmatmul.mubr.msk.f32.vlgmr.msra.gmra.mxu0 %vm679_vm1, %v5011_v4 }
 0x5a8   :  { %5190 = vmatpush3.msra.mxu0 %v2803_v37 }
 0x5cb   :  { %v5014_v5 = vpop.f32.mrf.mxu1 }
 0x5cd   :  { %v2296_v10 = vpop.f32.mrf.mxu1 }
 0x5ce   :  { %5142 = vmatprep.mubr.msk.f32.mxu0 %vm679_vm1, %v2296_v10 }
 0x5cf   :  { %5143 = vmatmul.mubr.msk.f32.gmra.mxu0 %vm679_vm1, %v5014_v5 }
 0x5d7   :  { %v5017_v14 = vpop.f32.mrf.mxu1 }
 0x5d9   :  { %v2306_v53 = vpop.f32.mrf.mxu1 }
 0x5da   :  { %5145 = vmatprep.mubr.msk.f32.mxu0 %vm679_vm1, %v2306_v53 }
 0x5db   :  { %5146 = vmatmul.mubr.msk.f32.gmra.mxu0 %vm679_vm1, %v5017_v14 }
 0x5e3   :  { %v5020_v19 = vpop.f32.mrf.mxu1 }
 0x5e5   :  { %v2316_v38 = vpop.f32.mrf.mxu1 }
 0x5e6   :  { %5148 = vmatprep.mubr.msk.f32.mxu0 %vm679_vm1, %v2316_v38 }
 0x5e7   :  { %5149 = vmatmul.mubr.msk.f32.gmra.mxu0 %vm679_vm1, %v5020_v19 }
 0x5ef   :  { %v5023_v23 = vpop.f32.mrf.mxu1 }
 0x5f1   :  { %v2326_v29 = vpop.f32.mrf.mxu1  ;;  %v5037_v2 = vpop.f32.mrf.mxu0 }
 0x5f2   :  { %5151 = vmatprep.mubr.msk.f32.mxu0 %vm679_vm1, %v2326_v29 }
 0x5f3   :  { %v2431_v33 = vpop.f32.mrf.mxu0  ;;  %5152 = vmatmul.mubr.msk.f32.gmra.mxu0 %vm679_vm1, %v5023_v23 }
 0x5f4   :  { %5113 = vmatprep.mubr.msk.f32.mxu1 %vm679_vm1, %v2431_v33 }
 0x5f5   :  { %5114 = vmatmul.mubr.msk.f32.vlgmr.msra.gmra.mxu1 %vm679_vm1, %v5037_v2 }
 0x5f6   :  { %5164 = vmatpush3.msra.mxu1 %v2802_v9 }
 0x5f9   :  { %v5040_v17 = vpop.f32.mrf.mxu0 }
 0x5fb   :  { %v5026_v39 = vpop.f32.mrf.mxu1  ;;  %v2441_v61 = vpop.f32.mrf.mxu0 }
 0x5fc   :  { %5116 = vmatprep.mubr.msk.f32.mxu1 %vm679_vm1, %v2441_v61 }
 0x5fd   :  { %v2336_v58 = vpop.f32.mrf.mxu1  ;;  %5117 = vmatmul.mubr.msk.f32.gmra.mxu1 %vm679_vm1, %v5040_v17 }
 0x5fe   :  { %5154 = vmatprep.mubr.msk.f32.mxu0 %vm679_vm1, %v2336_v58 }
 0x5ff   :  { %5155 = vmatmul.mubr.msk.f32.gmra.mxu0 %vm679_vm1, %v5026_v39 }
 0x601   :  { %v5043_v3 = vpop.f32.mrf.mxu0 }
 0x603   :  { %v2451_v49 = vpop.f32.mrf.mxu0 }
 0x604   :  { %5119 = vmatprep.mubr.msk.f32.mxu1 %vm679_vm1, %v2451_v49 }
 0x605   :  { %5120 = vmatmul.mubr.msk.f32.gmra.mxu1 %vm679_vm1, %v5043_v3 }
 0x607   :  { %v5029_v15 = vpop.f32.mrf.mxu1 }
 0x609   :  { %v2346_v31 = vpop.f32.mrf.mxu1  ;;  %v5046_v6 = vpop.f32.mrf.mxu0 }
 0x60a   :  { %5157 = vmatprep.mubr.msk.f32.mxu0 %vm679_vm1, %v2346_v31 }
 0x60b   :  { %v2461_v36 = vpop.f32.mrf.mxu0  ;;  %5158 = vmatmul.mubr.msk.f32.gmra.mxu0 %vm679_vm1, %v5029_v15 }
 0x60c   :  { %5122 = vmatprep.mubr.msk.f32.mxu1 %vm679_vm1, %v2461_v36 }
 0x60d   :  { %5123 = vmatmul.mubr.msk.f32.gmra.mxu1 %vm679_vm1, %v5046_v6 }
 0x60f   :  { %v5032_v46 = vpop.f32.mrf.mxu1 }
 0x611   :  { %v2356_v47 = vpop.f32.mrf.mxu1  ;;  %v5049_v40 = vpop.f32.mrf.mxu0 }
 0x612   :  { %5160 = vmatprep.mubr.msk.f32.mxu0 %vm679_vm1, %v2356_v47 }
 0x613   :  { %v2471_v12 = vpop.f32.mrf.mxu0  ;;  %5161 = vmatmul.mubr.msk.f32.gmra.mxu0 %vm679_vm1, %v5032_v46 }
 0x614   :  { %5125 = vmatprep.mubr.msk.f32.mxu1 %vm679_vm1, %v2471_v12 }
 0x615   :  { %5126 = vmatmul.mubr.msk.f32.gmra.mxu1 %vm679_vm1, %v5049_v40 }
 0x619   :  { %v5052_v57 = vpop.f32.mrf.mxu0 }
 0x61b   :  { %v2481_v20 = vpop.f32.mrf.mxu0 }
 0x61c   :  { %5128 = vmatprep.mubr.msk.f32.mxu1 %vm679_vm1, %v2481_v20 }
 0x61d   :  { %5129 = vmatmul.mubr.msk.f32.gmra.mxu1 %vm679_vm1, %v5052_v57 }
 0x621   :  { %v5055_v30 = vpop.f32.mrf.mxu0 }
 0x623   :  { %v2491_v55 = vpop.f32.mrf.mxu0 }
 0x624   :  { %5131 = vmatprep.mubr.msk.f32.mxu1 %vm679_vm1, %v2491_v55 }
 0x625   :  { %5132 = vmatmul.mubr.msk.f32.gmra.mxu1 %vm679_vm1, %v5055_v30 }
 0x629   :  { %v5058_v59 = vpop.f32.mrf.mxu0 }
 0x62b   :  { %v2501_v8 = vpop.f32.mrf.mxu0 }
 0x62c   :  { %v5063_v42 = vpop.f32.mrf.mxu1  ;;  %5134 = vmatprep.mubr.msk.f32.mxu1 %vm679_vm1, %v2501_v8 }
 0x62d   :  { %v5089_v28 = vpop.f32.mrf.mxu0  ;;  %5135 = vmatmul.mubr.msk.f32.gmra.mxu1 %vm679_vm1, %v5058_v59 }
 0x62e   :  { %v2576_v16 = vpop.f32.mrf.mxu1 }
 0x62f   :  { %v2721_v13 = vpop.f32.mrf.mxu0  ;;  %5165 = vmatprep.mubr.msk.f32.mxu1 %vm679_vm1, %v2576_v16 }
 0x630   :  { %v5066_v24 = vpop.f32.mrf.mxu1  ;;  %5191 = vmatprep.mubr.msk.f32.mxu0 %vm679_vm1, %v2721_v13 }
 0x631   :  { %v5092_v56 = vpop.f32.mrf.mxu0  ;;  %5166 = vmatmul.mubr.msk.f32.vlgmr.msra.gmra.mxu1 %vm679_vm1, %v5063_v42  ;;  %5192 = vmatmul.mubr.msk.f32.vlgmr.msra.gmra.mxu0 %vm679_vm1, %v5089_v28 }
 0x632   :  { %v2586_v50 = vpop.f32.mrf.mxu1 }
 0x633   :  { %v2731_v43 = vpop.f32.mrf.mxu0  ;;  %5168 = vmatprep.mubr.msk.f32.mxu1 %vm679_vm1, %v2586_v50 }
 0x634   :  { %v5069_v26 = vpop.f32.mrf.mxu1  ;;  %5194 = vmatprep.mubr.msk.f32.mxu0 %vm679_vm1, %v2731_v43 }
 0x635   :  { %v5095_v11 = vpop.f32.mrf.mxu0  ;;  %5169 = vmatmul.mubr.msk.f32.gmra.mxu1 %vm679_vm1, %v5066_v24  ;;  %5195 = vmatmul.mubr.msk.f32.gmra.mxu0 %vm679_vm1, %v5092_v56 }
 0x636   :  { %v2596_v0 = vpop.f32.mrf.mxu1 }
 0x637   :  { %v2741_v41 = vpop.f32.mrf.mxu0  ;;  %5171 = vmatprep.mubr.msk.f32.mxu1 %vm679_vm1, %v2596_v0  ;;  %v6952_v0 = vld [vmem:[%s7457_s5] ss:$0 sm:$0xff] }
 0x638   :  { %v5072_v7 = vpop.f32.mrf.mxu1  ;;  %5197 = vmatprep.mubr.msk.f32.mxu0 %vm679_vm1, %v2741_v41 }
 0x639   :  { %v5098_v34 = vpop.f32.mrf.mxu0  ;;  %5172 = vmatmul.mubr.msk.f32.gmra.mxu1 %vm679_vm1, %v5069_v26  ;;  %5198 = vmatmul.mubr.msk.f32.gmra.mxu0 %vm679_vm1, %v5095_v11 }
 0x63a   :  { %v2606_v21 = vpop.f32.mrf.mxu1 }
 0x63b   :  { %v2751_v54 = vpop.f32.mrf.mxu0  ;;  %5174 = vmatprep.mubr.msk.f32.mxu1 %vm679_vm1, %v2606_v21  ;;  %v5661_v21 = vld [vmem:[%s7452_s0 + $0x8] sm:$0xff] }
 0x63c   :  { %v5075_v62 = vpop.f32.mrf.mxu1  ;;  %5200 = vmatprep.mubr.msk.f32.mxu0 %vm679_vm1, %v2751_v54 }
 0x63d   :  { %v5101_v44 = vpop.f32.mrf.mxu0  ;;  %5175 = vmatmul.mubr.msk.f32.gmra.mxu1 %vm679_vm1, %v5072_v7  ;;  %5201 = vmatmul.mubr.msk.f32.gmra.mxu0 %vm679_vm1, %v5098_v34 }
 0x63e   :  { %v2616_v22 = vpop.f32.mrf.mxu1 }
 0x63f   :  { %v2761_v60 = vpop.f32.mrf.mxu0  ;;  %5177 = vmatprep.mubr.msk.f32.mxu1 %vm679_vm1, %v2616_v22 }
 0x640   :  { %v5078_v27 = vpop.f32.mrf.mxu1  ;;  %5203 = vmatprep.mubr.msk.f32.mxu0 %vm679_vm1, %v2761_v60 }
 0x641   :  { %v5104_v48 = vpop.f32.mrf.mxu0  ;;  %5178 = vmatmul.mubr.msk.f32.gmra.mxu1 %vm679_vm1, %v5075_v62  ;;  %5204 = vmatmul.mubr.msk.f32.gmra.mxu0 %vm679_vm1, %v5101_v44 }
 0x642   :  { %v2626_v25 = vpop.f32.mrf.mxu1 }
 0x643   :  { %v2771_v52 = vpop.f32.mrf.mxu0  ;;  %5180 = vmatprep.mubr.msk.f32.mxu1 %vm679_vm1, %v2626_v25  ;;  %v5662_v25 = vld [vmem:[%s7452_s0] sm:$0xff] }
 0x644   :  { %v5081_v63 = vpop.f32.mrf.mxu1  ;;  %5206 = vmatprep.mubr.msk.f32.mxu0 %vm679_vm1, %v2771_v52 }
 0x645   :  { %5181 = vmatmul.mubr.msk.f32.gmra.mxu1 %vm679_vm1, %v5078_v27  ;;  %5207 = vmatmul.mubr.msk.f32.gmra.mxu0 %vm679_vm1, %v5104_v48 }
 0x646   :  { %v2636_v45 = vpop.f32.mrf.mxu1 }
 0x647   :  { %5183 = vmatprep.mubr.msk.f32.mxu1 %vm679_vm1, %v2636_v45 }
 0x648   :  { %v5084_v51 = vpop.f32.mrf.mxu1 }
 0x649   :  { %5184 = vmatmul.mubr.msk.f32.gmra.mxu1 %vm679_vm1, %v5081_v63 }
 0x64a   :  { %v2646_v35 = vpop.f32.mrf.mxu1 }
 0x64b   :  { %5186 = vmatprep.mubr.msk.f32.mxu1 %vm679_vm1, %v2646_v35 }
 0x64c   :  { %v5107_v1 = vpop.f32.mrf.mxu0 }
 0x64d   :  { %5187 = vmatmul.mubr.msk.f32.gmra.mxu1 %vm679_vm1, %v5084_v51 }
 0x64e   :  { %v2781_v32 = vpop.f32.mrf.mxu0 }
 0x64f   :  { %5209 = vmatprep.mubr.msk.f32.mxu0 %vm679_vm1, %v2781_v32 }
 0x650   :  { %v5110_v9 = vpop.f32.mrf.mxu0  ;;  %5210 = vmatmul.mubr.msk.f32.gmra.mxu0 %vm679_vm1, %v5107_v1 }
 0x652   :  { %v2791_v37 = vpop.f32.mrf.mxu0 }
 0x653   :  { %5212 = vmatprep.mubr.msk.f32.mxu0 %vm679_vm1, %v2791_v37 }
 0x654   :  { %5213 = vmatmul.mubr.msk.f32.gmra.mxu0 %vm679_vm1, %v5110_v9  ;;  %v5663_v9 = vld [vmem:[%s7452_s0 + $0x18] sm:$0xff] }
 0x667   :  { %v5141_v4 = vpop.f32.mrf.mxu0 }
 0x669   :  { %v3111_v5 = vpop.f32.mrf.mxu0 }
 0x68f   :  { %v5144_v10 = vpop.f32.mrf.mxu0 }
 0x691   :  { %v3121_v19 = vpop.f32.mrf.mxu0 }
 0x69b   :  { %v5147_v38 = vpop.f32.mrf.mxu0 }
 0x69d   :  { %v3131_v2 = vpop.f32.mrf.mxu0 }
 0x6a7   :  { %v5150_v33 = vpop.f32.mrf.mxu0 }
 0x6a9   :  { %v3141_v61 = vpop.f32.mrf.mxu0 }
 0x6b3   :  { %v6917_v58 = vpop.f32.mrf.mxu0 }
 0x6b5   :  { %v5115_v18 = vpop.f32.mrf.mxu1  ;;  %v6921_v15 = vpop.f32.mrf.mxu0 }
 0x6b6   :  { %v3117_v42 = vadd.f32 %v5141_v4, %v5115_v18 }
 0x6b7   :  { %v2918_v14 = vpop.f32.mrf.mxu1 }
 0x6b8   :  { %v3112_v13 = vadd.f32 %v3111_v5, %v2918_v14 }
 0x6bd   :  { %v5118_v53 = vpop.f32.mrf.mxu1 }
 0x6be   :  { %v3127_v43 = vadd.f32 %v5144_v10, %v5118_v53 }
 0x6bf   :  { %v2928_v23 = vpop.f32.mrf.mxu1  ;;  %v6923_v31 = vpop.f32.mrf.mxu0 }
 0x6c0   :  { %v3122_v34 = vadd.f32 %v3121_v19, %v2928_v23 }
 0x6c1   :  { %v6929_v46 = vpop.f32.mrf.mxu0 }
 0x6c5   :  { %v5121_v29 = vpop.f32.mrf.mxu1 }
 0x6c6   :  { %v3137_v22 = vadd.f32 %v5147_v38, %v5121_v29  ;;  %v5664_v38 = vld [vmem:[%s7452_s0 + $0x10] sm:$0xff] }
 0x6c7   :  { %v2938_v17 = vpop.f32.mrf.mxu1 }
 0x6c8   :  { %v3132_v51 = vadd.f32 %v3131_v2, %v2938_v17 }
 0x6cb   :  { %v6931_v47 = vpop.f32.mrf.mxu0 }
 0x6cd   :  { %v5124_v39 = vpop.f32.mrf.mxu1  ;;  %v6937_v57 = vpop.f32.mrf.mxu0 }
 0x6ce   :  { %v3147_v5 = vadd.f32 %v5150_v33, %v5124_v39 }
 0x6cf   :  { %v2948_v3 = vpop.f32.mrf.mxu1 }
 0x6d0   :  { %v3142_v17 = vadd.f32 %v3141_v61, %v2948_v3 }
 0x6d3   :  { %v6939_v20 = vpop.f32.mrf.mxu0 }
 0x6d5   :  { %v6919_v49 = vpop.f32.mrf.mxu1  ;;  %v6945_v59 = vpop.f32.mrf.mxu0 }
 0x6d7   :  { %v6925_v6 = vpop.f32.mrf.mxu1 }
 0x6dd   :  { %v6927_v36 = vpop.f32.mrf.mxu1 }
 0x6df   :  { %v6933_v40 = vpop.f32.mrf.mxu1 }
 0x6e5   :  { %v6935_v12 = vpop.f32.mrf.mxu1 }
 0x6e7   :  { %v6941_v30 = vpop.f32.mrf.mxu1 }
 0x6ed   :  { %v6943_v55 = vpop.f32.mrf.mxu1 }
 0x6ef   :  { %v6947_v8 = vpop.f32.mrf.mxu1 }
 0x6f1   :  { %v5167_v28 = vpop.f32.mrf.mxu1  ;;  %v5193_v16 = vpop.f32.mrf.mxu0 }
 0x6f2   :  { %v3384_v24 = vadd.f32 %v5167_v28, %v3117_v42 }
 0x6f3   :  { %v3304_v56 = vpop.f32.mrf.mxu1  ;;  %v3513_v50 = vpop.f32.mrf.mxu0 }
 0x6f4   :  { %v3593_v26 = vadd.f32 %v5193_v16, %v3384_v24  ;;  %v3383_v11 = vadd.f32 %v3304_v56, %v3112_v13  ;;  %v5665_v16 = vld [vmem:[%s7452_s0 + $0x28] sm:$0xff] }
 0x6f5   :  { %v5170_v41 = vpop.f32.mrf.mxu1  ;;  %v5196_v7 = vpop.f32.mrf.mxu0 }
 0x6f6   :  { %v3609_v54 = vadd.f32 %v5661_v21, %v3593_v26  ;;  %v3592_v62 = vadd.f32 %v3513_v50, %v3383_v11  ;;  %v3386_v44 = vadd.f32 %v5170_v41, %v3127_v43  ;;  %v3157_v50 = vadd.f32 %v6917_v58, %v6919_v49  ;;  %v5666_v11 = vld [vmem:[%s7452_s0 + $0x20] sm:$0xff] }
 0x6f7   :  { %v3314_v60 = vpop.f32.mrf.mxu1  ;;  %v3523_v27 = vpop.f32.mrf.mxu0  ;;  %v3152_v21 = vadd.f32 %v6921_v15, %v6925_v6 }
 0x6f8   :  { %v6958_v48 = vadd.f32 %v6952_v0, %v3609_v54  ;;  %v3608_v52 = vadd.f32 %v5662_v25, %v3592_v62  ;;  %v3595_v63 = vadd.f32 %v5196_v7, %v3386_v44  ;;  %v3385_v45 = vadd.f32 %v3314_v60, %v3122_v34  ;;  %v5667_v44 = vld [vmem:[%s7452_s0 + $0x38] sm:$0xff] }
 0x6f9   :  { %v5173_v35 = vpop.f32.mrf.mxu1  ;;  %v5199_v1 = vpop.f32.mrf.mxu0  ;;  %v3167_v25 = vadd.f32 %v6923_v31, %v6927_v36 }
 0x6fa   :  { %v6964_v32 = vadd.f32 %v6952_v0, %v3608_v52  ;;  %v3611_v37 = vadd.f32 %v5663_v9, %v3595_v63  ;;  %v3594_v4 = vadd.f32 %v3523_v27, %v3385_v45  ;;  %v3388_v18 = vadd.f32 %v5173_v35, %v3137_v22  ;;  %v5668_v45 = vld [vmem:[%s7452_s0 + $0x30] sm:$0xff] }
 0x6fb   :  { %v3324_v10 = vpop.f32.mrf.mxu1  ;;  %v3650_v14 = vsel %vm74_vm0, %v6958_v48, 0.0  ;;  %v3533_v53 = vpop.f32.mrf.mxu0  ;;  %v3162_v9 = vadd.f32 %v6929_v46, %v6933_v40 }
 0x6fc   :  { %v6972_v19 = vadd.f32 %v6952_v0, %v3611_v37  ;;  %v3610_v23 = vadd.f32 %v5664_v38, %v3594_v4  ;;  %v3597_v29 = vadd.f32 %v5199_v1, %v3388_v18  ;;  %v3387_v2 = vadd.f32 %v3324_v10, %v3132_v51  ;;  %3651 = vadd.xlane.f32.xlu1 %v3650_v14  ;;  %v5669_v18 = vld [vmem:[%s7452_s0 + $0x48] sm:$0xff]  ;;  %v5670_v38 = vld [vmem:[%s7452_s0 + $0x40] sm:$0xff] }
 0x6fd   :  { %v5176_v42 = vpop.f32.mrf.mxu1  ;;  %v5202_v28 = vpop.f32.mrf.mxu0  ;;  %v3647_v33 = vsel %vm74_vm0, %v6964_v32, 0.0 }
 0x6fe   :  { %v6980_v39 = vadd.f32 %v6952_v0, %v3610_v23  ;;  %v3613_v13 = vadd.f32 %v5665_v16, %v3597_v29  ;;  %v3596_v24 = vadd.f32 %v3533_v53, %v3387_v2  ;;  %v3390_v56 = vadd.f32 %v5176_v42, %v3147_v5  ;;  %3648 = vadd.xlane.f32.xlu0 %v3647_v33  ;;  %v5671_v16 = vld [vmem:[%s7452_s0 + $0x58] sm:$0xff] }
 0x6ff   :  { %v3334_v61 = vpop.f32.mrf.mxu1  ;;  %v3656_v3 = vsel %vm74_vm0, %v6972_v19, 0.0  ;;  %v3543_v43 = vpop.f32.mrf.mxu0 }
 0x700   :  { %v6990_v26 = vadd.f32 %v6952_v0, %v3613_v13  ;;  %v3612_v41 = vadd.f32 %v5666_v11, %v3596_v24  ;;  %v3599_v7 = vadd.f32 %v5202_v28, %v3390_v56  ;;  %v3389_v34 = vadd.f32 %v3334_v61, %v3142_v17  ;;  %3657 = vadd.xlane.f32.xlu1 %v3656_v3  ;;  %v5672_v3 = vld [vmem:[%s7452_s0 + $0x50] sm:$0xff] }
 0x701   :  { %v5179_v58 = vpop.f32.mrf.mxu1  ;;  %v5205_v49 = vpop.f32.mrf.mxu0  ;;  %v3653_v54 = vsel %vm74_vm0, %v6980_v39, 0.0 }
 0x702   :  { %v7000_v62 = vadd.f32 %v6952_v0, %v3612_v41  ;;  %v3615_v22 = vadd.f32 %v5667_v44, %v3599_v7  ;;  %v3598_v60 = vadd.f32 %v3543_v43, %v3389_v34  ;;  %v3392_v27 = vadd.f32 %v5179_v58, %v3157_v50  ;;  %3654 = vadd.xlane.f32.xlu0 %v3653_v54 }
 0x703   :  { %v3344_v15 = vpop.f32.mrf.mxu1  ;;  %v3662_v6 = vsel %vm74_vm0, %v6990_v26, 0.0  ;;  %v3553_v52 = vpop.f32.mrf.mxu0  ;;  %v3177_v41 = vadd.f32 %v6931_v47, %v6935_v12  ;;  %v3172_v58 = vadd.f32 %v6937_v57, %v6941_v30  ;;  %v3187_v47 = vadd.f32 %v6939_v20, %v6943_v55  ;;  %v5673_v57 = vld [vmem:[%s7452_s0 + $0x68] sm:$0xff]  ;;  %v5674_v20 = vld [vmem:[%s7452_s0 + $0x60] sm:$0xff] }
 0x704   :  { %v7010_v63 = vadd.f32 %v6952_v0, %v3615_v22  ;;  %v3614_v51 = vadd.f32 %v5668_v45, %v3598_v60  ;;  %v3601_v35 = vadd.f32 %v5205_v49, %v3392_v27  ;;  %v3391_v1 = vadd.f32 %v3344_v15, %v3152_v21  ;;  %3663 = vadd.xlane.f32.xlu1 %v3662_v6 }
 0x705   :  { %v5182_v31 = vpop.f32.mrf.mxu1  ;;  %v5208_v36 = vpop.f32.mrf.mxu0  ;;  %v3659_v37 = vsel %vm74_vm0, %v7000_v62, 0.0 }
 0x706   :  { %v7020_v4 = vadd.f32 %v6952_v0, %v3614_v51  ;;  %v3617_v5 = vadd.f32 %v5669_v18, %v3601_v35  ;;  %v3600_v10 = vadd.f32 %v3553_v52, %v3391_v1  ;;  %v3394_v14 = vadd.f32 %v5182_v31, %v3167_v25  ;;  %3660 = vadd.xlane.f32.xlu0 %v3659_v37  ;;  %v5676_v18 = vld [vmem:[%s7452_s0 + $0x70] sm:$0xff] }
 0x707   :  { %v3354_v53 = vpop.f32.mrf.mxu1  ;;  %v3668_v46 = vsel %vm74_vm0, %v7010_v63, 0.0  ;;  %v3563_v17 = vpop.f32.mrf.mxu0  ;;  %v3182_v25 = vadd.f32 %v6945_v59, %v6947_v8  ;;  %v5675_v8 = vld [vmem:[%s7452_s0 + $0x78] sm:$0xff] }
 0x708   :  { %v7028_v40 = vadd.f32 %v6952_v0, %v3617_v5  ;;  %v3616_v23 = vadd.f32 %v5670_v38, %v3600_v10  ;;  %v3603_v29 = vadd.f32 %v5208_v36, %v3394_v14  ;;  %v3393_v2 = vadd.f32 %v3354_v53, %v3162_v9  ;;  %3669 = vadd.xlane.f32.xlu1 %v3668_v46  ;;  %v3904_v38 = vld [vmem:[%s7460_s8 + $0x18] sm:$0xff] }
 0x709   :  { %v5185_v42 = vpop.f32.mrf.mxu1  ;;  %v3665_v28 = vsel %vm74_vm0, %v7020_v4, 0.0  ;;  %5215 = vmatprep.subr.mxu1 %v3904_v38 }
 0x70a   :  { %v7036_v33 = vadd.f32 %v6952_v0, %v3616_v23  ;;  %v3619_v13 = vadd.f32 %v5671_v16, %v3603_v29  ;;  %v3602_v24 = vadd.f32 %v3563_v17, %v3393_v2  ;;  %3666 = vadd.xlane.f32.xlu0 %v3665_v28  ;;  %v3674_v50 = vsel %vm74_vm0, %v7028_v40, 0.0  ;;  %5216 = vmatpush3.msra.mxu1 %v3904_v38 }
 0x70b   :  { %v3364_v56 = vpop.f32.mrf.mxu1  ;;  %v3396_v49 = vadd.f32 %v5185_v42, %v3177_v41 }
 0x70c   :  { %v7044_v61 = vadd.f32 %v6952_v0, %v3619_v13  ;;  %v3618_v43 = vadd.f32 %v5672_v3, %v3602_v24  ;;  %3675 = vadd.xlane.f32.xlu1 %v3674_v50  ;;  %v3671_v11 = vsel %vm74_vm0, %v7036_v33, 0.0  ;;  %v3395_v12 = vadd.f32 %v3364_v56, %v3172_v58 }
 0x70d   :  { %v5188_v34 = vpop.f32.mrf.mxu1 }
 0x70e   :  { %v7054_v7 = vadd.f32 %v6952_v0, %v3618_v43  ;;  %3672 = vadd.xlane.f32.xlu0 %v3671_v11  ;;  %v3680_v21 = vsel %vm74_vm0, %v7044_v61, 0.0  ;;  %v3398_v15 = vadd.f32 %v5188_v34, %v3187_v47 }
 0x70f   :  { %v3374_v60 = vpop.f32.mrf.mxu1 }
 0x710   :  { %3681 = vadd.xlane.f32.xlu1 %v3680_v21  ;;  %v5211_v54 = vpop.f32.mrf.mxu0  ;;  %v3677_v44 = vsel %vm74_vm0, %v7054_v7, 0.0  ;;  %v3397_v45 = vadd.f32 %v3374_v60, %v3182_v25 }
 0x711   :  { %v3605_v22 = vadd.f32 %v5211_v54, %v3396_v49 }
 0x712   :  { %3678 = vadd.xlane.f32.xlu0 %v3677_v44  ;;  %v3573_v27 = vpop.f32.mrf.mxu0 }
 0x713   :  { %v3621_v30 = vadd.f32 %v5673_v57, %v3605_v22  ;;  %v3604_v6 = vadd.f32 %v3573_v27, %v3395_v12 }
 0x714   :  { %v5214_v52 = vpop.f32.mrf.mxu0 }
 0x715   :  { %v7070_v51 = vadd.f32 %v6952_v0, %v3621_v30  ;;  %v3620_v55 = vadd.f32 %v5674_v20, %v3604_v6  ;;  %v3607_v35 = vadd.f32 %v5214_v52, %v3398_v15 }
 0x716   :  { %v3583_v1 = vpop.f32.mrf.mxu0 }
 0x717   :  { %v7076_v59 = vadd.f32 %v6952_v0, %v3620_v55  ;;  %v3623_v9 = vadd.f32 %v5675_v8, %v3607_v35  ;;  %v3606_v31 = vadd.f32 %v3583_v1, %v3397_v45  ;;  %v3686_v36 = vsel %vm74_vm0, %v7070_v51, 0.0 }
 0x718   :  { %3687 = vadd.xlane.f32.xlu1 %v3686_v36 }
 0x719   :  { %v7084_v37 = vadd.f32 %v6952_v0, %v3623_v9  ;;  %v3622_v5 = vadd.f32 %v5676_v18, %v3606_v31  ;;  %v3683_v10 = vsel %vm74_vm0, %v7076_v59, 0.0 }
 0x71a   :  { %3684 = vadd.xlane.f32.xlu0 %v3683_v10 }
 0x71b   :  { %v7092_v14 = vadd.f32 %v6952_v0, %v3622_v5  ;;  %v3692_v53 = vsel %vm74_vm0, %v7084_v37, 0.0 }
 0x71c   :  { %3693 = vadd.xlane.f32.xlu1 %v3692_v53 }
 0x71d   :  { %v3689_v46 = vsel %vm74_vm0, %v7092_v14, 0.0 }
 0x71e   :  { %3690 = vadd.xlane.f32.xlu0 %v3689_v46 }
 0x785   :  { %v3652_v23 = vpop.xlane.xlu1 %3651 }
 0x786   :  { %v3696_v29 = vmul.f32 0.03125, %v3652_v23 }
 0x787   :  { %v3649_v2 = vpop.xlane.xlu0 %3648 }
 0x788   :  { %v7102_v0 = vsub.f32 %v6958_v48, %v3696_v29  ;;  %v3695_v17 = vmul.f32 0.03125, %v3649_v2 }
 0x789   :  { %v3658_v42 = vpop.xlane.xlu1 %3657 }
 0x78a   :  { %v7105_v28 = vsub.f32 %v6964_v32, %v3695_v17  ;;  %v3698_v16 = vmul.f32 0.03125, %v3658_v42  ;;  %v3728_v13 = vmul.f32 %v7102_v0, %v7102_v0 }
 0x78b   :  { %v3655_v24 = vpop.xlane.xlu0 %3654 }
 0x78c   :  { %v7110_v56 = vsub.f32 %v6972_v19, %v3698_v16  ;;  %v3697_v50 = vmul.f32 0.03125, %v3655_v24  ;;  %v3746_v3 = vsel %vm74_vm0, %v3728_v13, 0.0  ;;  %v3727_v43 = vmul.f32 %v7105_v28, %v7105_v28 }
 0x78d   :  { %v3664_v11 = vpop.xlane.xlu1 %3663  ;;  %3747 = vadd.xlane.f32.xlu1 %v3746_v3 }
 0x78e   :  { %v7116_v41 = vsub.f32 %v6980_v39, %v3697_v50  ;;  %v3700_v34 = vmul.f32 0.03125, %v3664_v11  ;;  %v3743_v21 = vsel %vm74_vm0, %v3727_v43, 0.0  ;;  %v3730_v58 = vmul.f32 %v7110_v56, %v7110_v56 }
 0x78f   :  { %3744 = vadd.xlane.f32.xlu0 %v3743_v21  ;;  %v3661_v49 = vpop.xlane.xlu0 %3660 }
 0x790   :  { %v7122_v54 = vsub.f32 %v6990_v26, %v3700_v34  ;;  %v3699_v44 = vmul.f32 0.03125, %v3661_v49  ;;  %v3752_v47 = vsel %vm74_vm0, %v3730_v58, 0.0  ;;  %v3729_v12 = vmul.f32 %v7116_v41, %v7116_v41 }
 0x791   :  { %v3670_v22 = vpop.xlane.xlu1 %3669  ;;  %3753 = vadd.xlane.f32.xlu1 %v3752_v47 }
 0x792   :  { %v7128_v60 = vsub.f32 %v7000_v62, %v3699_v44  ;;  %v3702_v27 = vmul.f32 0.03125, %v3670_v22  ;;  %v3749_v25 = vsel %vm74_vm0, %v3729_v12, 0.0  ;;  %v3732_v15 = vmul.f32 %v7122_v54, %v7122_v54 }
 0x793   :  { %3750 = vadd.xlane.f32.xlu0 %v3749_v25  ;;  %v3667_v57 = vpop.xlane.xlu0 %3666 }
 0x794   :  { %v7134_v30 = vsub.f32 %v7010_v63, %v3702_v27  ;;  %v3701_v6 = vmul.f32 0.03125, %v3667_v57  ;;  %v3758_v52 = vsel %vm74_vm0, %v3732_v15, 0.0  ;;  %v3731_v45 = vmul.f32 %v7128_v60, %v7128_v60 }
 0x795   :  { %v3676_v20 = vpop.xlane.xlu1 %3675  ;;  %3759 = vadd.xlane.f32.xlu1 %v3758_v52 }
 0x796   :  { %v7140_v55 = vsub.f32 %v7020_v4, %v3701_v6  ;;  %v3704_v35 = vmul.f32 0.03125, %v3676_v20  ;;  %v3755_v1 = vsel %vm74_vm0, %v3731_v45, 0.0  ;;  %v3734_v8 = vmul.f32 %v7134_v30, %v7134_v30 }
 0x797   :  { %3756 = vadd.xlane.f32.xlu0 %v3755_v1  ;;  %v3673_v9 = vpop.xlane.xlu0 %3672  ;;  %v3903_v1 = vld [vmem:[%s7460_s8 + $0x10] sm:$0xff] }
 0x798   :  { %v7146_v31 = vsub.f32 %v7028_v40, %v3704_v35  ;;  %v3703_v36 = vmul.f32 0.03125, %v3673_v9  ;;  %v3764_v18 = vsel %vm74_vm0, %v3734_v8, 0.0  ;;  %v3733_v5 = vmul.f32 %v7140_v55, %v7140_v55  ;;  %5217 = vmatprep.subr.mxu1 %v3903_v1 }
 0x799   :  { %v3682_v10 = vpop.xlane.xlu1 %3681  ;;  %3765 = vadd.xlane.f32.xlu1 %v3764_v18  ;;  %5218 = vmatpush3.msra.mxu1 %v3903_v1 }
 0x79a   :  { %v7152_v53 = vsub.f32 %v7036_v33, %v3703_v36  ;;  %v3706_v46 = vmul.f32 0.03125, %v3682_v10  ;;  %v3761_v38 = vsel %vm74_vm0, %v3733_v5, 0.0  ;;  %v3736_v23 = vmul.f32 %v7146_v31, %v7146_v31  ;;  %v3902_v36 = vld [vmem:[%s7460_s8 + $0x8] sm:$0xff]  ;;  %v3901_v5 = vld [vmem:[%s7460_s8] sm:$0xff]  ;;  %v4200_v10 = vld [vmem:[%s7462_s10 + $0x78] sm:$0xff] }
 0x79b   :  { %3762 = vadd.xlane.f32.xlu0 %v3761_v38  ;;  %v3679_v29 = vpop.xlane.xlu0 %3678  ;;  %5219 = vmatprep.subr.mxu1 %v3902_v36  ;;  %v4198_v38 = vld [vmem:[%s7462_s10 + $0x68] sm:$0xff] }
 0x79c   :  { %v7158_v2 = vsub.f32 %v7044_v61, %v3706_v46  ;;  %v3705_v17 = vmul.f32 0.03125, %v3679_v29  ;;  %v3770_v42 = vsel %vm74_vm0, %v3736_v23, 0.0  ;;  %v3735_v16 = vmul.f32 %v7152_v53, %v7152_v53  ;;  %5220 = vmatpush3.msra.mxu1 %v3902_v36  ;;  %v4199_v46 = vld [vmem:[%s7462_s10 + $0x70] sm:$0xff]  ;;  %5247 = vmatprep.subr.mxu0 %v4200_v10 }
 0x79d   :  { %3771 = vadd.xlane.f32.xlu1 %v3770_v42  ;;  %5221 = vmatprep.subr.mxu1 %v3901_v5 }
 0x79e   :  { %v7164_v13 = vsub.f32 %v7054_v7, %v3705_v17  ;;  %v3767_v24 = vsel %vm74_vm0, %v3735_v16, 0.0  ;;  %v3738_v50 = vmul.f32 %v7158_v2, %v7158_v2  ;;  %5222 = vmatpush3.msra.mxu1 %v3901_v5  ;;  %5248 = vmatpush3.msra.mxu0 %v4200_v10 }
 0x79f   :  { %3768 = vadd.xlane.f32.xlu0 %v3767_v24  ;;  %5249 = vmatprep.subr.mxu0 %v4199_v46 }
 0x7a0   :  { %v3776_v3 = vsel %vm74_vm0, %v3738_v50, 0.0  ;;  %v3737_v43 = vmul.f32 %v7164_v13, %v7164_v13  ;;  %5250 = vmatpush3.msra.mxu0 %v4199_v46 }
 0x7a1   :  { %3777 = vadd.xlane.f32.xlu1 %v3776_v3  ;;  %v3688_v11 = vpop.xlane.xlu1 %3687  ;;  %5251 = vmatprep.subr.mxu0 %v4198_v38 }
 0x7a2   :  { %v3708_v34 = vmul.f32 0.03125, %v3688_v11  ;;  %v3773_v21 = vsel %vm74_vm0, %v3737_v43, 0.0  ;;  %5252 = vmatpush3.msra.mxu0 %v4198_v38 }
 0x7a3   :  { %3774 = vadd.xlane.f32.xlu0 %v3773_v21  ;;  %v3685_v58 = vpop.xlane.xlu0 %3684 }
 0x7a4   :  { %v7174_v49 = vsub.f32 %v7070_v51, %v3708_v34  ;;  %v3707_v44 = vmul.f32 0.03125, %v3685_v58 }
 0x7a5   :  { %v3694_v47 = vpop.xlane.xlu1 %3693 }
 0x7a6   :  { %v7177_v12 = vsub.f32 %v7076_v59, %v3707_v44  ;;  %v3710_v22 = vmul.f32 0.03125, %v3694_v47  ;;  %v3740_v27 = vmul.f32 %v7174_v49, %v7174_v49 }
 0x7a7   :  { %v3691_v25 = vpop.xlane.xlu0 %3690 }
 0x7a8   :  { %v7182_v15 = vsub.f32 %v7084_v37, %v3710_v22  ;;  %v3709_v57 = vmul.f32 0.03125, %v3691_v25  ;;  %v3782_v6 = vsel %vm74_vm0, %v3740_v27, 0.0  ;;  %v3739_v52 = vmul.f32 %v7177_v12, %v7177_v12 }
 0x7a9   :  { %3783 = vadd.xlane.f32.xlu1 %v3782_v6 }
 0x7aa   :  { %v7188_v45 = vsub.f32 %v7092_v14, %v3709_v57  ;;  %v3779_v20 = vsel %vm74_vm0, %v3739_v52, 0.0  ;;  %v3742_v35 = vmul.f32 %v7182_v15, %v7182_v15 }
 0x7ab   :  { %3780 = vadd.xlane.f32.xlu0 %v3779_v20 }
 0x7ac   :  { %v3788_v8 = vsel %vm74_vm0, %v3742_v35, 0.0  ;;  %v3741_v9 = vmul.f32 %v7188_v45, %v7188_v45 }
 0x7ad   :  { %3789 = vadd.xlane.f32.xlu1 %v3788_v8 }
 0x7ae   :  { %v3785_v18 = vsel %vm74_vm0, %v3741_v9, 0.0 }
 0x7af   :  { %3786 = vadd.xlane.f32.xlu0 %v3785_v18 }
 0x816   :  { %v3748_v23 = vpop.xlane.xlu1 %3747 }
 0x817   :  { %v3792_v29 = vmul.f32 0.03125, %v3748_v23  ;;  %v7219_v23 = vld [vmem:[%s7458_s6] ss:$0 sm:$0xff] }
 0x818   :  { %v3745_v17 = vpop.xlane.xlu0 %3744 }
 0x819   :  { %v3808_v42 = vadd.f32 1e-05, %v3792_v29  ;;  %v3791_v16 = vmul.f32 0.03125, %v3745_v17 }
 0x81a   :  { %v3754_v24 = vpop.xlane.xlu1 %3753 }
 0x81b   :  { %5597 = vrsqrt.f32 %v3808_v42  ;;  %v3807_v50 = vadd.f32 1e-05, %v3791_v16  ;;  %v3794_v3 = vmul.f32 0.03125, %v3754_v24 }
 0x81c   :  { %v3751_v43 = vpop.xlane.xlu0 %3750 }
 0x81d   :  { %5599 = vrsqrt.f32 %v3807_v50  ;;  %v3810_v11 = vadd.f32 1e-05, %v3794_v3  ;;  %v3793_v34 = vmul.f32 0.03125, %v3751_v43 }
 0x81e   :  { %v3760_v21 = vpop.xlane.xlu1 %3759 }
 0x81f   :  { %5601 = vrsqrt.f32 %v3810_v11  ;;  %v3809_v58 = vadd.f32 1e-05, %v3793_v34  ;;  %v3796_v44 = vmul.f32 0.03125, %v3760_v21  ;;  %v7227_v34 = vld [vmem:[%s7459_s7] ss:$0 sm:$0xff] }
 0x820   :  { %v3757_v47 = vpop.xlane.xlu0 %3756 }
 0x821   :  { %5603 = vrsqrt.f32 %v3809_v58  ;;  %v3812_v22 = vadd.f32 1e-05, %v3796_v44  ;;  %v3795_v27 = vmul.f32 0.03125, %v3757_v47 }
 0x822   :  { %v3766_v25 = vpop.xlane.xlu1 %3765 }
 0x823   :  { %5605 = vrsqrt.f32 %v3812_v22  ;;  %v3811_v57 = vadd.f32 1e-05, %v3795_v27  ;;  %v3798_v6 = vmul.f32 0.03125, %v3766_v25 }
 0x824   :  { %v3763_v52 = vpop.xlane.xlu0 %3762 }
 0x825   :  { %5607 = vrsqrt.f32 %v3811_v57  ;;  %v3814_v20 = vadd.f32 1e-05, %v3798_v6  ;;  %v3797_v35 = vmul.f32 0.03125, %v3763_v52 }
 0x826   :  { %v3772_v1 = vpop.xlane.xlu1 %3771 }
 0x827   :  { %5609 = vrsqrt.f32 %v3814_v20  ;;  %v3813_v8 = vadd.f32 1e-05, %v3797_v35  ;;  %v3800_v9 = vmul.f32 0.03125, %v3772_v1 }
 0x828   :  { %v5598_v36 = vpop.eup %5597  ;;  %v3769_v18 = vpop.xlane.xlu0 %3768 }
 0x829   :  { %v3840_v5 = vmul.f32 %v5598_v36, %v7102_v0  ;;  %5611 = vrsqrt.f32 %v3813_v8  ;;  %v3816_v10 = vadd.f32 1e-05, %v3800_v9  ;;  %v3799_v46 = vmul.f32 0.03125, %v3769_v18 }
 0x82a   :  { %v5600_v38 = vpop.eup %5599  ;;  %v3778_v29 = vpop.xlane.xlu1 %3777 }
 0x82b   :  { %5613 = vrsqrt.f32 %v3816_v10  ;;  %v3815_v17 = vadd.f32 1e-05, %v3799_v46  ;;  %v3802_v42 = vmul.f32 0.03125, %v3778_v29  ;;  %v3839_v50 = vmul.f32 %v5600_v38, %v7105_v28 }
 0x82c   :  { %v5602_v16 = vpop.eup %5601  ;;  %v3775_v24 = vpop.xlane.xlu0 %3774  ;;  %v3863_v3 = vmul.f32 %v7219_v23, %v3840_v5 }
 0x82d   :  { %v3842_v0 = vmul.f32 %v5602_v16, %v7110_v56  ;;  %5615 = vrsqrt.f32 %v3815_v17  ;;  %v3818_v43 = vadd.f32 1e-05, %v3802_v42  ;;  %v3801_v21 = vmul.f32 0.03125, %v3775_v24 }
 0x82e   :  { %v5604_v11 = vpop.eup %5603  ;;  %v3862_v58 = vmul.f32 %v7219_v23, %v3839_v50  ;;  %v3886_v27 = vadd.f32 %v7227_v34, %v3863_v3 }
 0x82f   :  { %5617 = vrsqrt.f32 %v3818_v43  ;;  %v3841_v44 = vmul.f32 %v5604_v11, %v7116_v41  ;;  %v3817_v28 = vadd.f32 1e-05, %v3801_v21  ;;  %v3865_v56 = vmul.f32 %v7219_v23, %v3842_v0 }
 0x830   :  { %v5606_v47 = vpop.eup %5605  ;;  %v3885_v22 = vadd.f32 %v7227_v34, %v3862_v58 }
 0x831   :  { %v3844_v25 = vmul.f32 %v5606_v47, %v7122_v54  ;;  %v3864_v57 = vmul.f32 %v7219_v23, %v3841_v44  ;;  %5619 = vrsqrt.f32 %v3817_v28  ;;  %v3888_v9 = vadd.f32 %v7227_v34, %v3865_v56 }
 0x832   :  { %v5608_v6 = vpop.eup %5607  ;;  %5223 = vmatprep.mubr.msk.f32.mxu1 %vm74_vm0, %v3885_v22  ;;  %v3784_v52 = vpop.xlane.xlu1 %3783 }
 0x833   :  { %5224 = vmatmul.mubr.msk.f32.vlgmr.msra.gmra.mxu1 %vm74_vm0, %v3886_v27  ;;  %v3804_v41 = vmul.f32 0.03125, %v3784_v52  ;;  %v3887_v20 = vadd.f32 %v7227_v34, %v3864_v57  ;;  %v3843_v35 = vmul.f32 %v5608_v6, %v7128_v60  ;;  %v3867_v54 = vmul.f32 %v7219_v23, %v3844_v25 }
 0x834   :  { %v5610_v1 = vpop.eup %5609  ;;  %v3781_v8 = vpop.xlane.xlu0 %3780 }
 0x835   :  { %v3846_v36 = vmul.f32 %v5610_v1, %v7134_v30  ;;  %v3820_v18 = vadd.f32 1e-05, %v3804_v41  ;;  %5226 = vmatprep.mubr.msk.f32.mxu1 %vm74_vm0, %v3887_v20  ;;  %v3803_v5 = vmul.f32 0.03125, %v3781_v8  ;;  %v3866_v10 = vmul.f32 %v7219_v23, %v3843_v35 }
 0x836   :  { %v5612_v46 = vpop.eup %5611  ;;  %v3790_v38 = vpop.xlane.xlu1 %3789  ;;  %v3890_v24 = vadd.f32 %v7227_v34, %v3867_v54 }
 0x837   :  { %5621 = vrsqrt.f32 %v3820_v18  ;;  %v3819_v29 = vadd.f32 1e-05, %v3803_v5  ;;  %5227 = vmatmul.mubr.msk.f32.gmra.mxu1 %vm74_vm0, %v3888_v9  ;;  %v3806_v60 = vmul.f32 0.03125, %v3790_v38  ;;  %v3889_v17 = vadd.f32 %v7227_v34, %v3866_v10 }
 0x838   :  { %v5614_v42 = vpop.eup %5613  ;;  %v3787_v16 = vpop.xlane.xlu0 %3786  ;;  %v3845_v30 = vmul.f32 %v5612_v46, %v7140_v55  ;;  %v3869_v50 = vmul.f32 %v7219_v23, %v3846_v36 }
 0x839   :  { %v3848_v3 = vmul.f32 %v5614_v42, %v7146_v31  ;;  %5623 = vrsqrt.f32 %v3819_v29  ;;  %v3822_v0 = vadd.f32 1e-05, %v3806_v60  ;;  %5229 = vmatprep.mubr.msk.f32.mxu1 %vm74_vm0, %v3889_v17  ;;  %v3805_v43 = vmul.f32 0.03125, %v3787_v16  ;;  %v4194_v29 = vld [vmem:[%s7462_s10 + $0x48] sm:$0xff]  ;;  %v4193_v60 = vld [vmem:[%s7462_s10 + $0x40] sm:$0xff]  ;;  %v4192_v17 = vld [vmem:[%s7462_s10 + $0x38] sm:$0xff] }
 0x83a   :  { %v5616_v11 = vpop.eup %5615  ;;  %v3868_v21 = vmul.f32 %v7219_v23, %v3845_v30  ;;  %v3892_v28 = vadd.f32 %v7227_v34, %v3869_v50  ;;  %v4191_v42 = vld [vmem:[%s7462_s10 + $0x30] sm:$0xff]  ;;  %v4190_v16 = vld [vmem:[%s7462_s10 + $0x28] sm:$0xff]  ;;  %v4188_v30 = vld [vmem:[%s7462_s10 + $0x18] sm:$0xff] }
 0x83b   :  { %5625 = vrsqrt.f32 %v3822_v0  ;;  %v3821_v58 = vadd.f32 1e-05, %v3805_v43  ;;  %5230 = vmatmul.mubr.msk.f32.gmra.mxu1 %vm74_vm0, %v3890_v24  ;;  %v3847_v44 = vmul.f32 %v5616_v11, %v7152_v53  ;;  %v3871_v56 = vmul.f32 %v7219_v23, %v3848_v3  ;;  %v4189_v24 = vld [vmem:[%s7462_s10 + $0x20] sm:$0xff]  ;;  %v4187_v50 = vld [vmem:[%s7462_s10 + $0x10] sm:$0xff]  ;;  %v4186_v3 = vld [vmem:[%s7462_s10 + $0x8] sm:$0xff] }
 0x83c   :  { %v5618_v47 = vpop.eup %5617  ;;  %v3891_v55 = vadd.f32 %v7227_v34, %v3868_v21  ;;  %v4185_v0 = vld [vmem:[%s7462_s10] sm:$0xff] }
 0x83d   :  { %v3850_v31 = vmul.f32 %v5618_v47, %v7158_v2  ;;  %5627 = vrsqrt.f32 %v3821_v58  ;;  %v3870_v22 = vmul.f32 %v7219_v23, %v3847_v44  ;;  %v3894_v57 = vadd.f32 %v7227_v34, %v3871_v56  ;;  %v7331_v43 = vld [vmem:[%s7461_s9] ss:$0 sm:$0xff] }
 0x83e   :  { %5232 = vmatprep.mubr.msk.f32.mxu1 %vm74_vm0, %v3891_v55  ;;  %v5620_v27 = vpop.eup %5619 }
 0x83f   :  { %5233 = vmatmul.mubr.msk.f32.gmra.mxu1 %vm74_vm0, %v3892_v28  ;;  %v3893_v25 = vadd.f32 %v7227_v34, %v3870_v22  ;;  %v3849_v53 = vmul.f32 %v5620_v27, %v7164_v13  ;;  %v3873_v2 = vmul.f32 %v7219_v23, %v3850_v31 }
 0x841   :  { %5235 = vmatprep.mubr.msk.f32.mxu1 %vm74_vm0, %v3893_v25  ;;  %v3872_v6 = vmul.f32 %v7219_v23, %v3849_v53  ;;  %v3896_v35 = vadd.f32 %v7227_v34, %v3873_v2 }
 0x843   :  { %5236 = vmatmul.mubr.msk.f32.gmra.mxu1 %vm74_vm0, %v3894_v57  ;;  %v3895_v41 = vadd.f32 %v7227_v34, %v3872_v6 }
 0x844   :  { %v5622_v52 = vpop.eup %5621 }
 0x845   :  { %v3852_v20 = vmul.f32 %v5622_v52, %v7174_v49  ;;  %5238 = vmatprep.mubr.msk.f32.mxu1 %vm74_vm0, %v3895_v41 }
 0x846   :  { %v5624_v1 = vpop.eup %5623 }
 0x847   :  { %5239 = vmatmul.mubr.msk.f32.gmra.mxu1 %vm74_vm0, %v3896_v35  ;;  %v3851_v13 = vmul.f32 %v5624_v1, %v7177_v12  ;;  %v3875_v9 = vmul.f32 %v7219_v23, %v3852_v20 }
 0x848   :  { %v5626_v8 = vpop.eup %5625 }
 0x849   :  { %v3854_v54 = vmul.f32 %v5626_v8, %v7182_v15  ;;  %v3874_v36 = vmul.f32 %v7219_v23, %v3851_v13  ;;  %v3898_v10 = vadd.f32 %v7227_v34, %v3875_v9 }
 0x84a   :  { %v5628_v18 = vpop.eup %5627 }
 0x84b   :  { %v3897_v5 = vadd.f32 %v7227_v34, %v3874_v36  ;;  %v3853_v49 = vmul.f32 %v5628_v18, %v7188_v45  ;;  %v3877_v46 = vmul.f32 %v7219_v23, %v3854_v54  ;;  %v4197_v45 = vld [vmem:[%s7462_s10 + $0x60] sm:$0xff] }
 0x84c   :  { %5253 = vmatprep.subr.mxu0 %v4197_v45 }
 0x84d   :  { %5241 = vmatprep.mubr.msk.f32.mxu1 %vm74_vm0, %v3897_v5  ;;  %v3876_v12 = vmul.f32 %v7219_v23, %v3853_v49  ;;  %v3900_v15 = vadd.f32 %v7227_v34, %v3877_v46  ;;  %5254 = vmatpush3.msra.mxu0 %v4197_v45  ;;  %v4196_v23 = vld [vmem:[%s7462_s10 + $0x58] sm:$0xff] }
 0x84e   :  { %5242 = vmatmul.mubr.msk.f32.gmra.mxu1 %vm74_vm0, %v3898_v10  ;;  %5255 = vmatprep.subr.mxu0 %v4196_v23 }
 0x84f   :  { %v3899_v38 = vadd.f32 %v7227_v34, %v3876_v12  ;;  %5256 = vmatpush3.msra.mxu0 %v4196_v23  ;;  %v4195_v34 = vld [vmem:[%s7462_s10 + $0x50] sm:$0xff] }
 0x850   :  { %5257 = vmatprep.subr.mxu0 %v4195_v34 }
 0x851   :  { %5244 = vmatprep.mubr.msk.f32.mxu1 %vm74_vm0, %v3899_v38  ;;  %5258 = vmatpush3.msra.mxu0 %v4195_v34 }
 0x852   :  { %5245 = vmatmul.mubr.msk.f32.gmra.mxu1 %vm74_vm0, %v3900_v15  ;;  %5259 = vmatprep.subr.mxu0 %v4194_v29 }
 0x853   :  { %5260 = vmatpush3.msra.mxu0 %v4194_v29 }
 0x854   :  { %5261 = vmatprep.subr.mxu0 %v4193_v60 }
 0x855   :  { %5262 = vmatpush3.msra.mxu0 %v4193_v60 }
 0x856   :  { %5263 = vmatprep.subr.mxu0 %v4192_v17 }
 0x857   :  { %5264 = vmatpush3.msra.mxu0 %v4192_v17 }
 0x858   :  { %5265 = vmatprep.subr.mxu0 %v4191_v42 }
 0x859   :  { %5266 = vmatpush3.msra.mxu0 %v4191_v42 }
 0x85a   :  { %5267 = vmatprep.subr.mxu0 %v4190_v16 }
 0x85b   :  { %5268 = vmatpush3.msra.mxu0 %v4190_v16 }
 0x85c   :  { %5269 = vmatprep.subr.mxu0 %v4189_v24 }
 0x85d   :  { %5270 = vmatpush3.msra.mxu0 %v4189_v24 }
 0x85e   :  { %5271 = vmatprep.subr.mxu0 %v4188_v30 }
 0x85f   :  { %5272 = vmatpush3.msra.mxu0 %v4188_v30 }
 0x860   :  { %5273 = vmatprep.subr.mxu0 %v4187_v50 }
 0x861   :  { %5274 = vmatpush3.msra.mxu0 %v4187_v50 }
 0x862   :  { %5275 = vmatprep.subr.mxu0 %v4186_v3 }
 0x863   :  { %5276 = vmatpush3.msra.mxu0 %v4186_v3 }
 0x864   :  { %5277 = vmatprep.subr.mxu0 %v4185_v0 }
 0x865   :  { %5278 = vmatpush3.msra.mxu0 %v4185_v0 }
 0x8f3   :  { %v5225_v11 = vpop.f32.mrf.mxu1 }
 0x8f4   :  { %v4032_v21 = vadd.f32 %v5225_v11, %v7331_v43 }
 0x8f5   :  { %v4026_v58 = vpop.f32.mrf.mxu1 }
 0x8f6   :  { %v4122_v44 = vmul.f32 0.70710677, %v4032_v21  ;;  %v4027_v47 = vadd.f32 %v7331_v43, %v4026_v58  ;;  %v4106_v29 = vmul.f32 0.5, %v4032_v21 }
 0x8f7   :  { %v5228_v55 = vpop.f32.mrf.mxu1 }
 0x8f8   :  { %5629 = verf.f32 %v4122_v44  ;;  %v4121_v28 = vmul.f32 0.70710677, %v4027_v47  ;;  %v4042_v31 = vadd.f32 %v5228_v55, %v7331_v43  ;;  %v4105_v15 = vmul.f32 0.5, %v4027_v47 }
 0x8f9   :  { %v4036_v22 = vpop.f32.mrf.mxu1 }
 0x8fa   :  { %5631 = verf.f32 %v4121_v28  ;;  %v4124_v56 = vmul.f32 0.70710677, %v4042_v31  ;;  %v4037_v27 = vadd.f32 %v7331_v43, %v4036_v22  ;;  %v4108_v44 = vmul.f32 0.5, %v4042_v31 }
 0x8fb   :  { %v5231_v25 = vpop.f32.mrf.mxu1 }
 0x8fc   :  { %5633 = verf.f32 %v4124_v56  ;;  %v4123_v53 = vmul.f32 0.70710677, %v4037_v27  ;;  %v4052_v57 = vadd.f32 %v5231_v25, %v7331_v43  ;;  %v4107_v0 = vmul.f32 0.5, %v4037_v27 }
 0x8fd   :  { %v4046_v2 = vpop.f32.mrf.mxu1 }
 0x8fe   :  { %5635 = verf.f32 %v4123_v53  ;;  %v4126_v6 = vmul.f32 0.70710677, %v4052_v57  ;;  %v4047_v52 = vadd.f32 %v7331_v43, %v4046_v2  ;;  %v4110_v53 = vmul.f32 0.5, %v4052_v57 }
 0x8ff   :  { %v5234_v41 = vpop.f32.mrf.mxu1 }
 0x900   :  { %5637 = verf.f32 %v4126_v6  ;;  %v4125_v20 = vmul.f32 0.70710677, %v4047_v52  ;;  %v7340_v35 = vadd.f32 %v5234_v41, %v7331_v43  ;;  %v4109_v2 = vmul.f32 0.5, %v4047_v52 }
 0x901   :  { %v4056_v1 = vpop.f32.mrf.mxu1 }
 0x902   :  { %5639 = verf.f32 %v4125_v20  ;;  %v4128_v13 = vmul.f32 0.70710677, %v7340_v35  ;;  %v4057_v8 = vadd.f32 %v7331_v43, %v4056_v1 }
 0x903   :  { %v5237_v9 = vpop.f32.mrf.mxu1 }
 0x904   :  { %5641 = verf.f32 %v4128_v13  ;;  %v4127_v54 = vmul.f32 0.70710677, %v4057_v8  ;;  %v7345_v36 = vadd.f32 %v5237_v9, %v7331_v43 }
 0x905   :  { %v5630_v18 = vpop.eup %5629  ;;  %v4066_v5 = vpop.f32.mrf.mxu1 }
 0x906   :  { %5643 = verf.f32 %v4127_v54  ;;  %v4130_v49 = vmul.f32 0.70710677, %v7345_v36  ;;  %v4154_v46 = vadd.f32 1.0, %v5630_v18  ;;  %v7349_v12 = vadd.f32 %v7331_v43, %v4066_v5 }
 0x907   :  { %v5632_v10 = vpop.eup %5631  ;;  %v5240_v38 = vpop.f32.mrf.mxu1 }
 0x908   :  { %5645 = verf.f32 %v4130_v49  ;;  %v7352_v45 = vadd.f32 %v5240_v38, %v7331_v43  ;;  %v4153_v23 = vadd.f32 1.0, %v5632_v10  ;;  %v4129_v60 = vmul.f32 0.70710677, %v7349_v12 }
 0x909   :  { %v5634_v34 = vpop.eup %5633  ;;  %v4076_v17 = vpop.f32.mrf.mxu1  ;;  %v4170_v50 = vmul.f32 %v4154_v46, %v4106_v29  ;;  %v4111_v10 = vmul.f32 0.5, %v4057_v8  ;;  %v4112_v38 = vmul.f32 0.5, %v7340_v35  ;;  %v4113_v8 = vmul.f32 0.5, %v7349_v12 }
 0x90a   :  { %v4132_v42 = vmul.f32 0.70710677, %v7352_v45  ;;  %v7357_v16 = vadd.f32 %v7331_v43, %v4076_v17  ;;  %v4169_v24 = vmul.f32 %v4153_v23, %v4105_v15  ;;  %5647 = verf.f32 %v4129_v60 }
 0x90b   :  { %v5636_v30 = vpop.eup %5635  ;;  %v4156_v3 = vadd.f32 1.0, %v5634_v34  ;;  %v4114_v35 = vmul.f32 0.5, %v7345_v36 }
 0x90c   :  { %5649 = verf.f32 %v4132_v42  ;;  %v4131_v11 = vmul.f32 0.70710677, %v7357_v16  ;;  %5279 = vmatprep.mubr.f32.mxu0 %v4169_v24  ;;  %v4155_v58 = vadd.f32 1.0, %v5636_v30 }
 0x90d   :  { %v5638_v21 = vpop.eup %5637  ;;  %5280 = vmatmul.mubr.f32.vlgmr.msra.gmra.mxu0 %v4170_v50  ;;  %v4172_v25 = vmul.f32 %v4156_v3, %v4108_v44 }
 0x90e   :  { %5651 = verf.f32 %v4131_v11  ;;  %v5243_v47 = vpop.f32.mrf.mxu1  ;;  %v4171_v55 = vmul.f32 %v4155_v58, %v4107_v0  ;;  %v4158_v28 = vadd.f32 1.0, %v5638_v21  ;;  %v4115_v0 = vmul.f32 0.5, %v7357_v16 }
 0x90f   :  { %v5640_v22 = vpop.eup %5639  ;;  %v4092_v56 = vadd.f32 %v5243_v47, %v7331_v43  ;;  %v4116_v21 = vmul.f32 0.5, %v7352_v45 }
 0x910   :  { %5282 = vmatprep.mubr.f32.mxu0 %v4171_v55  ;;  %v4086_v27 = vpop.f32.mrf.mxu1  ;;  %v4157_v6 = vadd.f32 1.0, %v5640_v22  ;;  %v4174_v9 = vmul.f32 %v4158_v28, %v4110_v53 }
 0x911   :  { %v5642_v41 = vpop.eup %5641  ;;  %v4134_v20 = vmul.f32 0.70710677, %v4092_v56  ;;  %5283 = vmatmul.mubr.f32.gmra.mxu0 %v4172_v25  ;;  %v4087_v1 = vadd.f32 %v7331_v43, %v4086_v27  ;;  %v4118_v53 = vmul.f32 0.5, %v4092_v56 }
 0x912   :  { %v5246_v31 = vpop.f32.mrf.mxu1  ;;  %v4173_v13 = vmul.f32 %v4157_v6, %v4109_v2  ;;  %v4160_v49 = vadd.f32 1.0, %v5642_v41 }
 0x913   :  { %v5644_v54 = vpop.eup %5643  ;;  %5653 = verf.f32 %v4134_v20  ;;  %v4133_v18 = vmul.f32 0.70710677, %v4087_v1  ;;  %v4102_v5 = vadd.f32 %v5246_v31, %v7331_v43  ;;  %v4117_v22 = vmul.f32 0.5, %v4087_v1  ;;  %v4568_v1 = vld [vmem:[%s7463_s11] ss:$0 sm:$0xff] }
 0x914   :  { %5285 = vmatprep.mubr.f32.mxu0 %v4173_v13  ;;  %v4096_v57 = vpop.f32.mrf.mxu1  ;;  %v4159_v52 = vadd.f32 1.0, %v5644_v54  ;;  %v4176_v60 = vmul.f32 %v4160_v49, %v4112_v38 }
 0x915   :  { %v5646_v46 = vpop.eup %5645  ;;  %5655 = verf.f32 %v4133_v18  ;;  %v4136_v15 = vmul.f32 0.70710677, %v4102_v5  ;;  %5286 = vmatmul.mubr.f32.gmra.mxu0 %v4174_v9  ;;  %v4097_v23 = vadd.f32 %v7331_v43, %v4096_v57  ;;  %v4120_v45 = vmul.f32 0.5, %v4102_v5 }
 0x916   :  { %v4175_v34 = vmul.f32 %v4159_v52, %v4111_v10  ;;  %v4162_v42 = vadd.f32 1.0, %v5646_v46 }
 0x917   :  { %5657 = verf.f32 %v4136_v15  ;;  %v4135_v29 = vmul.f32 0.70710677, %v4097_v23  ;;  %v5648_v17 = vpop.eup %5647  ;;  %v4119_v41 = vmul.f32 0.5, %v4097_v23 }
 0x918   :  { %5288 = vmatprep.mubr.f32.mxu0 %v4175_v34  ;;  %v4161_v30 = vadd.f32 1.0, %v5648_v17  ;;  %v4178_v43 = vmul.f32 %v4162_v42, %v4114_v35 }
 0x919   :  { %v5650_v24 = vpop.eup %5649  ;;  %5659 = verf.f32 %v4135_v29  ;;  %5289 = vmatmul.mubr.f32.gmra.mxu0 %v4176_v60 }
 0x91a   :  { %v4177_v3 = vmul.f32 %v4161_v30, %v4113_v8  ;;  %v4164_v58 = vadd.f32 1.0, %v5650_v24 }
 0x91b   :  { %v5652_v50 = vpop.eup %5651 }
 0x91c   :  { %v4163_v11 = vadd.f32 1.0, %v5652_v50  ;;  %5291 = vmatprep.mubr.f32.mxu0 %v4177_v3  ;;  %v4180_v12 = vmul.f32 %v4164_v58, %v4116_v21 }
 0x91d   :  { %5292 = vmatmul.mubr.f32.gmra.mxu0 %v4178_v43 }
 0x91e   :  { %v4179_v44 = vmul.f32 %v4163_v11, %v4115_v0 }
 0x920   :  { %v5654_v47 = vpop.eup %5653  ;;  %5294 = vmatprep.mubr.f32.mxu0 %v4179_v44 }
 0x921   :  { %5295 = vmatmul.mubr.f32.gmra.mxu0 %v4180_v12  ;;  %v4166_v28 = vadd.f32 1.0, %v5654_v47 }
 0x922   :  { %v5656_v55 = vpop.eup %5655 }
 0x923   :  { %v4165_v36 = vadd.f32 1.0, %v5656_v55  ;;  %v4182_v27 = vmul.f32 %v4166_v28, %v4118_v53 }
 0x924   :  { %v5658_v25 = vpop.eup %5657 }
 0x925   :  { %v4181_v2 = vmul.f32 %v4165_v36, %v4117_v22  ;;  %v4168_v6 = vadd.f32 1.0, %v5658_v25 }
 0x926   :  { %v5660_v16 = vpop.eup %5659 }
 0x927   :  { %5297 = vmatprep.mubr.f32.mxu0 %v4181_v2  ;;  %v4167_v20 = vadd.f32 1.0, %v5660_v16  ;;  %v4184_v13 = vmul.f32 %v4168_v6, %v4120_v45 }
 0x928   :  { %5298 = vmatmul.mubr.f32.gmra.mxu0 %v4182_v27 }
 0x929   :  { %v4183_v31 = vmul.f32 %v4167_v20, %v4119_v41 }
 0x92b   :  { %5300 = vmatprep.mubr.f32.mxu0 %v4183_v31 }
 0x92c   :  { %5301 = vmatmul.mubr.f32.gmra.mxu0 %v4184_v13 }
 0x9cd   :  { %v5281_v9 = vpop.f32.mrf.mxu0 }
 0x9ce   :  { %v4280_v54 = vadd.f32 %v5281_v9, %v4568_v1 }
 0x9cf   :  { %v4274_v56 = vpop.f32.mrf.mxu0 }
 0x9d0   :  { %v4354_v18 = vadd.f32 %v4280_v54, %v6958_v48  ;;  %v4275_v49 = vadd.f32 %v4568_v1, %v4274_v56 }
 0x9d1   :  { %v5284_v10 = vpop.f32.mrf.mxu0 }
 0x9d2   :  { %4370 = vst.msk [vmem:[%s7465_s13 + $0x8] sm:$0xff] %vm74_vm0, %v4354_v18  ;;  %v4353_v5 = vadd.f32 %v4275_v49, %v6964_v32  ;;  %v4290_v57 = vadd.f32 %v5284_v10, %v4568_v1 }
 0x9d3   :  { %v4284_v52 = vpop.f32.mrf.mxu0 }
 0x9d4   :  { %4369 = vst.msk [vmem:[%s7465_s13] sm:$0xff] %vm74_vm0, %v4353_v5  ;;  %v4356_v46 = vadd.f32 %v4290_v57, %v6972_v19  ;;  %v4285_v38 = vadd.f32 %v4568_v1, %v4284_v52 }
 0x9d5   :  { %v5287_v48 = vpop.f32.mrf.mxu0 }
 0x9d6   :  { %4372 = vst.msk [vmem:[%s7465_s13 + $0x18] sm:$0xff] %vm74_vm0, %v4356_v46  ;;  %v4355_v15 = vadd.f32 %v4285_v38, %v6980_v39  ;;  %v4300_v23 = vadd.f32 %v5287_v48, %v4568_v1 }
 0x9d7   :  { %v4294_v32 = vpop.f32.mrf.mxu0 }
 0x9d8   :  { %4371 = vst.msk [vmem:[%s7465_s13 + $0x10] sm:$0xff] %vm74_vm0, %v4355_v15  ;;  %v4358_v34 = vadd.f32 %v4300_v23, %v6990_v26  ;;  %v4295_v29 = vadd.f32 %v4568_v1, %v4294_v32 }
 0x9d9   :  { %v5290_v19 = vpop.f32.mrf.mxu0 }
 0x9da   :  { %4374 = vst.msk [vmem:[%s7465_s13 + $0x28] sm:$0xff] %vm74_vm0, %v4358_v34  ;;  %v4357_v60 = vadd.f32 %v4295_v29, %v7000_v62  ;;  %v4310_v17 = vadd.f32 %v5290_v19, %v4568_v1 }
 0x9db   :  { %v4304_v39 = vpop.f32.mrf.mxu0 }
 0x9dc   :  { %4373 = vst.msk [vmem:[%s7465_s13 + $0x20] sm:$0xff] %vm74_vm0, %v4357_v60  ;;  %v4360_v42 = vadd.f32 %v4310_v17, %v7010_v63  ;;  %v4305_v24 = vadd.f32 %v4568_v1, %v4304_v39 }
 0x9dd   :  { %v5293_v8 = vpop.f32.mrf.mxu0 }
 0x9de   :  { %4376 = vst.msk [vmem:[%s7465_s13 + $0x38] sm:$0xff] %vm74_vm0, %v4360_v42  ;;  %v4359_v26 = vadd.f32 %v4305_v24, %v7020_v4  ;;  %v4320_v30 = vadd.f32 %v5293_v8, %v4568_v1 }
 0x9df   :  { %v4314_v62 = vpop.f32.mrf.mxu0 }
 0x9e0   :  { %4375 = vst.msk [vmem:[%s7465_s13 + $0x30] sm:$0xff] %vm74_vm0, %v4359_v26  ;;  %v4362_v35 = vadd.f32 %v4320_v30, %v7028_v40  ;;  %v4315_v50 = vadd.f32 %v4568_v1, %v4314_v62 }
 0x9e1   :  { %v5296_v63 = vpop.f32.mrf.mxu0 }
 0x9e2   :  { %4378 = vst.msk [vmem:[%s7465_s13 + $0x48] sm:$0xff] %vm74_vm0, %v4362_v35  ;;  %v4361_v3 = vadd.f32 %v4315_v50, %v7036_v33  ;;  %v4330_v4 = vadd.f32 %v5296_v63, %v4568_v1 }
 0x9e3   :  { %v4324_v0 = vpop.f32.mrf.mxu0 }
 0x9e4   :  { %4377 = vst.msk [vmem:[%s7465_s13 + $0x40] sm:$0xff] %vm74_vm0, %v4361_v3  ;;  %v4364_v43 = vadd.f32 %v4330_v4, %v7044_v61  ;;  %v4325_v11 = vadd.f32 %v4568_v1, %v4324_v0 }
 0x9e6   :  { %4380 = vst.msk [vmem:[%s7465_s13 + $0x58] sm:$0xff] %vm74_vm0, %v4364_v43  ;;  %v4363_v40 = vadd.f32 %v4325_v11, %v7054_v7 }
 0x9e8   :  { %v5299_v58 = vpop.f32.mrf.mxu0  ;;  %4379 = vst.msk [vmem:[%s7465_s13 + $0x50] sm:$0xff] %vm74_vm0, %v4363_v40 }
 0x9e9   :  { %v4340_v33 = vadd.f32 %v5299_v58, %v4568_v1 }
 0x9ea   :  { %v4334_v21 = vpop.f32.mrf.mxu0 }
 0x9eb   :  { %v4366_v44 = vadd.f32 %v4340_v33, %v7070_v51  ;;  %v4335_v47 = vadd.f32 %v4568_v1, %v4334_v21 }
 0x9ec   :  { %v5302_v61 = vpop.f32.mrf.mxu0 }
 0x9ed   :  { %4382 = vst.msk [vmem:[%s7465_s13 + $0x68] sm:$0xff] %vm74_vm0, %v4366_v44  ;;  %v4365_v12 = vadd.f32 %v4335_v47, %v7076_v59  ;;  %v4350_v7 = vadd.f32 %v5302_v61, %v4568_v1 }
 0x9ee   :  { %v4344_v55 = vpop.f32.mrf.mxu0 }
 0x9ef   :  { %4381 = vst.msk [vmem:[%s7465_s13 + $0x60] sm:$0xff] %vm74_vm0, %v4365_v12  ;;  %v4368_v28 = vadd.f32 %v4350_v7, %v7084_v37  ;;  %v4345_v22 = vadd.f32 %v4568_v1, %v4344_v55 }
 0x9f1   :  { %4384 = vst.msk [vmem:[%s7465_s13 + $0x78] sm:$0xff] %vm74_vm0, %v4368_v28  ;;  %v4367_v51 = vadd.f32 %v4345_v22, %v7092_v14 }
 0x9f3   :  { %4383 = vst.msk [vmem:[%s7465_s13 + $0x70] sm:$0xff] %vm74_vm0, %v4367_v51 }
 0x9f4   :  { %4389 = vsyncpa [#allocation3], 1 }

</bundles_post_ra>
